<compile_context>
chip_gen: v7x
topology: tpu7x:2x2x1
jax: 0.10.0
libtpu: 0.0.40
codegen_flags: <defaults>
</compile_context>

<pallas_src>
import jax
import jax.numpy as jnp
import numpy as np
from jax import lax
from jax.experimental import pallas as pl
from jax.experimental.pallas import tpu as pltpu

LANE = 128


def _round_up(x, m):
    return (x + m - 1) // m * m


# ------------------------------ parameter packing ------------------------------

def pack_params(p):
    """Fold BN scale into conv weights, pad channels to lane multiples, cast bf16.

    conv2 weights are repacked as (3, 3*Pp, Pp): for each kh, the three kw taps
    are concatenated along K so the kernel can do one wide MXU dot per kh.
    """
    w1, w2, w3 = p["w1"], p["w2"], p["w3"]
    Cin, P = w1.shape
    Cout = w3.shape[1]
    assert Cout == Cin, "identity residual requires inplanes == planes * 4"

    Pp = _round_up(P, LANE)
    Cip = _round_up(Cin, LANE)

    w1f = w1 * p["s1"][None, :]                          # (Cin, P)
    w2f = w2 * p["s2"][None, None, None, :]              # (3, 3, P, P) HWIO
    w3f = w3 * p["s3"][None, :]                          # (P, Cout)

    w1p = jnp.zeros((Cip, Pp), jnp.float32).at[:Cin, :P].set(w1f)
    w2p = jnp.zeros((3, 3 * Pp, Pp), jnp.float32)
    for kh in range(3):
        for kw in range(3):
            w2p = w2p.at[kh, kw * Pp:kw * Pp + P, :P].set(w2f[kh, kw])
    w3p = jnp.zeros((Pp, Cip), jnp.float32).at[:P, :Cout].set(w3f)
    b1p = jnp.zeros((1, Pp), jnp.float32).at[0, :P].set(p["b1"])
    b2p = jnp.zeros((1, Pp), jnp.float32).at[0, :P].set(p["b2"])
    b3p = jnp.zeros((1, Cip), jnp.float32).at[0, :Cout].set(p["b3"])

    return dict(
        w1=w1p.astype(jnp.bfloat16), w2=w2p.astype(jnp.bfloat16),
        w3=w3p.astype(jnp.bfloat16), b1=b1p, b2=b2p, b3=b3p,
        meta=dict(Cin=Cin, P=P, Cout=Cout, Pp=Pp, Cip=Cip),
    )


# ------------------------------ fused forward ------------------------------

def bottleneck_forward(x_nchw, packed, *, force_th=None,
                       single_buffer_weights=True, use_hw_roll=True):
    meta = packed["meta"]
    Cin, P, Cout = meta["Cin"], meta["P"], meta["Cout"]
    Cip, Pp = meta["Cip"], meta["Pp"]
    N, C, H, W = x_nchw.shape
    assert C == Cin and Cout == Cin

    # VMEM working width for y1: valid cols 0..W-1, zero pad cols W..Wq-1.
    Wq = _round_up(W + 1, 8)

    # NCHW -> NHWC, bf16.  Channel padding only if Cin is not lane-aligned
    # (no-op for standard ResNet widths).  No width padding in HBM.
    x = jnp.transpose(x_nchw, (0, 2, 3, 1)).astype(jnp.bfloat16)
    if Cip != Cin:
        x = jnp.pad(x, ((0, 0), (0, 0), (0, 0), (0, Cip - Cin)))

    # ---- byte-based row-tile (TH) choice + VMEM limit -------------------------
    try:
        vmem_cap = int(pltpu.get_tpu_info().vmem_capacity_bytes)
    except Exception:
        vmem_cap = 64 * 1024 * 1024          # conservative (v7x per-TC)

    wbuf = 1 if single_buffer_weights else 2
    w_bytes = wbuf * ((Cip * Pp + 9 * Pp * Pp + Pp * Cip) * 2
                      + (2 * Pp + Cip) * 4)

    def vmem_est(th):
        x_blk = th * W * Cip * 2
        halo = 2 * W * Cip * 2
        o_blk = th * W * Cout * 2
        y1 = (th + 2) * Wq * Pp * 2
        acc = th * Wq * Pp * 4
        tmp = (th * Wq * 3 * Pp * 2          # concatenated conv2 LHS (bf16)
               + th * Wq * Pp * 4            # conv2 f32 partial
               + th * W * (Pp + 2 * Cip) * 4)  # y2/y3/residual f32 temps
        return 2 * (x_blk + halo + o_blk) + y1 + acc + w_bytes + tmp

    if force_th is not None:
        TH = int(force_th)
    else:
        budget = min(vmem_cap // 3, 24 * 1024 * 1024)
        divisors = [d for d in range(1, H + 1) if H % d == 0]
        fitting = [d for d in divisors if vmem_est(d) <= budget] or [1]
        TH = max(fitting)
        if N * (H // TH) < 2:                # keep both v7x TensorCores busy
            multi = [d for d in fitting if H // d >= 2]
            if multi:
                TH = max(multi)
    assert H % TH == 0, "row tile must divide H"   # TODO(synk): tail blocks
    nhb = H // TH
    use_halo = nhb > 1
    vmem_limit = int(min(max(2 * vmem_est(TH), 32 * 1024 * 1024),
                         (vmem_cap * 3) // 4))

    roll = pltpu.roll if use_hw_roll else jnp.roll
    Rq = TH * Wq

    # ---- kernel ---------------------------------------------------------------
    def kernel(*refs):
        if use_halo:
            (xt_ref, xm_ref, xb_ref, w1_ref, b1_ref, w2_ref, b2_ref,
             w3_ref, b3_ref, o_ref, y1s_ref, acc_ref) = refs
        else:
            (xm_ref, w1_ref, b1_ref, w2_ref, b2_ref,
             w3_ref, b3_ref, o_ref, y1s_ref, acc_ref) = refs

        hb = pl.program_id(1)

        def conv1(x2d):  # bf16 [R, Cip] -> f32 [R, Pp], BN folded into w1/b1
            y = jnp.dot(x2d, w1_ref[...], preferred_element_type=jnp.float32)
            return jnp.maximum(y + b1_ref[...], 0.0)

        # conv1 + bn1 + relu over the TH x W valid pixels only
        xm = xm_ref[0]                                        # (TH, W, Cip) bf16
        y1_mid = conv1(xm.reshape(TH * W, Cip))               # (TH*W, Pp) f32
        y1s_ref[1:TH + 1, :W, :] = (
            y1_mid.reshape(TH, W, Pp).astype(jnp.bfloat16))
        # zero the pad columns of every scratch row (static store, no masks)
        y1s_ref[:, W:, :] = jnp.zeros((TH + 2, Wq - W, Pp), jnp.bfloat16)

        if use_halo:
            y1_top = jnp.where(hb > 0, conv1(xt_ref[0, 0]), 0.0)
            y1s_ref[0, :W, :] = y1_top.astype(jnp.bfloat16)
            y1_bot = jnp.where(hb < nhb - 1, conv1(xb_ref[0, 0]), 0.0)
            y1s_ref[TH + 1, :W, :] = y1_bot.astype(jnp.bfloat16)
        else:
            zrow = jnp.zeros((W, Pp), jnp.bfloat16)
            y1s_ref[0, :W, :] = zrow
            y1s_ref[TH + 1, :W, :] = zrow

        # conv2 (3x3) + bn2: 3 wide MXU dots (K = 3*Pp), kw taps via XLU rolls.
        # Rolls wrap into zero pad columns, so no extra masking is needed.
        for kh in range(3):
            slab = y1s_ref[kh:kh + TH, :, :].reshape(Rq, Pp)     # bf16
            left = roll(slab, 1, 0)                              # kw = 0 tap
            right = roll(slab, Rq - 1, 0)                        # kw = 2 tap
            lhs = jnp.concatenate([left, slab, right], axis=1)   # (Rq, 3*Pp)
            part = jnp.dot(lhs, w2_ref[kh],
                           preferred_element_type=jnp.float32)
            if kh == 0:
                acc_ref[...] = part
            else:
                acc_ref[...] += part

        y2 = jnp.maximum(acc_ref[...] + b2_ref[...], 0.0)        # (Rq, Pp) f32
        y2 = (y2.reshape(TH, Wq, Pp)[:, :W, :]
                .reshape(TH * W, Pp).astype(jnp.bfloat16))

        # conv3 (1x1) + bn3 + residual + relu, stored as bf16 / Cout channels
        y3 = jnp.dot(y2, w3_ref[...], preferred_element_type=jnp.float32)
        res = xm.reshape(TH * W, Cip).astype(jnp.float32)
        out = jnp.maximum(y3 + b3_ref[...] + res, 0.0).astype(jnp.bfloat16)
        if Cip != Cout:
            out = out[:, :Cout]
        o_ref[0] = out.reshape(TH, W, Cout)

    # ---- specs ----------------------------------------------------------------
    wkw = dict(pipeline_mode=pl.Buffered(1)) if single_buffer_weights else {}
    w_specs = [
        pl.BlockSpec((Cip, Pp), lambda n, hb: (0, 0), **wkw),
        pl.BlockSpec((1, Pp), lambda n, hb: (0, 0), **wkw),
        pl.BlockSpec((3, 3 * Pp, Pp), lambda n, hb: (0, 0, 0), **wkw),
        pl.BlockSpec((1, Pp), lambda n, hb: (0, 0), **wkw),
        pl.BlockSpec((Pp, Cip), lambda n, hb: (0, 0), **wkw),
        pl.BlockSpec((1, Cip), lambda n, hb: (0, 0), **wkw),
    ]
    xm_spec = pl.BlockSpec((1, TH, W, Cip), lambda n, hb: (n, hb, 0, 0))
    if use_halo:
        xt_spec = pl.BlockSpec(
            (1, 1, W, Cip), lambda n, hb: (n, jnp.maximum(hb * TH - 1, 0), 0, 0))
        xb_spec = pl.BlockSpec(
            (1, 1, W, Cip),
            lambda n, hb: (n, jnp.minimum((hb + 1) * TH, H - 1), 0, 0))
        in_specs = [xt_spec, xm_spec, xb_spec] + w_specs
        x_args = (x, x, x)
    else:
        in_specs = [xm_spec] + w_specs
        x_args = (x,)

    out_spec = pl.BlockSpec((1, TH, W, Cout), lambda n, hb: (n, hb, 0, 0))

    flops = 2 * N * H * W * (Cin * P + 9 * P * P + P * Cout)
    bytes_accessed = (x.size * 2 + N * H * W * Cout * 2
                      + (Cip * Pp + 9 * Pp * Pp + Pp * Cip) * 2
                      + (2 * Pp + Cip) * 4)

    out = pl.pallas_call(
        kernel,
        out_shape=jax.ShapeDtypeStruct((N, H, W, Cout), jnp.bfloat16),
        grid=(N, nhb),
        in_specs=in_specs,
        out_specs=out_spec,
        scratch_shapes=[pltpu.VMEM((TH + 2, Wq, Pp), jnp.bfloat16),
                        pltpu.VMEM((Rq, Pp), jnp.float32)],
        compiler_params=pltpu.CompilerParams(
            dimension_semantics=("parallel", "parallel"),
            vmem_limit_bytes=vmem_limit),
        cost_estimate=pl.CostEstimate(flops=flops, transcendentals=0,
                                      bytes_accessed=bytes_accessed),
    )(*x_args, packed["w1"], packed["b1"], packed["w2"], packed["b2"],
      packed["w3"], packed["b3"])

    # NHWC bf16 -> NCHW (module interface); keep bf16 to avoid blowing the
    # output stream back up to f32.
    return jnp.transpose(out, (0, 3, 1, 2))


# ------------------------------ params / reference ------------------------------

def init_params(key, inplanes, planes, eps=1e-5):
    ks = jax.random.split(key, 15)

    def conv_w(k, shape, fan_in):
        return jax.random.normal(k, shape, jnp.float32) / jnp.sqrt(fan_in)

    def bn_fold(k0, k1, k2, k3, c):
        gamma = 1.0 + 0.1 * jax.random.normal(k0, (c,), jnp.float32)
        beta = 0.1 * jax.random.normal(k1, (c,), jnp.float32)
        running_mean = 0.1 * jax.random.normal(k2, (c,), jnp.float32)
        running_var = 0.5 + jax.random.uniform(k3, (c,), jnp.float32)
        scale = gamma / jnp.sqrt(running_var + eps)
        bias = beta - running_mean * scale
        return scale, bias

    w1 = conv_w(ks[0], (inplanes, planes), inplanes)
    w2 = conv_w(ks[1], (3, 3, planes, planes), 9 * planes)
    w3 = conv_w(ks[2], (planes, 4 * planes), planes)
    s1, b1 = bn_fold(ks[3], ks[4], ks[5], ks[6], planes)
    s2, b2 = bn_fold(ks[7], ks[8], ks[9], ks[10], planes)
    s3, b3 = bn_fold(ks[11], ks[12], ks[13], ks[14], 4 * planes)
    return dict(w1=w1, w2=w2, w3=w3, s1=s1, b1=b1, s2=s2, b2=b2, s3=s3, b3=b3)


def bottleneck_reference(x_nchw, packed):
    """Pure-JAX reference (lax convs, f32 math on the same bf16-rounded weights/x)."""
    m = packed["meta"]
    Cin, P, Cout, Pp = m["Cin"], m["P"], m["Cout"], m["Pp"]
    x = jnp.transpose(x_nchw, (0, 2, 3, 1)).astype(jnp.bfloat16).astype(jnp.float32)
    w1 = packed["w1"][:Cin, :P].astype(jnp.float32).reshape(1, 1, Cin, P)
    w2 = jnp.stack([
        jnp.stack([packed["w2"][kh, kw * Pp:kw * Pp + P, :P].astype(jnp.float32)
                   for kw in range(3)], axis=0)
        for kh in range(3)], axis=0)                       # (3, 3, P, P) HWIO
    w3 = packed["w3"][:P, :Cout].astype(jnp.float32).reshape(1, 1, P, Cout)
    b1 = packed["b1"][0, :P]
    b2 = packed["b2"][0, :P]
    b3 = packed["b3"][0, :Cout]
    dn = ("NHWC", "HWIO", "NHWC")
    hp = lax.Precision.HIGHEST

    y = jnp.maximum(lax.conv_general_dilated(x, w1, (1, 1), "SAME",
                                             dimension_numbers=dn, precision=hp) + b1, 0.0)
    y = jnp.maximum(lax.conv_general_dilated(y, w2, (1, 1), "SAME",
                                             dimension_numbers=dn, precision=hp) + b2, 0.0)
    y = lax.conv_general_dilated(y, w3, (1, 1), "SAME",
                                 dimension_numbers=dn, precision=hp) + b3
    y = jnp.maximum(y + x, 0.0)
    return jnp.transpose(y, (0, 3, 1, 2))


if __name__ == "__main__":
    key = jax.random.PRNGKey(0)
    kx, kp = jax.random.split(key)

    # downsample=None => identity residual => inplanes == planes * expansion
    N, planes, H, W = 2, 64, 16, 16
    inplanes = planes * 4  # 256
    x = jax.random.normal(kx, (N, inplanes, H, W), jnp.float32)

    packed = pack_params(init_params(kp, inplanes, planes))
    ref = np.asarray(bottleneck_reference(x, packed))

    # Most-optimized config first; fall back if an optional feature
    # (single-buffered weights / hardware roll) is unavailable on this stack.
    configs = [dict(single_buffer_weights=True, use_hw_roll=True),
               dict(single_buffer_weights=False, use_hw_roll=True),
               dict(single_buffer_weights=False, use_hw_roll=False)]

    for force_th in (None, H // 2):   # TH=H (no halo) and TH=H/2 (halo path)
        ok = False
        last_err = None
        for cfg in configs:
            try:
                fwd = jax.jit(
                    lambda xx, _c=dict(cfg), _t=force_th:
                    bottleneck_forward(xx, packed, force_th=_t, **_c))
                out = jax.block_until_ready(fwd(x))
                assert out.shape == (N, inplanes, H, W)
                np.testing.assert_allclose(
                    np.asarray(out.astype(jnp.float32)), ref,
                    rtol=3e-2, atol=3e-2)
                ok = True
                break
            except Exception as e:   # fall back to the next config
                last_err = e
        if not ok:
            raise last_err

    print("KERNEL_OK")
</pallas_src>

<mosaic_0001>
module attributes {stable_mosaic.version = 11 : i64} {
  func.func @kernel(%arg0: i32, %arg1: i32, %arg2: memref<1x16x16x256xbf16, #tpu.memory_space<vmem>>, %arg3: memref<256x128xbf16, #tpu.memory_space<vmem>>, %arg4: memref<1x128xf32, #tpu.memory_space<vmem>>, %arg5: memref<3x384x128xbf16, #tpu.memory_space<vmem>>, %arg6: memref<1x128xf32, #tpu.memory_space<vmem>>, %arg7: memref<128x256xbf16, #tpu.memory_space<vmem>>, %arg8: memref<1x256xf32, #tpu.memory_space<vmem>>, %arg9: memref<1x16x16x256xbf16, #tpu.memory_space<vmem>>, %arg10: memref<18x24x128xbf16, #tpu.memory_space<vmem>>, %arg11: memref<384x128xf32, #tpu.memory_space<vmem>>) attributes {dimension_semantics = [#tpu.dimension_semantics<parallel>, #tpu.dimension_semantics<parallel>], iteration_bounds = array<i64: 2, 1>, scalar_prefetch = 0 : i64, scratch_operands = 2 : i64, tpu.core_type = #tpu.core_type<tc>, window_params = [{transform_indices = @transform_0, window_bounds = array<i64: 1, 16, 16, 256>}, {pipeline_mode = #tpu.pipeline_mode<synchronous>, transform_indices = @transform_1, window_bounds = array<i64: 256, 128>}, {pipeline_mode = #tpu.pipeline_mode<synchronous>, transform_indices = @transform_2, window_bounds = array<i64: 1, 128>}, {pipeline_mode = #tpu.pipeline_mode<synchronous>, transform_indices = @transform_3, window_bounds = array<i64: 3, 384, 128>}, {pipeline_mode = #tpu.pipeline_mode<synchronous>, transform_indices = @transform_4, window_bounds = array<i64: 1, 128>}, {pipeline_mode = #tpu.pipeline_mode<synchronous>, transform_indices = @transform_5, window_bounds = array<i64: 128, 256>}, {pipeline_mode = #tpu.pipeline_mode<synchronous>, transform_indices = @transform_6, window_bounds = array<i64: 1, 256>}, {transform_indices = @transform_7, window_bounds = array<i64: 1, 16, 16, 256>}]} {
    %c0 = arith.constant 0 : index
    %c0_0 = arith.constant 0 : index
    %c0_1 = arith.constant 0 : index
    %c0_2 = arith.constant 0 : index
    %0 = vector.load %arg2[%c0, %c0_0, %c0_1, %c0_2] : memref<1x16x16x256xbf16, #tpu.memory_space<vmem>>, vector<1x16x16x256xbf16>
    %1 = vector.shape_cast %0 : vector<1x16x16x256xbf16> to vector<16x16x256xbf16>
    %2 = vector.shape_cast %1 : vector<16x16x256xbf16> to vector<256x256xbf16>
    %c0_3 = arith.constant 0 : index
    %c0_4 = arith.constant 0 : index
    %3 = vector.load %arg3[%c0_3, %c0_4] : memref<256x128xbf16, #tpu.memory_space<vmem>>, vector<256x128xbf16>
    %cst = arith.constant dense<0.000000e+00> : vector<256x128xf32>
    %4 = tpu.matmul %2, %3, %cst {dimension_numbers = #tpu.dot_dimension_numbers<[1], [0], [0], [1], [0, 0, 1, 1], [], []>} : vector<256x256xbf16>, vector<256x128xbf16>, vector<256x128xf32> -> vector<256x128xf32>
    %c0_5 = arith.constant 0 : index
    %c0_6 = arith.constant 0 : index
    %5 = vector.load %arg4[%c0_5, %c0_6] : memref<1x128xf32, #tpu.memory_space<vmem>>, vector<1x128xf32>
    %6 = vector.broadcast %5 : vector<1x128xf32> to vector<256x128xf32>
    %7 = arith.addf %4, %6 : vector<256x128xf32>
    %cst_7 = arith.constant 0.000000e+00 : f32
    %8 = vector.broadcast %cst_7 : f32 to vector<256x128xf32>
    %9 = arith.maximumf %7, %8 : vector<256x128xf32>
    %10 = vector.shape_cast %9 : vector<256x128xf32> to vector<16x16x128xf32>
    %11 = arith.truncf %10 : vector<16x16x128xf32> to vector<16x16x128xbf16>
    %c1 = arith.constant 1 : index
    %c0_8 = arith.constant 0 : index
    %c0_9 = arith.constant 0 : index
    %12 = vector.load %arg10[%c1, %c0_8, %c0_9] : memref<18x24x128xbf16, #tpu.memory_space<vmem>>, vector<16x16x128xbf16>
    tpu.vector_store %arg10[%c1, %c0_8, %c0_9], %11 {strides = array<i32>} : memref<18x24x128xbf16, #tpu.memory_space<vmem>>, vector<16x16x128xbf16>,
    %cst_10 = arith.constant 0.000000e+00 : bf16
    %13 = vector.broadcast %cst_10 : bf16 to vector<18x8x128xbf16>
    %c0_11 = arith.constant 0 : index
    %c16 = arith.constant 16 : index
    %c0_12 = arith.constant 0 : index
    %14 = vector.load %arg10[%c0_11, %c16, %c0_12] : memref<18x24x128xbf16, #tpu.memory_space<vmem>>, vector<18x8x128xbf16>
    tpu.vector_store %arg10[%c0_11, %c16, %c0_12], %13 {strides = array<i32>} : memref<18x24x128xbf16, #tpu.memory_space<vmem>>, vector<18x8x128xbf16>,
    %cst_13 = arith.constant 0.000000e+00 : bf16
    %15 = vector.broadcast %cst_13 : bf16 to vector<16x128xbf16>
    %c0_14 = arith.constant 0 : index
    %c0_15 = arith.constant 0 : index
    %c0_16 = arith.constant 0 : index
    %16 = vector.load %arg10[%c0_14, %c0_15, %c0_16] : memref<18x24x128xbf16, #tpu.memory_space<vmem>>, vector<1x16x128xbf16>
    %17 = vector.shape_cast %16 : vector<1x16x128xbf16> to vector<16x128xbf16>
    %18 = vector.shape_cast %15 : vector<16x128xbf16> to vector<1x16x128xbf16>
    tpu.vector_store %arg10[%c0_14, %c0_15, %c0_16], %18 {strides = array<i32>} : memref<18x24x128xbf16, #tpu.memory_space<vmem>>, vector<1x16x128xbf16>,
    %c17 = arith.constant 17 : index
    %c0_17 = arith.constant 0 : index
    %c0_18 = arith.constant 0 : index
    %19 = vector.load %arg10[%c17, %c0_17, %c0_18] : memref<18x24x128xbf16, #tpu.memory_space<vmem>>, vector<1x16x128xbf16>
    %20 = vector.shape_cast %19 : vector<1x16x128xbf16> to vector<16x128xbf16>
    %21 = vector.shape_cast %15 : vector<16x128xbf16> to vector<1x16x128xbf16>
    tpu.vector_store %arg10[%c17, %c0_17, %c0_18], %21 {strides = array<i32>} : memref<18x24x128xbf16, #tpu.memory_space<vmem>>, vector<1x16x128xbf16>,
    %c0_19 = arith.constant 0 : index
    %c0_20 = arith.constant 0 : index
    %c0_21 = arith.constant 0 : index
    %22 = vector.load %arg10[%c0_19, %c0_20, %c0_21] : memref<18x24x128xbf16, #tpu.memory_space<vmem>>, vector<16x24x128xbf16>
    %23 = vector.shape_cast %22 : vector<16x24x128xbf16> to vector<384x128xbf16>
    %c1_i32 = arith.constant 1 : i32
    %24 = tpu.dynamic_rotate %23 by %c1_i32 dim 0 : vector<384x128xbf16>, i32 -> vector<384x128xbf16>
    %c383_i32 = arith.constant 383 : i32
    %25 = tpu.dynamic_rotate %23 by %c383_i32 dim 0 : vector<384x128xbf16>, i32 -> vector<384x128xbf16>
    %26 = tpu.concatenate %24, %23, %25 in 1 : vector<384x128xbf16>, vector<384x128xbf16>, vector<384x128xbf16> -> vector<384x384xbf16>
    %c0_22 = arith.constant 0 : index
    %c0_23 = arith.constant 0 : index
    %c0_24 = arith.constant 0 : index
    %27 = vector.load %arg5[%c0_22, %c0_23, %c0_24] : memref<3x384x128xbf16, #tpu.memory_space<vmem>>, vector<1x384x128xbf16>
    %28 = vector.shape_cast %27 : vector<1x384x128xbf16> to vector<384x128xbf16>
    %cst_25 = arith.constant dense<0.000000e+00> : vector<384x128xf32>
    %29 = tpu.matmul %26, %28, %cst_25 {dimension_numbers = #tpu.dot_dimension_numbers<[1], [0], [0], [1], [0, 0, 1, 1], [], []>} : vector<384x384xbf16>, vector<384x128xbf16>, vector<384x128xf32> -> vector<384x128xf32>
    %c0_26 = arith.constant 0 : index
    %c0_27 = arith.constant 0 : index
    %30 = vector.load %arg11[%c0_26, %c0_27] : memref<384x128xf32, #tpu.memory_space<vmem>>, vector<384x128xf32>
    tpu.vector_store %arg11[%c0_26, %c0_27], %29 {strides = array<i32>} : memref<384x128xf32, #tpu.memory_space<vmem>>, vector<384x128xf32>,
    %c1_28 = arith.constant 1 : index
    %c0_29 = arith.constant 0 : index
    %c0_30 = arith.constant 0 : index
    %31 = vector.load %arg10[%c1_28, %c0_29, %c0_30] : memref<18x24x128xbf16, #tpu.memory_space<vmem>>, vector<16x24x128xbf16>
    %32 = vector.shape_cast %31 : vector<16x24x128xbf16> to vector<384x128xbf16>
    %c1_i32_31 = arith.constant 1 : i32
    %33 = tpu.dynamic_rotate %32 by %c1_i32_31 dim 0 : vector<384x128xbf16>, i32 -> vector<384x128xbf16>
    %c383_i32_32 = arith.constant 383 : i32
    %34 = tpu.dynamic_rotate %32 by %c383_i32_32 dim 0 : vector<384x128xbf16>, i32 -> vector<384x128xbf16>
    %35 = tpu.concatenate %33, %32, %34 in 1 : vector<384x128xbf16>, vector<384x128xbf16>, vector<384x128xbf16> -> vector<384x384xbf16>
    %c1_33 = arith.constant 1 : index
    %c0_34 = arith.constant 0 : index
    %c0_35 = arith.constant 0 : index
    %36 = vector.load %arg5[%c1_33, %c0_34, %c0_35] : memref<3x384x128xbf16, #tpu.memory_space<vmem>>, vector<1x384x128xbf16>
    %37 = vector.shape_cast %36 : vector<1x384x128xbf16> to vector<384x128xbf16>
    %cst_36 = arith.constant dense<0.000000e+00> : vector<384x128xf32>
    %38 = tpu.matmul %35, %37, %cst_36 {dimension_numbers = #tpu.dot_dimension_numbers<[1], [0], [0], [1], [0, 0, 1, 1], [], []>} : vector<384x384xbf16>, vector<384x128xbf16>, vector<384x128xf32> -> vector<384x128xf32>
    %c0_37 = arith.constant 0 : index
    %c0_38 = arith.constant 0 : index
    %39 = vector.load %arg11[%c0_37, %c0_38] : memref<384x128xf32, #tpu.memory_space<vmem>>, vector<384x128xf32>
    %40 = arith.addf %39, %38 : vector<384x128xf32>
    %c0_39 = arith.constant 0 : index
    %c0_40 = arith.constant 0 : index
    %41 = vector.load %arg11[%c0_39, %c0_40] : memref<384x128xf32, #tpu.memory_space<vmem>>, vector<384x128xf32>
    tpu.vector_store %arg11[%c0_39, %c0_40], %40 {strides = array<i32>} : memref<384x128xf32, #tpu.memory_space<vmem>>, vector<384x128xf32>,
    %c2 = arith.constant 2 : index
    %c0_41 = arith.constant 0 : index
    %c0_42 = arith.constant 0 : index
    %42 = vector.load %arg10[%c2, %c0_41, %c0_42] : memref<18x24x128xbf16, #tpu.memory_space<vmem>>, vector<16x24x128xbf16>
    %43 = vector.shape_cast %42 : vector<16x24x128xbf16> to vector<384x128xbf16>
    %c1_i32_43 = arith.constant 1 : i32
    %44 = tpu.dynamic_rotate %43 by %c1_i32_43 dim 0 : vector<384x128xbf16>, i32 -> vector<384x128xbf16>
    %c383_i32_44 = arith.constant 383 : i32
    %45 = tpu.dynamic_rotate %43 by %c383_i32_44 dim 0 : vector<384x128xbf16>, i32 -> vector<384x128xbf16>
    %46 = tpu.concatenate %44, %43, %45 in 1 : vector<384x128xbf16>, vector<384x128xbf16>, vector<384x128xbf16> -> vector<384x384xbf16>
    %c2_45 = arith.constant 2 : index
    %c0_46 = arith.constant 0 : index
    %c0_47 = arith.constant 0 : index
    %47 = vector.load %arg5[%c2_45, %c0_46, %c0_47] : memref<3x384x128xbf16, #tpu.memory_space<vmem>>, vector<1x384x128xbf16>
    %48 = vector.shape_cast %47 : vector<1x384x128xbf16> to vector<384x128xbf16>
    %cst_48 = arith.constant dense<0.000000e+00> : vector<384x128xf32>
    %49 = tpu.matmul %46, %48, %cst_48 {dimension_numbers = #tpu.dot_dimension_numbers<[1], [0], [0], [1], [0, 0, 1, 1], [], []>} : vector<384x384xbf16>, vector<384x128xbf16>, vector<384x128xf32> -> vector<384x128xf32>
    %c0_49 = arith.constant 0 : index
    %c0_50 = arith.constant 0 : index
    %50 = vector.load %arg11[%c0_49, %c0_50] : memref<384x128xf32, #tpu.memory_space<vmem>>, vector<384x128xf32>
    %51 = arith.addf %50, %49 : vector<384x128xf32>
    %c0_51 = arith.constant 0 : index
    %c0_52 = arith.constant 0 : index
    %52 = vector.load %arg11[%c0_51, %c0_52] : memref<384x128xf32, #tpu.memory_space<vmem>>, vector<384x128xf32>
    tpu.vector_store %arg11[%c0_51, %c0_52], %51 {strides = array<i32>} : memref<384x128xf32, #tpu.memory_space<vmem>>, vector<384x128xf32>,
    %c0_53 = arith.constant 0 : index
    %c0_54 = arith.constant 0 : index
    %53 = vector.load %arg11[%c0_53, %c0_54] : memref<384x128xf32, #tpu.memory_space<vmem>>, vector<384x128xf32>
    %c0_55 = arith.constant 0 : index
    %c0_56 = arith.constant 0 : index
    %54 = vector.load %arg6[%c0_55, %c0_56] : memref<1x128xf32, #tpu.memory_space<vmem>>, vector<1x128xf32>
    %55 = vector.broadcast %54 : vector<1x128xf32> to vector<384x128xf32>
    %56 = arith.addf %53, %55 : vector<384x128xf32>
    %cst_57 = arith.constant 0.000000e+00 : f32
    %57 = vector.broadcast %cst_57 : f32 to vector<384x128xf32>
    %58 = arith.maximumf %56, %57 : vector<384x128xf32>
    %59 = vector.shape_cast %58 : vector<384x128xf32> to vector<16x24x128xf32>
    %60 = vector.extract_strided_slice %59 {offsets = [0, 0, 0], sizes = [16, 16, 128], strides = [1, 1, 1]} : vector<16x24x128xf32> to vector<16x16x128xf32>
    %61 = vector.shape_cast %60 : vector<16x16x128xf32> to vector<256x128xf32>
    %62 = arith.truncf %61 : vector<256x128xf32> to vector<256x128xbf16>
    %c0_58 = arith.constant 0 : index
    %c0_59 = arith.constant 0 : index
    %63 = vector.load %arg7[%c0_58, %c0_59] : memref<128x256xbf16, #tpu.memory_space<vmem>>, vector<128x256xbf16>
    %cst_60 = arith.constant dense<0.000000e+00> : vector<256x256xf32>
    %64 = tpu.matmul %62, %63, %cst_60 {dimension_numbers = #tpu.dot_dimension_numbers<[1], [0], [0], [1], [0, 0, 1, 1], [], []>} : vector<256x128xbf16>, vector<128x256xbf16>, vector<256x256xf32> -> vector<256x256xf32>
    %65 = vector.shape_cast %1 : vector<16x16x256xbf16> to vector<256x256xbf16>
    %66 = arith.extf %65 : vector<256x256xbf16> to vector<256x256xf32>
    %c0_61 = arith.constant 0 : index
    %c0_62 = arith.constant 0 : index
    %67 = vector.load %arg8[%c0_61, %c0_62] : memref<1x256xf32, #tpu.memory_space<vmem>>, vector<1x256xf32>
    %68 = vector.broadcast %67 : vector<1x256xf32> to vector<256x256xf32>
    %69 = arith.addf %64, %68 : vector<256x256xf32>
    %70 = arith.addf %69, %66 : vector<256x256xf32>
    %cst_63 = arith.constant 0.000000e+00 : f32
    %71 = vector.broadcast %cst_63 : f32 to vector<256x256xf32>
    %72 = arith.maximumf %70, %71 : vector<256x256xf32>
    %73 = arith.truncf %72 : vector<256x256xf32> to vector<256x256xbf16>
    %74 = vector.shape_cast %73 : vector<256x256xbf16> to vector<16x16x256xbf16>
    %c0_64 = arith.constant 0 : index
    %c0_65 = arith.constant 0 : index
    %c0_66 = arith.constant 0 : index
    %c0_67 = arith.constant 0 : index
    %75 = vector.load %arg9[%c0_64, %c0_65, %c0_66, %c0_67] : memref<1x16x16x256xbf16, #tpu.memory_space<vmem>>, vector<1x16x16x256xbf16>
    %76 = vector.shape_cast %75 : vector<1x16x16x256xbf16> to vector<16x16x256xbf16>
    %77 = vector.shape_cast %74 : vector<16x16x256xbf16> to vector<1x16x16x256xbf16>
    tpu.vector_store %arg9[%c0_64, %c0_65, %c0_66, %c0_67], %77 {strides = array<i32>} : memref<1x16x16x256xbf16, #tpu.memory_space<vmem>>, vector<1x16x16x256xbf16>,
    return
  }
  func.func @transform_0(%arg0: i32, %arg1: i32) -> (i32, i32, i32, i32) {
    %c0_i32 = arith.constant 0 : i32
    %c0_i32_0 = arith.constant 0 : i32
    %c0_i32_1 = arith.constant 0 : i32
    return %arg0, %arg1, %c0_i32, %c0_i32_0 : i32, i32, i32, i32
  }
  func.func @transform_1(%arg0: i32, %arg1: i32) -> (i32, i32) {
    %c0_i32 = arith.constant 0 : i32
    %c0_i32_0 = arith.constant 0 : i32
    %c0_i32_1 = arith.constant 0 : i32
    return %c0_i32, %c0_i32_0 : i32, i32
  }
  func.func @transform_2(%arg0: i32, %arg1: i32) -> (i32, i32) {
    %c0_i32 = arith.constant 0 : i32
    %c0_i32_0 = arith.constant 0 : i32
    %c0_i32_1 = arith.constant 0 : i32
    return %c0_i32, %c0_i32_0 : i32, i32
  }
  func.func @transform_3(%arg0: i32, %arg1: i32) -> (i32, i32, i32) {
    %c0_i32 = arith.constant 0 : i32
    %c0_i32_0 = arith.constant 0 : i32
    %c0_i32_1 = arith.constant 0 : i32
    %c0_i32_2 = arith.constant 0 : i32
    return %c0_i32, %c0_i32_0, %c0_i32_1 : i32, i32, i32
  }
  func.func @transform_4(%arg0: i32, %arg1: i32) -> (i32, i32) {
    %c0_i32 = arith.constant 0 : i32
    %c0_i32_0 = arith.constant 0 : i32
    %c0_i32_1 = arith.constant 0 : i32
    return %c0_i32, %c0_i32_0 : i32, i32
  }
  func.func @transform_5(%arg0: i32, %arg1: i32) -> (i32, i32) {
    %c0_i32 = arith.constant 0 : i32
    %c0_i32_0 = arith.constant 0 : i32
    %c0_i32_1 = arith.constant 0 : i32
    return %c0_i32, %c0_i32_0 : i32, i32
  }
  func.func @transform_6(%arg0: i32, %arg1: i32) -> (i32, i32) {
    %c0_i32 = arith.constant 0 : i32
    %c0_i32_0 = arith.constant 0 : i32
    %c0_i32_1 = arith.constant 0 : i32
    return %c0_i32, %c0_i32_0 : i32, i32
  }
  func.func @transform_7(%arg0: i32, %arg1: i32) -> (i32, i32, i32, i32) {
    %c0_i32 = arith.constant 0 : i32
    %c0_i32_0 = arith.constant 0 : i32
    %c0_i32_1 = arith.constant 0 : i32
    return %arg0, %arg1, %c0_i32, %c0_i32_0 : i32, i32, i32, i32
  }
}

module attributes {stable_mosaic.version = 11 : i64} {
  func.func @kernel(%arg0: i32, %arg1: i32, %arg2: memref<1x16x16x256xbf16, #tpu.memory_space<vmem>>, %arg3: memref<256x128xbf16, #tpu.memory_space<vmem>>, %arg4: memref<1x128xf32, #tpu.memory_space<vmem>>, %arg5: memref<3x384x128xbf16, #tpu.memory_space<vmem>>, %arg6: memref<1x128xf32, #tpu.memory_space<vmem>>, %arg7: memref<128x256xbf16, #tpu.memory_space<vmem>>, %arg8: memref<1x256xf32, #tpu.memory_space<vmem>>, %arg9: memref<1x16x16x256xbf16, #tpu.memory_space<vmem>>, %arg10: memref<18x24x128xbf16, #tpu.memory_space<vmem>>, %arg11: memref<384x128xf32, #tpu.memory_space<vmem>>) attributes {dimension_semantics = [#tpu.dimension_semantics<parallel>, #tpu.dimension_semantics<parallel>], iteration_bounds = array<i64: 2, 1>, scalar_prefetch = 0 : i64, scratch_operands = 2 : i64, tpu.core_type = #tpu.core_type<tc>, window_params = [{transform_indices = @transform_0, window_bounds = array<i64: 1, 16, 16, 256>}, {pipeline_mode = #tpu.pipeline_mode<synchronous>, transform_indices = @transform_1, window_bounds = array<i64: 256, 128>}, {pipeline_mode = #tpu.pipeline_mode<synchronous>, transform_indices = @transform_2, window_bounds = array<i64: 1, 128>}, {pipeline_mode = #tpu.pipeline_mode<synchronous>, transform_indices = @transform_3, window_bounds = array<i64: 3, 384, 128>}, {pipeline_mode = #tpu.pipeline_mode<synchronous>, transform_indices = @transform_4, window_bounds = array<i64: 1, 128>}, {pipeline_mode = #tpu.pipeline_mode<synchronous>, transform_indices = @transform_5, window_bounds = array<i64: 128, 256>}, {pipeline_mode = #tpu.pipeline_mode<synchronous>, transform_indices = @transform_6, window_bounds = array<i64: 1, 256>}, {transform_indices = @transform_7, window_bounds = array<i64: 1, 16, 16, 256>}]} {
    %c0 = arith.constant 0 : index
    %c0_0 = arith.constant 0 : index
    %c0_1 = arith.constant 0 : index
    %c0_2 = arith.constant 0 : index
    %0 = vector.load %arg2[%c0, %c0_0, %c0_1, %c0_2] : memref<1x16x16x256xbf16, #tpu.memory_space<vmem>>, vector<1x16x16x256xbf16>
    %1 = vector.shape_cast %0 : vector<1x16x16x256xbf16> to vector<16x16x256xbf16>
    %2 = vector.shape_cast %1 : vector<16x16x256xbf16> to vector<256x256xbf16>
    %c0_3 = arith.constant 0 : index
    %c0_4 = arith.constant 0 : index
    %3 = vector.load %arg3[%c0_3, %c0_4] : memref<256x128xbf16, #tpu.memory_space<vmem>>, vector<256x128xbf16>
    %cst = arith.constant dense<0.000000e+00> : vector<256x128xf32>
    %4 = tpu.matmul %2, %3, %cst {dimension_numbers = #tpu.dot_dimension_numbers<[1], [0], [0], [1], [0, 0, 1, 1], [], []>} : vector<256x256xbf16>, vector<256x128xbf16>, vector<256x128xf32> -> vector<256x128xf32>
    %c0_5 = arith.constant 0 : index
    %c0_6 = arith.constant 0 : index
    %5 = vector.load %arg4[%c0_5, %c0_6] : memref<1x128xf32, #tpu.memory_space<vmem>>, vector<1x128xf32>
    %6 = vector.broadcast %5 : vector<1x128xf32> to vector<256x128xf32>
    %7 = arith.addf %4, %6 : vector<256x128xf32>
    %cst_7 = arith.constant 0.000000e+00 : f32
    %8 = vector.broadcast %cst_7 : f32 to vector<256x128xf32>
    %9 = arith.maximumf %7, %8 : vector<256x128xf32>
    %10 = vector.shape_cast %9 : vector<256x128xf32> to vector<16x16x128xf32>
    %11 = arith.truncf %10 : vector<16x16x128xf32> to vector<16x16x128xbf16>
    %c1 = arith.constant 1 : index
    %c0_8 = arith.constant 0 : index
    %c0_9 = arith.constant 0 : index
    %12 = vector.load %arg10[%c1, %c0_8, %c0_9] : memref<18x24x128xbf16, #tpu.memory_space<vmem>>, vector<16x16x128xbf16>
    tpu.vector_store %arg10[%c1, %c0_8, %c0_9], %11 {strides = array<i32>} : memref<18x24x128xbf16, #tpu.memory_space<vmem>>, vector<16x16x128xbf16>,
    %cst_10 = arith.constant 0.000000e+00 : bf16
    %13 = vector.broadcast %cst_10 : bf16 to vector<18x8x128xbf16>
    %c0_11 = arith.constant 0 : index
    %c16 = arith.constant 16 : index
    %c0_12 = arith.constant 0 : index
    %14 = vector.load %arg10[%c0_11, %c16, %c0_12] : memref<18x24x128xbf16, #tpu.memory_space<vmem>>, vector<18x8x128xbf16>
    tpu.vector_store %arg10[%c0_11, %c16, %c0_12], %13 {strides = array<i32>} : memref<18x24x128xbf16, #tpu.memory_space<vmem>>, vector<18x8x128xbf16>,
    %cst_13 = arith.constant 0.000000e+00 : bf16
    %15 = vector.broadcast %cst_13 : bf16 to vector<16x128xbf16>
    %c0_14 = arith.constant 0 : index
    %c0_15 = arith.constant 0 : index
    %c0_16 = arith.constant 0 : index
    %16 = vector.load %arg10[%c0_14, %c0_15, %c0_16] : memref<18x24x128xbf16, #tpu.memory_space<vmem>>, vector<1x16x128xbf16>
    %17 = vector.shape_cast %16 : vector<1x16x128xbf16> to vector<16x128xbf16>
    %18 = vector.shape_cast %15 : vector<16x128xbf16> to vector<1x16x128xbf16>
    tpu.vector_store %arg10[%c0_14, %c0_15, %c0_16], %18 {strides = array<i32>} : memref<18x24x128xbf16, #tpu.memory_space<vmem>>, vector<1x16x128xbf16>,
    %c17 = arith.constant 17 : index
    %c0_17 = arith.constant 0 : index
    %c0_18 = arith.constant 0 : index
    %19 = vector.load %arg10[%c17, %c0_17, %c0_18] : memref<18x24x128xbf16, #tpu.memory_space<vmem>>, vector<1x16x128xbf16>
    %20 = vector.shape_cast %19 : vector<1x16x128xbf16> to vector<16x128xbf16>
    %21 = vector.shape_cast %15 : vector<16x128xbf16> to vector<1x16x128xbf16>
    tpu.vector_store %arg10[%c17, %c0_17, %c0_18], %21 {strides = array<i32>} : memref<18x24x128xbf16, #tpu.memory_space<vmem>>, vector<1x16x128xbf16>,
    %c0_19 = arith.constant 0 : index
    %c0_20 = arith.constant 0 : index
    %c0_21 = arith.constant 0 : index
    %22 = vector.load %arg10[%c0_19, %c0_20, %c0_21] : memref<18x24x128xbf16, #tpu.memory_space<vmem>>, vector<16x24x128xbf16>
    %23 = vector.shape_cast %22 : vector<16x24x128xbf16> to vector<384x128xbf16>
    %c1_i32 = arith.constant 1 : i32
    %24 = tpu.dynamic_rotate %23 by %c1_i32 dim 0 : vector<384x128xbf16>, i32 -> vector<384x128xbf16>
    %c383_i32 = arith.constant 383 : i32
    %25 = tpu.dynamic_rotate %23 by %c383_i32 dim 0 : vector<384x128xbf16>, i32 -> vector<384x128xbf16>
    %26 = tpu.concatenate %24, %23, %25 in 1 : vector<384x128xbf16>, vector<384x128xbf16>, vector<384x128xbf16> -> vector<384x384xbf16>
    %c0_22 = arith.constant 0 : index
    %c0_23 = arith.constant 0 : index
    %c0_24 = arith.constant 0 : index
    %27 = vector.load %arg5[%c0_22, %c0_23, %c0_24] : memref<3x384x128xbf16, #tpu.memory_space<vmem>>, vector<1x384x128xbf16>
    %28 = vector.shape_cast %27 : vector<1x384x128xbf16> to vector<384x128xbf16>
    %cst_25 = arith.constant dense<0.000000e+00> : vector<384x128xf32>
    %29 = tpu.matmul %26, %28, %cst_25 {dimension_numbers = #tpu.dot_dimension_numbers<[1], [0], [0], [1], [0, 0, 1, 1], [], []>} : vector<384x384xbf16>, vector<384x128xbf16>, vector<384x128xf32> -> vector<384x128xf32>
    %c0_26 = arith.constant 0 : index
    %c0_27 = arith.constant 0 : index
    %30 = vector.load %arg11[%c0_26, %c0_27] : memref<384x128xf32, #tpu.memory_space<vmem>>, vector<384x128xf32>
    tpu.vector_store %arg11[%c0_26, %c0_27], %29 {strides = array<i32>} : memref<384x128xf32, #tpu.memory_space<vmem>>, vector<384x128xf32>,
    %c1_28 = arith.constant 1 : index
    %c0_29 = arith.constant 0 : index
    %c0_30 = arith.constant 0 : index
    %31 = vector.load %arg10[%c1_28, %c0_29, %c0_30] : memref<18x24x128xbf16, #tpu.memory_space<vmem>>, vector<16x24x128xbf16>
    %32 = vector.shape_cast %31 : vector<16x24x128xbf16> to vector<384x128xbf16>
    %c1_i32_31 = arith.constant 1 : i32
    %33 = tpu.dynamic_rotate %32 by %c1_i32_31 dim 0 : vector<384x128xbf16>, i32 -> vector<384x128xbf16>
    %c383_i32_32 = arith.constant 383 : i32
    %34 = tpu.dynamic_rotate %32 by %c383_i32_32 dim 0 : vector<384x128xbf16>, i32 -> vector<384x128xbf16>
    %35 = tpu.concatenate %33, %32, %34 in 1 : vector<384x128xbf16>, vector<384x128xbf16>, vector<384x128xbf16> -> vector<384x384xbf16>
    %c1_33 = arith.constant 1 : index
    %c0_34 = arith.constant 0 : index
    %c0_35 = arith.constant 0 : index
    %36 = vector.load %arg5[%c1_33, %c0_34, %c0_35] : memref<3x384x128xbf16, #tpu.memory_space<vmem>>, vector<1x384x128xbf16>
    %37 = vector.shape_cast %36 : vector<1x384x128xbf16> to vector<384x128xbf16>
    %cst_36 = arith.constant dense<0.000000e+00> : vector<384x128xf32>
    %38 = tpu.matmul %35, %37, %cst_36 {dimension_numbers = #tpu.dot_dimension_numbers<[1], [0], [0], [1], [0, 0, 1, 1], [], []>} : vector<384x384xbf16>, vector<384x128xbf16>, vector<384x128xf32> -> vector<384x128xf32>
    %c0_37 = arith.constant 0 : index
    %c0_38 = arith.constant 0 : index
    %39 = vector.load %arg11[%c0_37, %c0_38] : memref<384x128xf32, #tpu.memory_space<vmem>>, vector<384x128xf32>
    %40 = arith.addf %39, %38 : vector<384x128xf32>
    %c0_39 = arith.constant 0 : index
    %c0_40 = arith.constant 0 : index
    %41 = vector.load %arg11[%c0_39, %c0_40] : memref<384x128xf32, #tpu.memory_space<vmem>>, vector<384x128xf32>
    tpu.vector_store %arg11[%c0_39, %c0_40], %40 {strides = array<i32>} : memref<384x128xf32, #tpu.memory_space<vmem>>, vector<384x128xf32>,
    %c2 = arith.constant 2 : index
    %c0_41 = arith.constant 0 : index
    %c0_42 = arith.constant 0 : index
    %42 = vector.load %arg10[%c2, %c0_41, %c0_42] : memref<18x24x128xbf16, #tpu.memory_space<vmem>>, vector<16x24x128xbf16>
    %43 = vector.shape_cast %42 : vector<16x24x128xbf16> to vector<384x128xbf16>
    %c1_i32_43 = arith.constant 1 : i32
    %44 = tpu.dynamic_rotate %43 by %c1_i32_43 dim 0 : vector<384x128xbf16>, i32 -> vector<384x128xbf16>
    %c383_i32_44 = arith.constant 383 : i32
    %45 = tpu.dynamic_rotate %43 by %c383_i32_44 dim 0 : vector<384x128xbf16>, i32 -> vector<384x128xbf16>
    %46 = tpu.concatenate %44, %43, %45 in 1 : vector<384x128xbf16>, vector<384x128xbf16>, vector<384x128xbf16> -> vector<384x384xbf16>
    %c2_45 = arith.constant 2 : index
    %c0_46 = arith.constant 0 : index
    %c0_47 = arith.constant 0 : index
    %47 = vector.load %arg5[%c2_45, %c0_46, %c0_47] : memref<3x384x128xbf16, #tpu.memory_space<vmem>>, vector<1x384x128xbf16>
    %48 = vector.shape_cast %47 : vector<1x384x128xbf16> to vector<384x128xbf16>
    %cst_48 = arith.constant dense<0.000000e+00> : vector<384x128xf32>
    %49 = tpu.matmul %46, %48, %cst_48 {dimension_numbers = #tpu.dot_dimension_numbers<[1], [0], [0], [1], [0, 0, 1, 1], [], []>} : vector<384x384xbf16>, vector<384x128xbf16>, vector<384x128xf32> -> vector<384x128xf32>
    %c0_49 = arith.constant 0 : index
    %c0_50 = arith.constant 0 : index
    %50 = vector.load %arg11[%c0_49, %c0_50] : memref<384x128xf32, #tpu.memory_space<vmem>>, vector<384x128xf32>
    %51 = arith.addf %50, %49 : vector<384x128xf32>
    %c0_51 = arith.constant 0 : index
    %c0_52 = arith.constant 0 : index
    %52 = vector.load %arg11[%c0_51, %c0_52] : memref<384x128xf32, #tpu.memory_space<vmem>>, vector<384x128xf32>
    tpu.vector_store %arg11[%c0_51, %c0_52], %51 {strides = array<i32>} : memref<384x128xf32, #tpu.memory_space<vmem>>, vector<384x128xf32>,
    %c0_53 = arith.constant 0 : index
    %c0_54 = arith.constant 0 : index
    %53 = vector.load %arg11[%c0_53, %c0_54] : memref<384x128xf32, #tpu.memory_space<vmem>>, vector<384x128xf32>
    %c0_55 = arith.constant 0 : index
    %c0_56 = arith.constant 0 : index
    %54 = vector.load %arg6[%c0_55, %c0_56] : memref<1x128xf32, #tpu.memory_space<vmem>>, vector<1x128xf32>
    %55 = vector.broadcast %54 : vector<1x128xf32> to vector<384x128xf32>
    %56 = arith.addf %53, %55 : vector<384x128xf32>
    %cst_57 = arith.constant 0.000000e+00 : f32
    %57 = vector.broadcast %cst_57 : f32 to vector<384x128xf32>
    %58 = arith.maximumf %56, %57 : vector<384x128xf32>
    %59 = vector.shape_cast %58 : vector<384x128xf32> to vector<16x24x128xf32>
    %60 = vector.extract_strided_slice %59 {offsets = [0, 0, 0], sizes = [16, 16, 128], strides = [1, 1, 1]} : vector<16x24x128xf32> to vector<16x16x128xf32>
    %61 = vector.shape_cast %60 : vector<16x16x128xf32> to vector<256x128xf32>
    %62 = arith.truncf %61 : vector<256x128xf32> to vector<256x128xbf16>
    %c0_58 = arith.constant 0 : index
    %c0_59 = arith.constant 0 : index
    %63 = vector.load %arg7[%c0_58, %c0_59] : memref<128x256xbf16, #tpu.memory_space<vmem>>, vector<128x256xbf16>
    %cst_60 = arith.constant dense<0.000000e+00> : vector<256x256xf32>
    %64 = tpu.matmul %62, %63, %cst_60 {dimension_numbers = #tpu.dot_dimension_numbers<[1], [0], [0], [1], [0, 0, 1, 1], [], []>} : vector<256x128xbf16>, vector<128x256xbf16>, vector<256x256xf32> -> vector<256x256xf32>
    %65 = vector.shape_cast %1 : vector<16x16x256xbf16> to vector<256x256xbf16>
    %66 = arith.extf %65 : vector<256x256xbf16> to vector<256x256xf32>
    %c0_61 = arith.constant 0 : index
    %c0_62 = arith.constant 0 : index
    %67 = vector.load %arg8[%c0_61, %c0_62] : memref<1x256xf32, #tpu.memory_space<vmem>>, vector<1x256xf32>
    %68 = vector.broadcast %67 : vector<1x256xf32> to vector<256x256xf32>
    %69 = arith.addf %64, %68 : vector<256x256xf32>
    %70 = arith.addf %69, %66 : vector<256x256xf32>
    %cst_63 = arith.constant 0.000000e+00 : f32
    %71 = vector.broadcast %cst_63 : f32 to vector<256x256xf32>
    %72 = arith.maximumf %70, %71 : vector<256x256xf32>
    %73 = arith.truncf %72 : vector<256x256xf32> to vector<256x256xbf16>
    %74 = vector.shape_cast %73 : vector<256x256xbf16> to vector<16x16x256xbf16>
    %c0_64 = arith.constant 0 : index
    %c0_65 = arith.constant 0 : index
    %c0_66 = arith.constant 0 : index
    %c0_67 = arith.constant 0 : index
    %75 = vector.load %arg9[%c0_64, %c0_65, %c0_66, %c0_67] : memref<1x16x16x256xbf16, #tpu.memory_space<vmem>>, vector<1x16x16x256xbf16>
    %76 = vector.shape_cast %75 : vector<1x16x16x256xbf16> to vector<16x16x256xbf16>
    %77 = vector.shape_cast %74 : vector<16x16x256xbf16> to vector<1x16x16x256xbf16>
    tpu.vector_store %arg9[%c0_64, %c0_65, %c0_66, %c0_67], %77 {strides = array<i32>} : memref<1x16x16x256xbf16, #tpu.memory_space<vmem>>, vector<1x16x16x256xbf16>,
    return
  }
  func.func @transform_0(%arg0: i32, %arg1: i32) -> (i32, i32, i32, i32) {
    %c0_i32 = arith.constant 0 : i32
    %c0_i32_0 = arith.constant 0 : i32
    %c0_i32_1 = arith.constant 0 : i32
    return %arg0, %arg1, %c0_i32, %c0_i32_0 : i32, i32, i32, i32
  }
  func.func @transform_1(%arg0: i32, %arg1: i32) -> (i32, i32) {
    %c0_i32 = arith.constant 0 : i32
    %c0_i32_0 = arith.constant 0 : i32
    %c0_i32_1 = arith.constant 0 : i32
    return %c0_i32, %c0_i32_0 : i32, i32
  }
  func.func @transform_2(%arg0: i32, %arg1: i32) -> (i32, i32) {
    %c0_i32 = arith.constant 0 : i32
    %c0_i32_0 = arith.constant 0 : i32
    %c0_i32_1 = arith.constant 0 : i32
    return %c0_i32, %c0_i32_0 : i32, i32
  }
  func.func @transform_3(%arg0: i32, %arg1: i32) -> (i32, i32, i32) {
    %c0_i32 = arith.constant 0 : i32
    %c0_i32_0 = arith.constant 0 : i32
    %c0_i32_1 = arith.constant 0 : i32
    %c0_i32_2 = arith.constant 0 : i32
    return %c0_i32, %c0_i32_0, %c0_i32_1 : i32, i32, i32
  }
  func.func @transform_4(%arg0: i32, %arg1: i32) -> (i32, i32) {
    %c0_i32 = arith.constant 0 : i32
    %c0_i32_0 = arith.constant 0 : i32
    %c0_i32_1 = arith.constant 0 : i32
    return %c0_i32, %c0_i32_0 : i32, i32
  }
  func.func @transform_5(%arg0: i32, %arg1: i32) -> (i32, i32) {
    %c0_i32 = arith.constant 0 : i32
    %c0_i32_0 = arith.constant 0 : i32
    %c0_i32_1 = arith.constant 0 : i32
    return %c0_i32, %c0_i32_0 : i32, i32
  }
  func.func @transform_6(%arg0: i32, %arg1: i32) -> (i32, i32) {
    %c0_i32 = arith.constant 0 : i32
    %c0_i32_0 = arith.constant 0 : i32
    %c0_i32_1 = arith.constant 0 : i32
    return %c0_i32, %c0_i32_0 : i32, i32
  }
  func.func @transform_7(%arg0: i32, %arg1: i32) -> (i32, i32, i32, i32) {
    %c0_i32 = arith.constant 0 : i32
    %c0_i32_0 = arith.constant 0 : i32
    %c0_i32_1 = arith.constant 0 : i32
    return %arg0, %arg1, %c0_i32, %c0_i32_0 : i32, i32, i32, i32
  }
}

module attributes {stable_mosaic.version = 11 : i64} {
  func.func @kernel(%arg0: i32, %arg1: i32, %arg2: memref<1x16x16x256xbf16, #tpu.memory_space<vmem>>, %arg3: memref<256x128xbf16, #tpu.memory_space<vmem>>, %arg4: memref<1x128xf32, #tpu.memory_space<vmem>>, %arg5: memref<3x384x128xbf16, #tpu.memory_space<vmem>>, %arg6: memref<1x128xf32, #tpu.memory_space<vmem>>, %arg7: memref<128x256xbf16, #tpu.memory_space<vmem>>, %arg8: memref<1x256xf32, #tpu.memory_space<vmem>>, %arg9: memref<1x16x16x256xbf16, #tpu.memory_space<vmem>>, %arg10: memref<18x24x128xbf16, #tpu.memory_space<vmem>>, %arg11: memref<384x128xf32, #tpu.memory_space<vmem>>) attributes {dimension_semantics = [#tpu.dimension_semantics<parallel>, #tpu.dimension_semantics<parallel>], iteration_bounds = array<i64: 2, 1>, scalar_prefetch = 0 : i64, scratch_operands = 2 : i64, tpu.core_type = #tpu.core_type<tc>, window_params = [{transform_indices = @transform_0, window_bounds = array<i64: 1, 16, 16, 256>}, {pipeline_mode = #tpu.pipeline_mode<synchronous>, transform_indices = @transform_1, window_bounds = array<i64: 256, 128>}, {pipeline_mode = #tpu.pipeline_mode<synchronous>, transform_indices = @transform_2, window_bounds = array<i64: 1, 128>}, {pipeline_mode = #tpu.pipeline_mode<synchronous>, transform_indices = @transform_3, window_bounds = array<i64: 3, 384, 128>}, {pipeline_mode = #tpu.pipeline_mode<synchronous>, transform_indices = @transform_4, window_bounds = array<i64: 1, 128>}, {pipeline_mode = #tpu.pipeline_mode<synchronous>, transform_indices = @transform_5, window_bounds = array<i64: 128, 256>}, {pipeline_mode = #tpu.pipeline_mode<synchronous>, transform_indices = @transform_6, window_bounds = array<i64: 1, 256>}, {transform_indices = @transform_7, window_bounds = array<i64: 1, 16, 16, 256>}]} {
    %c0 = arith.constant 0 : index
    %c0_0 = arith.constant 0 : index
    %c0_1 = arith.constant 0 : index
    %c0_2 = arith.constant 0 : index
    %0 = vector.load %arg2[%c0, %c0_0, %c0_1, %c0_2] : memref<1x16x16x256xbf16, #tpu.memory_space<vmem>>, vector<1x16x16x256xbf16>
    %1 = vector.shape_cast %0 : vector<1x16x16x256xbf16> to vector<16x16x256xbf16>
    %2 = vector.shape_cast %1 : vector<16x16x256xbf16> to vector<256x256xbf16>
    %c0_3 = arith.constant 0 : index
    %c0_4 = arith.constant 0 : index
    %3 = vector.load %arg3[%c0_3, %c0_4] : memref<256x128xbf16, #tpu.memory_space<vmem>>, vector<256x128xbf16>
    %cst = arith.constant dense<0.000000e+00> : vector<256x128xf32>
    %4 = tpu.matmul %2, %3, %cst {dimension_numbers = #tpu.dot_dimension_numbers<[1], [0], [0], [1], [0, 0, 1, 1], [], []>} : vector<256x256xbf16>, vector<256x128xbf16>, vector<256x128xf32> -> vector<256x128xf32>
    %c0_5 = arith.constant 0 : index
    %c0_6 = arith.constant 0 : index
    %5 = vector.load %arg4[%c0_5, %c0_6] : memref<1x128xf32, #tpu.memory_space<vmem>>, vector<1x128xf32>
    %6 = vector.broadcast %5 : vector<1x128xf32> to vector<256x128xf32>
    %7 = arith.addf %4, %6 : vector<256x128xf32>
    %cst_7 = arith.constant 0.000000e+00 : f32
    %8 = vector.broadcast %cst_7 : f32 to vector<256x128xf32>
    %9 = arith.maximumf %7, %8 : vector<256x128xf32>
    %10 = vector.shape_cast %9 : vector<256x128xf32> to vector<16x16x128xf32>
    %11 = arith.truncf %10 : vector<16x16x128xf32> to vector<16x16x128xbf16>
    %c1 = arith.constant 1 : index
    %c0_8 = arith.constant 0 : index
    %c0_9 = arith.constant 0 : index
    %12 = vector.load %arg10[%c1, %c0_8, %c0_9] : memref<18x24x128xbf16, #tpu.memory_space<vmem>>, vector<16x16x128xbf16>
    tpu.vector_store %arg10[%c1, %c0_8, %c0_9], %11 {strides = array<i32>} : memref<18x24x128xbf16, #tpu.memory_space<vmem>>, vector<16x16x128xbf16>,
    %cst_10 = arith.constant 0.000000e+00 : bf16
    %13 = vector.broadcast %cst_10 : bf16 to vector<18x8x128xbf16>
    %c0_11 = arith.constant 0 : index
    %c16 = arith.constant 16 : index
    %c0_12 = arith.constant 0 : index
    %14 = vector.load %arg10[%c0_11, %c16, %c0_12] : memref<18x24x128xbf16, #tpu.memory_space<vmem>>, vector<18x8x128xbf16>
    tpu.vector_store %arg10[%c0_11, %c16, %c0_12], %13 {strides = array<i32>} : memref<18x24x128xbf16, #tpu.memory_space<vmem>>, vector<18x8x128xbf16>,
    %cst_13 = arith.constant 0.000000e+00 : bf16
    %15 = vector.broadcast %cst_13 : bf16 to vector<16x128xbf16>
    %c0_14 = arith.constant 0 : index
    %c0_15 = arith.constant 0 : index
    %c0_16 = arith.constant 0 : index
    %16 = vector.load %arg10[%c0_14, %c0_15, %c0_16] : memref<18x24x128xbf16, #tpu.memory_space<vmem>>, vector<1x16x128xbf16>
    %17 = vector.shape_cast %16 : vector<1x16x128xbf16> to vector<16x128xbf16>
    %18 = vector.shape_cast %15 : vector<16x128xbf16> to vector<1x16x128xbf16>
    tpu.vector_store %arg10[%c0_14, %c0_15, %c0_16], %18 {strides = array<i32>} : memref<18x24x128xbf16, #tpu.memory_space<vmem>>, vector<1x16x128xbf16>,
    %c17 = arith.constant 17 : index
    %c0_17 = arith.constant 0 : index
    %c0_18 = arith.constant 0 : index
    %19 = vector.load %arg10[%c17, %c0_17, %c0_18] : memref<18x24x128xbf16, #tpu.memory_space<vmem>>, vector<1x16x128xbf16>
    %20 = vector.shape_cast %19 : vector<1x16x128xbf16> to vector<16x128xbf16>
    %21 = vector.shape_cast %15 : vector<16x128xbf16> to vector<1x16x128xbf16>
    tpu.vector_store %arg10[%c17, %c0_17, %c0_18], %21 {strides = array<i32>} : memref<18x24x128xbf16, #tpu.memory_space<vmem>>, vector<1x16x128xbf16>,
    %c0_19 = arith.constant 0 : index
    %c0_20 = arith.constant 0 : index
    %c0_21 = arith.constant 0 : index
    %22 = vector.load %arg10[%c0_19, %c0_20, %c0_21] : memref<18x24x128xbf16, #tpu.memory_space<vmem>>, vector<16x24x128xbf16>
    %23 = vector.shape_cast %22 : vector<16x24x128xbf16> to vector<384x128xbf16>
    %24 = vector.extract_strided_slice %23 {offsets = [383, 0], sizes = [1, 128], strides = [1, 1]} : vector<384x128xbf16> to vector<1x128xbf16>
    %25 = vector.extract_strided_slice %23 {offsets = [0, 0], sizes = [383, 128], strides = [1, 1]} : vector<384x128xbf16> to vector<383x128xbf16>
    %26 = tpu.concatenate %24, %25 in 0 : vector<1x128xbf16>, vector<383x128xbf16> -> vector<384x128xbf16>
    %27 = vector.extract_strided_slice %23 {offsets = [1, 0], sizes = [383, 128], strides = [1, 1]} : vector<384x128xbf16> to vector<383x128xbf16>
    %28 = vector.extract_strided_slice %23 {offsets = [0, 0], sizes = [1, 128], strides = [1, 1]} : vector<384x128xbf16> to vector<1x128xbf16>
    %29 = tpu.concatenate %27, %28 in 0 : vector<383x128xbf16>, vector<1x128xbf16> -> vector<384x128xbf16>
    %30 = tpu.concatenate %26, %23, %29 in 1 : vector<384x128xbf16>, vector<384x128xbf16>, vector<384x128xbf16> -> vector<384x384xbf16>
    %c0_22 = arith.constant 0 : index
    %c0_23 = arith.constant 0 : index
    %c0_24 = arith.constant 0 : index
    %31 = vector.load %arg5[%c0_22, %c0_23, %c0_24] : memref<3x384x128xbf16, #tpu.memory_space<vmem>>, vector<1x384x128xbf16>
    %32 = vector.shape_cast %31 : vector<1x384x128xbf16> to vector<384x128xbf16>
    %cst_25 = arith.constant dense<0.000000e+00> : vector<384x128xf32>
    %33 = tpu.matmul %30, %32, %cst_25 {dimension_numbers = #tpu.dot_dimension_numbers<[1], [0], [0], [1], [0, 0, 1, 1], [], []>} : vector<384x384xbf16>, vector<384x128xbf16>, vector<384x128xf32> -> vector<384x128xf32>
    %c0_26 = arith.constant 0 : index
    %c0_27 = arith.constant 0 : index
    %34 = vector.load %arg11[%c0_26, %c0_27] : memref<384x128xf32, #tpu.memory_space<vmem>>, vector<384x128xf32>
    tpu.vector_store %arg11[%c0_26, %c0_27], %33 {strides = array<i32>} : memref<384x128xf32, #tpu.memory_space<vmem>>, vector<384x128xf32>,
    %c1_28 = arith.constant 1 : index
    %c0_29 = arith.constant 0 : index
    %c0_30 = arith.constant 0 : index
    %35 = vector.load %arg10[%c1_28, %c0_29, %c0_30] : memref<18x24x128xbf16, #tpu.memory_space<vmem>>, vector<16x24x128xbf16>
    %36 = vector.shape_cast %35 : vector<16x24x128xbf16> to vector<384x128xbf16>
    %37 = vector.extract_strided_slice %36 {offsets = [383, 0], sizes = [1, 128], strides = [1, 1]} : vector<384x128xbf16> to vector<1x128xbf16>
    %38 = vector.extract_strided_slice %36 {offsets = [0, 0], sizes = [383, 128], strides = [1, 1]} : vector<384x128xbf16> to vector<383x128xbf16>
    %39 = tpu.concatenate %37, %38 in 0 : vector<1x128xbf16>, vector<383x128xbf16> -> vector<384x128xbf16>
    %40 = vector.extract_strided_slice %36 {offsets = [1, 0], sizes = [383, 128], strides = [1, 1]} : vector<384x128xbf16> to vector<383x128xbf16>
    %41 = vector.extract_strided_slice %36 {offsets = [0, 0], sizes = [1, 128], strides = [1, 1]} : vector<384x128xbf16> to vector<1x128xbf16>
    %42 = tpu.concatenate %40, %41 in 0 : vector<383x128xbf16>, vector<1x128xbf16> -> vector<384x128xbf16>
    %43 = tpu.concatenate %39, %36, %42 in 1 : vector<384x128xbf16>, vector<384x128xbf16>, vector<384x128xbf16> -> vector<384x384xbf16>
    %c1_31 = arith.constant 1 : index
    %c0_32 = arith.constant 0 : index
    %c0_33 = arith.constant 0 : index
    %44 = vector.load %arg5[%c1_31, %c0_32, %c0_33] : memref<3x384x128xbf16, #tpu.memory_space<vmem>>, vector<1x384x128xbf16>
    %45 = vector.shape_cast %44 : vector<1x384x128xbf16> to vector<384x128xbf16>
    %cst_34 = arith.constant dense<0.000000e+00> : vector<384x128xf32>
    %46 = tpu.matmul %43, %45, %cst_34 {dimension_numbers = #tpu.dot_dimension_numbers<[1], [0], [0], [1], [0, 0, 1, 1], [], []>} : vector<384x384xbf16>, vector<384x128xbf16>, vector<384x128xf32> -> vector<384x128xf32>
    %c0_35 = arith.constant 0 : index
    %c0_36 = arith.constant 0 : index
    %47 = vector.load %arg11[%c0_35, %c0_36] : memref<384x128xf32, #tpu.memory_space<vmem>>, vector<384x128xf32>
    %48 = arith.addf %47, %46 : vector<384x128xf32>
    %c0_37 = arith.constant 0 : index
    %c0_38 = arith.constant 0 : index
    %49 = vector.load %arg11[%c0_37, %c0_38] : memref<384x128xf32, #tpu.memory_space<vmem>>, vector<384x128xf32>
    tpu.vector_store %arg11[%c0_37, %c0_38], %48 {strides = array<i32>} : memref<384x128xf32, #tpu.memory_space<vmem>>, vector<384x128xf32>,
    %c2 = arith.constant 2 : index
    %c0_39 = arith.constant 0 : index
    %c0_40 = arith.constant 0 : index
    %50 = vector.load %arg10[%c2, %c0_39, %c0_40] : memref<18x24x128xbf16, #tpu.memory_space<vmem>>, vector<16x24x128xbf16>
    %51 = vector.shape_cast %50 : vector<16x24x128xbf16> to vector<384x128xbf16>
    %52 = vector.extract_strided_slice %51 {offsets = [383, 0], sizes = [1, 128], strides = [1, 1]} : vector<384x128xbf16> to vector<1x128xbf16>
    %53 = vector.extract_strided_slice %51 {offsets = [0, 0], sizes = [383, 128], strides = [1, 1]} : vector<384x128xbf16> to vector<383x128xbf16>
    %54 = tpu.concatenate %52, %53 in 0 : vector<1x128xbf16>, vector<383x128xbf16> -> vector<384x128xbf16>
    %55 = vector.extract_strided_slice %51 {offsets = [1, 0], sizes = [383, 128], strides = [1, 1]} : vector<384x128xbf16> to vector<383x128xbf16>
    %56 = vector.extract_strided_slice %51 {offsets = [0, 0], sizes = [1, 128], strides = [1, 1]} : vector<384x128xbf16> to vector<1x128xbf16>
    %57 = tpu.concatenate %55, %56 in 0 : vector<383x128xbf16>, vector<1x128xbf16> -> vector<384x128xbf16>
    %58 = tpu.concatenate %54, %51, %57 in 1 : vector<384x128xbf16>, vector<384x128xbf16>, vector<384x128xbf16> -> vector<384x384xbf16>
    %c2_41 = arith.constant 2 : index
    %c0_42 = arith.constant 0 : index
    %c0_43 = arith.constant 0 : index
    %59 = vector.load %arg5[%c2_41, %c0_42, %c0_43] : memref<3x384x128xbf16, #tpu.memory_space<vmem>>, vector<1x384x128xbf16>
    %60 = vector.shape_cast %59 : vector<1x384x128xbf16> to vector<384x128xbf16>
    %cst_44 = arith.constant dense<0.000000e+00> : vector<384x128xf32>
    %61 = tpu.matmul %58, %60, %cst_44 {dimension_numbers = #tpu.dot_dimension_numbers<[1], [0], [0], [1], [0, 0, 1, 1], [], []>} : vector<384x384xbf16>, vector<384x128xbf16>, vector<384x128xf32> -> vector<384x128xf32>
    %c0_45 = arith.constant 0 : index
    %c0_46 = arith.constant 0 : index
    %62 = vector.load %arg11[%c0_45, %c0_46] : memref<384x128xf32, #tpu.memory_space<vmem>>, vector<384x128xf32>
    %63 = arith.addf %62, %61 : vector<384x128xf32>
    %c0_47 = arith.constant 0 : index
    %c0_48 = arith.constant 0 : index
    %64 = vector.load %arg11[%c0_47, %c0_48] : memref<384x128xf32, #tpu.memory_space<vmem>>, vector<384x128xf32>
    tpu.vector_store %arg11[%c0_47, %c0_48], %63 {strides = array<i32>} : memref<384x128xf32, #tpu.memory_space<vmem>>, vector<384x128xf32>,
    %c0_49 = arith.constant 0 : index
    %c0_50 = arith.constant 0 : index
    %65 = vector.load %arg11[%c0_49, %c0_50] : memref<384x128xf32, #tpu.memory_space<vmem>>, vector<384x128xf32>
    %c0_51 = arith.constant 0 : index
    %c0_52 = arith.constant 0 : index
    %66 = vector.load %arg6[%c0_51, %c0_52] : memref<1x128xf32, #tpu.memory_space<vmem>>, vector<1x128xf32>
    %67 = vector.broadcast %66 : vector<1x128xf32> to vector<384x128xf32>
    %68 = arith.addf %65, %67 : vector<384x128xf32>
    %cst_53 = arith.constant 0.000000e+00 : f32
    %69 = vector.broadcast %cst_53 : f32 to vector<384x128xf32>
    %70 = arith.maximumf %68, %69 : vector<384x128xf32>
    %71 = vector.shape_cast %70 : vector<384x128xf32> to vector<16x24x128xf32>
    %72 = vector.extract_strided_slice %71 {offsets = [0, 0, 0], sizes = [16, 16, 128], strides = [1, 1, 1]} : vector<16x24x128xf32> to vector<16x16x128xf32>
    %73 = vector.shape_cast %72 : vector<16x16x128xf32> to vector<256x128xf32>
    %74 = arith.truncf %73 : vector<256x128xf32> to vector<256x128xbf16>
    %c0_54 = arith.constant 0 : index
    %c0_55 = arith.constant 0 : index
    %75 = vector.load %arg7[%c0_54, %c0_55] : memref<128x256xbf16, #tpu.memory_space<vmem>>, vector<128x256xbf16>
    %cst_56 = arith.constant dense<0.000000e+00> : vector<256x256xf32>
    %76 = tpu.matmul %74, %75, %cst_56 {dimension_numbers = #tpu.dot_dimension_numbers<[1], [0], [0], [1], [0, 0, 1, 1], [], []>} : vector<256x128xbf16>, vector<128x256xbf16>, vector<256x256xf32> -> vector<256x256xf32>
    %77 = vector.shape_cast %1 : vector<16x16x256xbf16> to vector<256x256xbf16>
    %78 = arith.extf %77 : vector<256x256xbf16> to vector<256x256xf32>
    %c0_57 = arith.constant 0 : index
    %c0_58 = arith.constant 0 : index
    %79 = vector.load %arg8[%c0_57, %c0_58] : memref<1x256xf32, #tpu.memory_space<vmem>>, vector<1x256xf32>
    %80 = vector.broadcast %79 : vector<1x256xf32> to vector<256x256xf32>
    %81 = arith.addf %76, %80 : vector<256x256xf32>
    %82 = arith.addf %81, %78 : vector<256x256xf32>
    %cst_59 = arith.constant 0.000000e+00 : f32
    %83 = vector.broadcast %cst_59 : f32 to vector<256x256xf32>
    %84 = arith.maximumf %82, %83 : vector<256x256xf32>
    %85 = arith.truncf %84 : vector<256x256xf32> to vector<256x256xbf16>
    %86 = vector.shape_cast %85 : vector<256x256xbf16> to vector<16x16x256xbf16>
    %c0_60 = arith.constant 0 : index
    %c0_61 = arith.constant 0 : index
    %c0_62 = arith.constant 0 : index
    %c0_63 = arith.constant 0 : index
    %87 = vector.load %arg9[%c0_60, %c0_61, %c0_62, %c0_63] : memref<1x16x16x256xbf16, #tpu.memory_space<vmem>>, vector<1x16x16x256xbf16>
    %88 = vector.shape_cast %87 : vector<1x16x16x256xbf16> to vector<16x16x256xbf16>
    %89 = vector.shape_cast %86 : vector<16x16x256xbf16> to vector<1x16x16x256xbf16>
    tpu.vector_store %arg9[%c0_60, %c0_61, %c0_62, %c0_63], %89 {strides = array<i32>} : memref<1x16x16x256xbf16, #tpu.memory_space<vmem>>, vector<1x16x16x256xbf16>,
    return
  }
  func.func @transform_0(%arg0: i32, %arg1: i32) -> (i32, i32, i32, i32) {
    %c0_i32 = arith.constant 0 : i32
    %c0_i32_0 = arith.constant 0 : i32
    %c0_i32_1 = arith.constant 0 : i32
    return %arg0, %arg1, %c0_i32, %c0_i32_0 : i32, i32, i32, i32
  }
  func.func @transform_1(%arg0: i32, %arg1: i32) -> (i32, i32) {
    %c0_i32 = arith.constant 0 : i32
    %c0_i32_0 = arith.constant 0 : i32
    %c0_i32_1 = arith.constant 0 : i32
    return %c0_i32, %c0_i32_0 : i32, i32
  }
  func.func @transform_2(%arg0: i32, %arg1: i32) -> (i32, i32) {
    %c0_i32 = arith.constant 0 : i32
    %c0_i32_0 = arith.constant 0 : i32
    %c0_i32_1 = arith.constant 0 : i32
    return %c0_i32, %c0_i32_0 : i32, i32
  }
  func.func @transform_3(%arg0: i32, %arg1: i32) -> (i32, i32, i32) {
    %c0_i32 = arith.constant 0 : i32
    %c0_i32_0 = arith.constant 0 : i32
    %c0_i32_1 = arith.constant 0 : i32
    %c0_i32_2 = arith.constant 0 : i32
    return %c0_i32, %c0_i32_0, %c0_i32_1 : i32, i32, i32
  }
  func.func @transform_4(%arg0: i32, %arg1: i32) -> (i32, i32) {
    %c0_i32 = arith.constant 0 : i32
    %c0_i32_0 = arith.constant 0 : i32
    %c0_i32_1 = arith.constant 0 : i32
    return %c0_i32, %c0_i32_0 : i32, i32
  }
  func.func @transform_5(%arg0: i32, %arg1: i32) -> (i32, i32) {
    %c0_i32 = arith.constant 0 : i32
    %c0_i32_0 = arith.constant 0 : i32
    %c0_i32_1 = arith.constant 0 : i32
    return %c0_i32, %c0_i32_0 : i32, i32
  }
  func.func @transform_6(%arg0: i32, %arg1: i32) -> (i32, i32) {
    %c0_i32 = arith.constant 0 : i32
    %c0_i32_0 = arith.constant 0 : i32
    %c0_i32_1 = arith.constant 0 : i32
    return %c0_i32, %c0_i32_0 : i32, i32
  }
  func.func @transform_7(%arg0: i32, %arg1: i32) -> (i32, i32, i32, i32) {
    %c0_i32 = arith.constant 0 : i32
    %c0_i32_0 = arith.constant 0 : i32
    %c0_i32_1 = arith.constant 0 : i32
    return %arg0, %arg1, %c0_i32, %c0_i32_0 : i32, i32, i32, i32
  }
}

</mosaic_0001>

<bundles_post_ra>
// kernel: _lambda_.1
= control target key start
LH: loop header
LB: loop body
LE: loop exit
PB: predicated region body
PF: predicated region fallthrough
CT: control target
= control target key end

     0   :  { %12 = vsyncpa [#allocation5], 0  ;;  %s9218_s0 = inlined_call_operand.vmem [shape: bf16[2,16,16,256], index: 0, kind: input, shape index: {}]   ;;  %s9219_s1 = inlined_call_operand.vmem [shape: bf16[256,128], index: 1, kind: input, shape index: {}]   ;;  %s9220_s2 = inlined_call_operand.vmem [shape: f32[1,128], index: 2, kind: input, shape index: {}]   ;;  %s9221_s3 = inlined_call_operand.vmem [shape: bf16[3,384,128], index: 3, kind: input, shape index: {}]   ;;  %s9222_s4 = inlined_call_operand.vmem [shape: f32[1,128], index: 4, kind: input, shape index: {}]   ;;  %s9223_s5 = inlined_call_operand.vmem [shape: bf16[128,256], index: 5, kind: input, shape index: {}]   ;;  %s9224_s6 = inlined_call_operand.vmem [shape: f32[1,256], index: 6, kind: input, shape index: {}]   ;;  %s9225_s7 = inlined_call_operand.hbm [shape: bf16[2,16,16,256], index: 7, kind: output, shape index: {}]  }
   0x1   :  { %14 = vsyncpa [#allocation5 + $0x1], 0  ;;  %s7130_s24 = smov 0   ;;  %s7132_s25 = smov 0  }
   0x2   :  { %s7134_s26 = smov 0   ;;  %s7136_s27 = smov 0  }
   0x3   :  { %s7138_s28 = smov 0   ;;  %s7140_s29 = smov 0  }
   0x4 LB: > { %s5770_s30 = sadd.s32 4294967295, %s7084_s29   ;;  %s5771_s8 = sadd.s32 4294967294, %s7084_s29   ;;  %s7084_s29 = sphi %s7140_s29, %s20_s29   ;;  %s7080_s28 = sphi %s7138_s28, %s9348_s28   ;;  %s7076_s27 = sphi %s7136_s27, %s9347_s27   ;;  %s7072_s26 = sphi %s7134_s26, %s9346_s26   ;;  %s7068_s25 = sphi %s7132_s25, %s9345_s25   ;;  %s7064_s24 = sphi %s7130_s24, %s9344_s24  }
   0x5   : > { %s32_s9 = sadd.s32 1, %s7080_s28  ;;  %s195_s10 = sadd.s32 1, %s7072_s26 }
   0x6   : > { %p34_p0 = scmp.ge.s32.totalorder %s32_s9, 2  ;;  %p205_p1 = scmp.ne.s32.totalorder %s7072_s26, %s7068_s25 }
   0x7   : > { %p206_p2 = scmp.eq.s32.totalorder %s5770_s30, 1  ;;  %p211_p3 = scmp.ne.s32.totalorder %s7068_s25, %s7064_s24 }
   0x8   : > { %s9350_s9 = smov (%p34_p0, %s32_s9), 0  ;;  %p212_p5 = scmp.eq.s32.totalorder %s5771_s8, 1 }
   0x9   : > { %p7170_p4 = por %p206_p2, %p205_p1  ;;  %s190_s12 = ssub.s32 %s7080_s28, %s9350_s9 }
   0xa   : > { %p5774_p6 = scmp.ge.s32.totalorder %s7084_s29, 1  ;;  %p193_p7 = scmp.eq.s32.totalorder %s190_s12, 0 }
   0xb   : > { %p7177_p8 = por %p212_p5, %p211_p3  ;;  %p262_p9 = scmp.lt.s32.totalorder %s7084_s29, 3 }
   0xc   : > { %s7183_s14 = scalar_select %p193_p7, %s7072_s26, %s195_s10  }
   0xd   : > { %p263_p10 = pnand %p5774_p6, %p262_p9 }
   0xf   : > { %266 = sbr.rel (%p263_p10) target bundleno = 1216 (0x4c0), region = 48 }
  0x16   : > { %v6747_v0 = vld [vmem:[%s9219_s1 + $0x40] sm:$0xff]   ;;  %v6749_v2 = vld [vmem:[%s9219_s1 + $0x48] sm:$0xff]   ;;  %p300_p11 = scmp.lt.s32.totalorder %s7076_s27, 1  ;;  %v9226_v3 = vmov 0   ;;  %v6751_v5 = vld [vmem:[%s9219_s1 + $0x50] sm:$0xff]   ;;  %vm1406_vm1 = vcmask 1040384  }
  0x17   : > { %v6748_v1 = vld [vmem:[%s9219_s1] sm:$0xff]   ;;  %6273 = vmatprep.subr.bf16.mxu0 %v6747_v0  ;;  %6673 = vmatprep.subr.bf16.mxu1 %v6747_v0  ;;  %993 = vst [vmem:[#allocation2 + $0x8] sm:$0xf] %v9226_v3  ;;  %994 = vst [vmem:[#allocation2 + $0x14] sm:$0xf] %v9226_v3  ;;  %v6750_v4 = vld [vmem:[%s9219_s1 + $0x8] sm:$0xff]  }
  0x18   : > { %995 = vst [vmem:[#allocation2 + $0x20] sm:$0xf] %v9226_v3  ;;  %996 = vst [vmem:[#allocation2 + $0x2c] sm:$0xf] %v9226_v3  ;;  %6274 = vmatpush3.bf16.msra.mxu0 %v6748_v1  ;;  %6681 = vmatpush3.bf16.msra.mxu1 %v6748_v1  ;;  %s301_s8 = scalar_select %p300_p11, %s7076_s27, 1  ;;  %v6752_v6 = vld [vmem:[%s9219_s1 + $0x10] sm:$0xff]  }
  0x19   : > { %997 = vst [vmem:[#allocation2 + $0x38] sm:$0xf] %v9226_v3  ;;  %998 = vst [vmem:[#allocation2 + $0x44] sm:$0xf] %v9226_v3  ;;  %6275 = vmatprep.subr.bf16.mxu0 %v6749_v2  ;;  %6674 = vmatprep.subr.bf16.mxu1 %v6749_v2  ;;  %v6753_v7 = vld [vmem:[%s9219_s1 + $0x58] sm:$0xff]   ;;  %v6755_v9 = vld [vmem:[%s9219_s1 + $0x60] sm:$0xff]  }
  0x1a   : > { %999 = vst [vmem:[#allocation2 + $0x50] sm:$0xf] %v9226_v3  ;;  %1000 = vst [vmem:[#allocation2 + $0x5c] sm:$0xf] %v9226_v3  ;;  %s6159_s17 = sshll.u32 %s301_s8, 8  ;;  %v6754_v8 = vld [vmem:[%s9219_s1 + $0x18] sm:$0xff]  }
  0x1b   : > { %1001 = vst [vmem:[#allocation2 + $0x68] sm:$0xf] %v9226_v3  ;;  %1002 = vst [vmem:[#allocation2 + $0x74] sm:$0xf] %v9226_v3  ;;  %s7241_s30 = scalar_lea.vmem %s9218_s0, %s6159_s17  ;;  %v6756_v10 = vld [vmem:[%s9219_s1 + $0x20] sm:$0xff]   ;;  %v6757_v11 = vld [vmem:[%s9219_s1 + $0x68] sm:$0xff]  }
  0x1c   : > { %1003 = vst [vmem:[#allocation2 + $0x80] sm:$0xf] %v9226_v3  ;;  %1004 = vst [vmem:[#allocation2 + $0x8c] sm:$0xf] %v9226_v3  ;;  %6276 = vmatpush3.bf16.msra.mxu0 %v6750_v4  ;;  %6682 = vmatpush3.bf16.msra.mxu1 %v6750_v4  ;;  %v312_v12 = vld [vmem:[%s7241_s30] sm:$0xff]  ;;  %v313_v13 = vld [vmem:[%s7241_s30 + $0x8] sm:$0xff] }
  0x1d   : > { %1005 = vst [vmem:[#allocation2 + $0x98] sm:$0xf] %v9226_v3  ;;  %1006 = vst [vmem:[#allocation2 + $0xa4] sm:$0xf] %v9226_v3  ;;  %6277 = vmatprep.subr.bf16.mxu0 %v6751_v5  ;;  %6675 = vmatprep.subr.bf16.mxu1 %v6751_v5  ;;  %v324_v14 = vld [vmem:[%s7241_s30 + $0x60] sm:$0xff]  ;;  %v5780_v15 = vcombine.high %v312_v12, %v313_v13  ;;  %v325_v16 = vld [vmem:[%s7241_s30 + $0x68] sm:$0xff]  ;;  %v5779_v27 = vcombine.low %v312_v12, %v313_v13 }
  0x1e   : > { %1007 = vst [vmem:[#allocation2 + $0xb0] sm:$0xf] %v9226_v3  ;;  %1008 = vst [vmem:[#allocation2 + $0xbc] sm:$0xf] %v9226_v3  ;;  %v5792_v17 = vcombine.high %v324_v14, %v325_v16  ;;  %v6758_v18 = vld [vmem:[%s9219_s1 + $0x28] sm:$0xff]   ;;  %v6759_v19 = vld [vmem:[%s9219_s1 + $0x70] sm:$0xff]   ;;  %v5791_v28 = vcombine.low %v324_v14, %v325_v16 }
  0x1f   : > { %1009 = vst [vmem:[#allocation2 + $0xc8] sm:$0xf] %v9226_v3  ;;  %1010 = vst [vmem:[#allocation2 + $0xd4] sm:$0xf] %v9226_v3  ;;  %671 = vmatprep.mubr.bf16.mxu0 %v5780_v15  ;;  %v6760_v20 = vld [vmem:[%s9219_s1 + $0x30] sm:$0xff]   ;;  %v6761_v21 = vld [vmem:[%s9219_s1 + $0x78] sm:$0xff]  }
  0x20   : > { %1011 = vst [vmem:[#allocation2] sm:$0xf] %v9226_v3  ;;  %1012 = vst [vmem:[#allocation2 + $0x4] sm:$0xf] %v9226_v3  ;;  %6278 = vmatpush3.bf16.msra.mxu0 %v6752_v6  ;;  %6683 = vmatpush3.bf16.msra.mxu1 %v6752_v6  ;;  %v6762_v22 = vld [vmem:[%s9219_s1 + $0x38] sm:$0xff]   ;;  %v314_v23 = vld [vmem:[%s7241_s30 + $0x10] sm:$0xff] }
  0x21   : > { %1014 = vst [vmem:[#allocation2 + $0xcc] sm:$0xf] %v9226_v3  ;;  %1015 = vst [vmem:[#allocation2 + $0xd0] sm:$0xf] %v9226_v3  ;;  %6279 = vmatprep.subr.bf16.mxu0 %v6753_v7  ;;  %6676 = vmatprep.subr.bf16.mxu1 %v6753_v7  ;;  %v315_v24 = vld [vmem:[%s7241_s30 + $0x18] sm:$0xff]  ;;  %v326_v25 = vld [vmem:[%s7241_s30 + $0x70] sm:$0xff] }
  0x22   : > { %719 = vmatprep.mubr.bf16.mxu1 %v5792_v17  ;;  %v327_v26 = vld [vmem:[%s7241_s30 + $0x78] sm:$0xff]  ;;  %v5782_v29 = vcombine.high %v314_v23, %v315_v24  ;;  %v6795_v31 = vld [vmem:[%s9221_s3] sm:$0xff]   ;;  %v317_v33 = vld [vmem:[%s7241_s30 + $0x28] sm:$0xff]  ;;  %v5781_v37 = vcombine.low %v314_v23, %v315_v24  ;;  %vm1190_vm0 = vsmask.f32 256  ;;  %vm1511_vm4 = vcmask 1047552  }
  0x23   : > { %v5794_v30 = vcombine.high %v326_v25, %v327_v26  ;;  %v316_v32 = vld [vmem:[%s7241_s30 + $0x20] sm:$0xff]  ;;  %v329_v35 = vld [vmem:[%s7241_s30 + $0x88] sm:$0xff]  ;;  %v5793_v38 = vcombine.low %v326_v25, %v327_v26  ;;  %v6797_v42 = vld [vmem:[%s9221_s3 + $0x10] sm:$0xff]   ;;  %vm1409_vm3 = vsmask.f32 7424  ;;  %s296_s16 = sand.u32 1, %s7068_s25  }
  0x24   : > { %6280 = vmatpush3.bf16.msra.mxu0 %v6754_v8  ;;  %6684 = vmatpush3.bf16.msra.mxu1 %v6754_v8  ;;  %v328_v34 = vld [vmem:[%s7241_s30 + $0x80] sm:$0xff]  ;;  %v6796_v36 = vld [vmem:[%s9221_s3 + $0x8] sm:$0xff]   ;;  %v5784_v39 = vcombine.high %v316_v32, %v317_v33  ;;  %v318_v44 = vld [vmem:[%s7241_s30 + $0x30] sm:$0xff]  ;;  %v5783_v49 = vcombine.low %v316_v32, %v317_v33  ;;  %s5775_s17 = sshll.u32 %s296_s16, 8  ;;  %s9172_s23 = scalar_lea.sflag [#allocation5], %s296_s16 }
  0x25   : > { %6281 = vmatprep.subr.bf16.mxu0 %v6755_v9  ;;  %6677 = vmatprep.subr.bf16.mxu1 %v6755_v9  ;;  %v5796_v40 = vcombine.high %v328_v34, %v329_v35  ;;  %v6807_v41 = vld [vmem:[%s9221_s3 + $0x80] sm:$0xff]   ;;  %v6809_v43 = vld [vmem:[%s9221_s3 + $0x88] sm:$0xff]   ;;  %v319_v45 = vld [vmem:[%s7241_s30 + $0x38] sm:$0xff]  ;;  %v5795_v50 = vcombine.low %v328_v34, %v329_v35  ;;  %s9040_s18 = scalar_lea.vmem [#allocation4], %s5775_s17  ;;  %s7087_s10 = smov [#allocation4]  }
  0x26   : > { %v330_v46 = vld [vmem:[%s7241_s30 + $0x90] sm:$0xff]  ;;  %v331_v47 = vld [vmem:[%s7241_s30 + $0x98] sm:$0xff]  ;;  %v6799_v51 = vld [vmem:[%s9221_s3 + $0x20] sm:$0xff]   ;;  %v5786_v52 = vcombine.high %v318_v44, %v319_v45  ;;  %v5785_v59 = vcombine.low %v318_v44, %v319_v45  ;;  %s5688_s19 = sshll.u32 %s9040_s18, 4  ;;  %s7010_s12 = sshll.u32 %s7087_s10, 4  ;;  %s9166_s19 = int_to_ptr.vmem [resolvable:$true] %s5688_s19  ;;  %s7011_s12 = int_to_ptr.vmem [resolvable:$false] %s7010_s12 }
  0x27   : > { %v6798_v48 = vld [vmem:[%s9221_s3 + $0x18] sm:$0xff]   ;;  %v5798_v53 = vcombine.high %v330_v46, %v331_v47  ;;  %v320_v54 = vld [vmem:[%s7241_s30 + $0x40] sm:$0xff]  ;;  %v321_v55 = vld [vmem:[%s7241_s30 + $0x48] sm:$0xff]  ;;  %v5797_v60 = vcombine.low %v330_v46, %v331_v47  ;;  %s7012_s8 = scalar_lea.vmem %s7011_s12, 8192  ;;  %p7013_p1 = scmp.lt.s32.totalorder %s9166_s19, %s7011_s12 }
  0x28   : > { %6282 = vmatpush3.bf16.msra.mxu0 %v6756_v10  ;;  %6685 = vmatpush3.bf16.msra.mxu1 %v6756_v10  ;;  %v332_v56 = vld [vmem:[%s7241_s30 + $0xa0] sm:$0xff]  ;;  %v333_v57 = vld [vmem:[%s7241_s30 + $0xa8] sm:$0xff]  ;;  %v6801_v61 = vld [vmem:[%s9221_s3 + $0x30] sm:$0xff]   ;;  %v5788_v62 = vcombine.high %v320_v54, %v321_v55  ;;  %v5787_v6 = vcombine.low %v320_v54, %v321_v55 }
  0x29   : > { %6283 = vmatprep.subr.bf16.mxu0 %v6757_v11  ;;  %6678 = vmatprep.subr.bf16.mxu1 %v6757_v11  ;;  %v6800_v58 = vld [vmem:[%s9221_s3 + $0x28] sm:$0xff]   ;;  %v5800_v63 = vcombine.high %v332_v56, %v333_v57  ;;  %v322_v0 = vld [vmem:[%s7241_s30 + $0x50] sm:$0xff]  ;;  %v323_v1 = vld [vmem:[%s7241_s30 + $0x58] sm:$0xff]  ;;  %v5799_v7 = vcombine.low %v332_v56, %v333_v57 }
  0x2a   : > { %v334_v2 = vld [vmem:[%s7241_s30 + $0xb0] sm:$0xff]  ;;  %v335_v4 = vld [vmem:[%s7241_s30 + $0xb8] sm:$0xff]  ;;  %v6803_v8 = vld [vmem:[%s9221_s3 + $0x40] sm:$0xff]   ;;  %v5790_v9 = vcombine.high %v322_v0, %v323_v1  ;;  %v5789_v14 = vcombine.low %v322_v0, %v323_v1 }
  0x2b   : > { %v6802_v5 = vld [vmem:[%s9221_s3 + $0x38] sm:$0xff]   ;;  %v5802_v10 = vcombine.high %v334_v2, %v335_v4  ;;  %v336_v11 = vld [vmem:[%s7241_s30 + $0xc0] sm:$0xff]  ;;  %v337_v12 = vld [vmem:[%s7241_s30 + $0xc8] sm:$0xff]  ;;  %v5801_v15 = vcombine.low %v334_v2, %v335_v4 }
  0x2c   : > { %6284 = vmatpush3.bf16.msra.mxu0 %v6758_v18  ;;  %6686 = vmatpush3.bf16.msra.mxu1 %v6758_v18  ;;  %v6804_v13 = vld [vmem:[%s9221_s3 + $0x48] sm:$0xff]   ;;  %v6805_v16 = vld [vmem:[%s9221_s3 + $0x50] sm:$0xff]   ;;  %v5804_v17 = vcombine.high %v336_v11, %v337_v12  ;;  %v340_v24 = vld [vmem:[%s7241_s30 + $0xe0] sm:$0xff] }
  0x2d   : > { %6285 = vmatprep.subr.bf16.mxu0 %v6759_v19  ;;  %6679 = vmatprep.subr.bf16.mxu1 %v6759_v19  ;;  %v338_v18 = vld [vmem:[%s7241_s30 + $0xd0] sm:$0xff]  ;;  %v339_v19 = vld [vmem:[%s7241_s30 + $0xd8] sm:$0xff]  ;;  %v341_v25 = vld [vmem:[%s7241_s30 + $0xe8] sm:$0xff] }
  0x2e   : > { %v5806_v23 = vcombine.high %v338_v18, %v339_v19  ;;  %v5805_v26 = vcombine.low %v338_v18, %v339_v19  ;;  %v6810_v33 = vld [vmem:[%s9221_s3 + $0x90] sm:$0xff]   ;;  %v6811_v34 = vld [vmem:[%s9221_s3 + $0x68] sm:$0xff]   ;;  %v6812_v35 = vld [vmem:[%s9221_s3 + $0x98] sm:$0xff]  }
  0x2f   : > { %v6815_v44 = vld [vmem:[%s9221_s3 + $0x78] sm:$0xff]   ;;  %vm7382_vm2 = vmand %vm1406_vm1, %vm1190_vm0  ;;  %v6820_v57 = vld [vmem:[%s9221_s3 + $0x140] sm:$0xff]  }
  0x30   : > { %6286 = vmatpush3.bf16.msra.mxu0 %v6760_v20  ;;  %6687 = vmatpush3.bf16.msra.mxu1 %v6760_v20  ;;  %v6806_v20 = vld [vmem:[%s9221_s3 + $0x58] sm:$0xff]   ;;  %v7415_v0 = vld [vmem:[%s9220_s2] ss:$0 sm:$0xff]  ;;  %vm7823_vm5 = vmand %vm1511_vm4, %vm1409_vm3 }
  0x31   : > { %6287 = vmatprep.subr.bf16.mxu0 %v6761_v21  ;;  %6680 = vmatprep.subr.bf16.mxu1 %v6761_v21  ;;  %v5803_v21 = vcombine.low %v336_v11, %v337_v12  ;;  %v6823_v55 = vld [vmem:[%s9221_s3 + $0xb8] sm:$0xff]  }
  0x34   : > { %6288 = vmatpush3.bf16.msra.mxu0 %v6762_v22  ;;  %6688 = vmatpush3.bf16.msra.mxu1 %v6762_v22  ;;  %v6808_v22 = vld [vmem:[%s9221_s3 + $0x60] sm:$0xff]  }
  0x35   : > { %1730 = vmatprep.subr.bf16.mxu1 %v9226_v3  ;;  %6481 = vmatprep.subr.bf16.mxu0 %v6807_v41 }
  0x37   : > { %672 = vmatmul.mubr.bf16.vlgmr.msra.gmra.mrb[0].mxu0 %v5779_v27  ;;  %720 = vmatmul.mubr.bf16.vlgmr.msra.gmra.mrb[0].mxu1 %v5791_v28  ;;  %v5808_v27 = vcombine.high %v340_v24, %v341_v25  ;;  %v342_v28 = vld [vmem:[%s7241_s30 + $0xf0] sm:$0xff] }
  0x38   : > { %679 = vmatprep.mubr.bf16.mxu0 %v5782_v29  ;;  %727 = vmatprep.mubr.bf16.mxu1 %v5794_v30  ;;  %v343_v29 = vld [vmem:[%s7241_s30 + $0xf8] sm:$0xff]  ;;  %v5807_v30 = vcombine.low %v340_v24, %v341_v25 }
  0x39   : > { %1731 = vmatpush1.bf16.msra.mxu1 %v6795_v31  ;;  %6482 = vmatpush3.bf16.msra.mxu0 %v6807_v41  ;;  %v5810_v31 = vcombine.high %v342_v28, %v343_v29  ;;  %v5809_v32 = vcombine.low %v342_v28, %v343_v29  ;;  %v6814_v41 = vld [vmem:[%s9221_s3 + $0xa0] sm:$0xff]  }
  0x3a   : > { %1732 = vmatprep.subr.bf16.mxu1 %v9226_v3  ;;  %6483 = vmatprep.subr.bf16.mxu0 %v6809_v43 }
  0x3d   : > { %1733 = vmatpush1.bf16.msra.mxu1 %v6796_v36  ;;  %6484 = vmatpush3.bf16.msra.mxu0 %v6809_v43  ;;  %v1016_v36 = vld [vmem:[#allocation2] sm:$0xf] }
  0x3e   : > { %1734 = vmatprep.subr.bf16.mxu1 %v9226_v3  ;;  %6485 = vmatprep.subr.bf16.mxu0 %v6810_v33 }
  0x3f   : > { %680 = vmatmul.mubr.bf16.gmra.mrb[4].mxu0 %v5781_v37  ;;  %728 = vmatmul.mubr.bf16.gmra.mrb[4].mxu1 %v5793_v38  ;;  %v1017_v37 = vld [vmem:[#allocation2 + $0x4] sm:$0xf]  ;;  %v6813_v38 = vld [vmem:[%s9221_s3 + $0x70] sm:$0xff]  }
  0x40   : > { %687 = vmatprep.mubr.bf16.mxu0 %v5784_v39  ;;  %735 = vmatprep.mubr.bf16.mxu1 %v5796_v40  ;;  %v5860_v39 = vcombine.low %v1016_v36, %v1017_v37  ;;  %v1063_v40 = vld [vmem:[#allocation2 + $0xbc] sm:$0xf] }
  0x41   : > { %1735 = vmatpush1.bf16.msra.mxu1 %v6797_v42  ;;  %6486 = vmatpush3.bf16.msra.mxu0 %v6810_v33  ;;  %v5859_v43 = vcombine.low %v1063_v40, %v1063_v40 }
  0x42   : > { %1736 = vmatprep.subr.bf16.mxu1 %v9226_v3  ;;  %6487 = vmatprep.subr.bf16.mxu0 %v6812_v35  ;;  %v1192_v42 = vshrl.u32 %v5860_v39, 16  ;;  %v1195_v46 = vshll.u32 %v5860_v39, 16 }
  0x43   : > { %v1068_v47 = vshrl.u32 %v5859_v43, 16 }
  0x44   : > { %v7375_v45 = vrot.slane %v1192_v42, 7  ;;  %v1410_v54 = vrot.slane %v1195_v46, 1 }
  0x45   : > { %1737 = vmatpush1.bf16.msra.mxu1 %v6798_v48  ;;  %6488 = vmatpush3.bf16.msra.mxu0 %v6812_v35  ;;  %v6818_v48 = vld [vmem:[%s9221_s3 + $0xa8] sm:$0xff]  }
  0x46   : > { %1738 = vmatprep.subr.bf16.mxu1 %v9226_v3  ;;  %6489 = vmatprep.subr.bf16.mxu0 %v6814_v41  ;;  %v7394_v56 = vor.u32 %v1410_v54, %v1192_v42 }
  0x47   : > { %688 = vmatmul.mubr.bf16.gmra.mrb[8].mxu0 %v5783_v49  ;;  %736 = vmatmul.mubr.bf16.gmra.mrb[8].mxu1 %v5795_v50  ;;  %v1070_v49 = vrot.slane %v1068_v47, 3  ;;  %v1197_v50 = vor.u32 %v1195_v46, %v7375_v45 }
  0x48   : > { %695 = vmatprep.mubr.bf16.mxu0 %v5786_v52  ;;  %743 = vmatprep.mubr.bf16.mxu1 %v5798_v53  ;;  %v6821_v53 = vld [vmem:[%s9221_s3 + $0xb0] sm:$0xff]  }
  0x49   : > { %1739 = vmatpush1.bf16.msra.mxu1 %v6799_v51  ;;  %6490 = vmatpush3.bf16.msra.mxu0 %v6814_v41  ;;  %v1408_v52 = vsel %vm7382_vm2, %v1070_v49, %v1197_v50 }
  0x4a   : > { %1740 = vmatprep.subr.bf16.mxu1 %v9226_v3  ;;  %6491 = vmatprep.subr.bf16.mxu0 %v6818_v48 }
  0x4d   : > { %1741 = vmatpush1.bf16.msra.mxu1 %v6800_v58  ;;  %6492 = vmatpush3.bf16.msra.mxu0 %v6818_v48  ;;  %v6827_v58 = vld [vmem:[%s9221_s3 + $0x148] sm:$0xff]  }
  0x4e   : > { %1742 = vmatprep.subr.bf16.mxu1 %v9226_v3  ;;  %6493 = vmatprep.subr.bf16.mxu0 %v6821_v53 }
  0x4f   : > { %696 = vmatmul.mubr.bf16.gmra.mrb[12].mxu0 %v5785_v59  ;;  %744 = vmatmul.mubr.bf16.gmra.mrb[12].mxu1 %v5797_v60  ;;  %v6832_v59 = vld [vmem:[%s9221_s3 + $0x150] sm:$0xff]   ;;  %v6845_v60 = vld [vmem:[%s9221_s3 + $0x158] sm:$0xff]  }
  0x50   : > { %703 = vmatprep.mubr.bf16.mxu0 %v5788_v62  ;;  %751 = vmatprep.mubr.bf16.mxu1 %v5800_v63 }
  0x51   : > { %1743 = vmatpush1.bf16.msra.mxu1 %v6801_v61  ;;  %6494 = vmatpush3.bf16.msra.mxu0 %v6821_v53  ;;  %v6858_v61 = vld [vmem:[%s9221_s3 + $0x160] sm:$0xff]  }
  0x52   : > { %1744 = vmatprep.subr.bf16.mxu1 %v9226_v3  ;;  %6495 = vmatprep.subr.bf16.mxu0 %v6823_v55 }
  0x55   : > { %1745 = vmatpush1.bf16.msra.mxu1 %v6802_v5  ;;  %6496 = vmatpush3.bf16.msra.mxu0 %v6823_v55 }
  0x56   : > { %1746 = vmatprep.subr.bf16.mxu1 %v9226_v3  ;;  %2937 = vmatprep.subr.bf16.mxu0 %v9226_v3 }
  0x57   : > { %704 = vmatmul.mubr.bf16.gmra.mrb[16].mxu0 %v5787_v6  ;;  %752 = vmatmul.mubr.bf16.gmra.mrb[16].mxu1 %v5799_v7 }
  0x58   : > { %711 = vmatprep.mubr.bf16.mxu0 %v5790_v9  ;;  %759 = vmatprep.mubr.bf16.mxu1 %v5802_v10 }
  0x59   : > { %1747 = vmatpush1.bf16.msra.mxu1 %v6803_v8 }
  0x5a   : > { %1748 = vmatprep.subr.bf16.mxu1 %v9226_v3 }
  0x5d   : > { %1749 = vmatpush1.bf16.msra.mxu1 %v6804_v13 }
  0x5e   : > { %1750 = vmatprep.subr.bf16.mxu1 %v9226_v3 }
  0x5f   : > { %712 = vmatmul.mubr.bf16.gmra.mrb[20].mxu0 %v5789_v14  ;;  %760 = vmatmul.mubr.bf16.gmra.mrb[20].mxu1 %v5801_v15  ;;  %v6869_v14 = vld [vmem:[%s9221_s3 + $0x168] sm:$0xff]  }
  0x60   : > { %767 = vmatprep.mubr.bf16.mxu1 %v5804_v17 }
  0x61   : > { %1751 = vmatpush1.bf16.msra.mxu1 %v6805_v16 }
  0x62   : > { %1752 = vmatprep.subr.bf16.mxu1 %v9226_v3 }
  0x65   : > { %1753 = vmatpush1.bf16.msra.mxu1 %v6806_v20 }
  0x66   : > { %1754 = vmatprep.subr.bf16.mxu1 %v9226_v3 }
  0x67   : > { %768 = vmatmul.mubr.bf16.gmra.mrb[24].mxu1 %v5803_v21 }
  0x68   : > { %775 = vmatprep.mubr.bf16.mxu1 %v5806_v23 }
  0x69   : > { %1755 = vmatpush1.bf16.msra.mxu1 %v6808_v22 }
  0x6a   : > { %1756 = vmatprep.subr.bf16.mxu1 %v9226_v3 }
  0x6d   : > { %1757 = vmatpush1.bf16.msra.mxu1 %v6811_v34 }
  0x6e   : > { %1758 = vmatprep.subr.bf16.mxu1 %v9226_v3 }
  0x6f   : > { %776 = vmatmul.mubr.bf16.gmra.mrb[28].mxu1 %v5805_v26 }
  0x70   : > { %783 = vmatprep.mubr.bf16.mxu1 %v5808_v27 }
  0x71   : > { %1759 = vmatpush1.bf16.msra.mxu1 %v6813_v38 }
  0x72   : > { %1760 = vmatprep.subr.bf16.mxu1 %v9226_v3 }
  0x75   : > { %1761 = vmatpush1.bf16.msra.mxu1 %v6815_v44 }
  0x76   : > { %6545 = vmatprep.subr.bf16.mxu1 %v6820_v57 }
  0x77   : > { %784 = vmatmul.mubr.bf16.gmra.mrb[32].mxu1 %v5807_v30 }
  0x78   : > { %791 = vmatprep.mubr.bf16.mxu1 %v5810_v31 }
  0x7f   : > { %792 = vmatmul.mubr.bf16.gmra.mrb[36].mxu1 %v5809_v32 }
  0x80   : > { %1762 = vmatprep.mubr.bf16.mxu1 %v5860_v39 }
  0x87   : > { %1763 = vmatmul.mubr.bf16.vlgmr.msra.gmra.mrb[40].mxu1 %v1408_v52 }
  0x88   : > { %6546 = vmatpush3.bf16.msra.mxu1 %v6820_v57 }
  0x89   : > { %6547 = vmatprep.subr.bf16.mxu1 %v6827_v58 }
  0x8c   : > { %6548 = vmatpush3.bf16.msra.mxu1 %v6827_v58 }
  0x8d   : > { %6549 = vmatprep.subr.bf16.mxu1 %v6832_v59 }
  0x90   : > { %6550 = vmatpush3.bf16.msra.mxu1 %v6832_v59 }
  0x91   : > { %6551 = vmatprep.subr.bf16.mxu1 %v6845_v60 }
  0x94   : > { %6552 = vmatpush3.bf16.msra.mxu1 %v6845_v60 }
  0x95   : > { %6553 = vmatprep.subr.bf16.mxu1 %v6858_v61 }
  0x98   : > { %6554 = vmatpush3.bf16.msra.mxu1 %v6858_v61 }
  0x99   : > { %6555 = vmatprep.subr.bf16.mxu1 %v6869_v14 }
  0x9c   : > { %6556 = vmatpush3.bf16.msra.mxu1 %v6869_v14 }
 0x10a   : > { %v6289_v62 = vpop.f32.mrb[0].mxu0  ;;  %v6325_v63 = vpop.f32.mrb[0].mxu1 }
 0x10b   : > { %v6290_v1 = vpop.f32.mrb[1].mxu0  ;;  %v6326_v2 = vpop.f32.mrb[1].mxu1 }
 0x10c   : > { %v6291_v4 = vadd.f32 %v6290_v1, %v6289_v62  ;;  %v6292_v5 = vpop.f32.mrb[2].mxu0  ;;  %v6327_v6 = vadd.f32 %v6326_v2, %v6325_v63  ;;  %v6328_v7 = vpop.f32.mrb[2].mxu1 }
 0x10d   : > { %v6293_v8 = vpop.f32.mrb[3].mxu0  ;;  %v6329_v9 = vpop.f32.mrb[3].mxu1 }
 0x10e   : > { %v674_v10 = vadd.f32 %v6291_v4, %v7415_v0  ;;  %v6294_v11 = vadd.f32 %v6293_v8, %v6292_v5  ;;  %v722_v12 = vadd.f32 %v6327_v6, %v7415_v0  ;;  %v6330_v13 = vadd.f32 %v6329_v9, %v6328_v7 }
 0x110   : > { %v800_v15 = vmax.f32 %v674_v10, 0.0  ;;  %v677_v16 = vadd.f32 %v6294_v11, %v7415_v0  ;;  %v812_v17 = vmax.f32 %v722_v12, 0.0  ;;  %v725_v18 = vadd.f32 %v6330_v13, %v7415_v0 }
 0x112   : > { %v6160_v19 = vpack.c.bf16 %v800_v15, %v800_v15  ;;  %v801_v20 = vmax.f32 %v677_v16, 0.0  ;;  %v6295_v21 = vpop.f32.mrb[4].mxu0  ;;  %v6172_v22 = vpack.c.bf16 %v812_v17, %v812_v17  ;;  %v813_v23 = vmax.f32 %v725_v18, 0.0  ;;  %v6331_v24 = vpop.f32.mrb[4].mxu1  ;;  %v6835_v17 = vld [vmem:[%s9221_s3 + $0xc0] sm:$0xff]  }
 0x113   : > { %v6296_v25 = vpop.f32.mrb[5].mxu0  ;;  %v6332_v26 = vpop.f32.mrb[5].mxu1 }
 0x114   : > { %961 = vst [vmem:[#allocation2 + $0xc] sm:$0xf] %v6160_v19  ;;  %v6161_v27 = vpack.c.bf16 %v801_v20, %v801_v20  ;;  %v6297_v28 = vadd.f32 %v6296_v25, %v6295_v21  ;;  %v6298_v29 = vpop.f32.mrb[6].mxu0  ;;  %973 = vst [vmem:[#allocation2 + $0x54] sm:$0xf] %v6172_v22  ;;  %v6173_v30 = vpack.c.bf16 %v813_v23, %v813_v23  ;;  %v6334_v32 = vpop.f32.mrb[6].mxu1 }
 0x115   : > { %v6333_v31 = vadd.f32 %v6332_v26, %v6331_v24  ;;  %v6299_v33 = vpop.f32.mrb[7].mxu0  ;;  %v6335_v34 = vpop.f32.mrb[7].mxu1 }
 0x116   : > { %962 = vst [vmem:[#allocation2 + $0x10] sm:$0xf] %v6161_v27  ;;  %v682_v35 = vadd.f32 %v6297_v28, %v7415_v0  ;;  %v6300_v36 = vadd.f32 %v6299_v33, %v6298_v29  ;;  %974 = vst [vmem:[#allocation2 + $0x58] sm:$0xf] %v6173_v30  ;;  %v6336_v38 = vadd.f32 %v6335_v34, %v6334_v32  ;;  %v6836_v32 = vld [vmem:[%s9221_s3 + $0xc8] sm:$0xff]  }
 0x117   : > { %v730_v37 = vadd.f32 %v6333_v31, %v7415_v0 }
 0x118   : > { %v802_v39 = vmax.f32 %v682_v35, 0.0  ;;  %v685_v40 = vadd.f32 %v6300_v36, %v7415_v0  ;;  %v733_v42 = vadd.f32 %v6336_v38, %v7415_v0 }
 0x119   : > { %v814_v41 = vmax.f32 %v730_v37, 0.0 }
 0x11a   : > { %v803_v43 = vmax.f32 %v685_v40, 0.0  ;;  %v6301_v44 = vpop.f32.mrb[8].mxu0  ;;  %v815_v46 = vmax.f32 %v733_v42, 0.0  ;;  %v6337_v47 = vpop.f32.mrb[8].mxu1 }
 0x11b   : > { %v6302_v48 = vpop.f32.mrb[9].mxu0  ;;  %v6822_v49 = vld [vmem:[#allocation2 + $0x8] sm:$0xff]   ;;  %v6338_v50 = vpop.f32.mrb[9].mxu1 }
 0x11c   : > { %v6228_v52 = vpack.c.bf16 %v803_v43, %v802_v39  ;;  %v6303_v53 = vadd.f32 %v6302_v48, %v6301_v44  ;;  %v6304_v54 = vpop.f32.mrb[10].mxu0  ;;  %v6243_v55 = vpack.c.bf16 %v815_v46, %v814_v41  ;;  %v6339_v57 = vadd.f32 %v6338_v50, %v6337_v47  ;;  %v6340_v58 = vpop.f32.mrb[10].mxu1  ;;  %1770 = vmatprep.mubr.bf16.mxu1 %v6822_v49  ;;  %v6873_v48 = vld [vmem:[%s9221_s3 + $0x170] sm:$0xff]  }
 0x11d   : > { %v6305_v59 = vpop.f32.mrb[11].mxu0  ;;  %v1199_v60 = vshrl.u32 %v6822_v49, 16  ;;  %v1202_v61 = vshll.u32 %v6822_v49, 16  ;;  %v7428_v62 = vld [vmem:[#allocation2 + $0x10] sm:$0xff]   ;;  %v6341_v4 = vpop.f32.mrb[11].mxu1  ;;  %6557 = vmatprep.subr.bf16.mxu1 %v6873_v48 }
 0x11e   : > { %6265 = vst [vmem:[#allocation2 + $0x18] sm:$0xff] %v6228_v52   ;;  %v690_v63 = vadd.f32 %v6303_v53, %v7415_v0  ;;  %v6306_v1 = vadd.f32 %v6305_v59, %v6304_v54  ;;  %6268 = vst [vmem:[#allocation2 + $0x60] sm:$0xff] %v6243_v55   ;;  %v738_v2 = vadd.f32 %v6339_v57, %v7415_v0  ;;  %v1210_v7 = vshll.u32 %v7428_v62, 16  ;;  %v6839_v54 = vld [vmem:[%s9221_s3 + $0xd0] sm:$0xff]  }
 0x11f   : > { %v1412_v5 = vrot.slane %v1202_v61, 1  ;;  %v7432_v6 = vrot.slane %v1199_v60, 7  ;;  %v1207_v8 = vshrl.u32 %v7428_v62, 16  ;;  %v6342_v12 = vadd.f32 %v6341_v4, %v6340_v58  ;;  %6558 = vmatpush3.bf16.msra.mxu1 %v6873_v48 }
 0x120   : > { %v804_v9 = vmax.f32 %v690_v63, 0.0  ;;  %v693_v10 = vadd.f32 %v6306_v1, %v7415_v0  ;;  %v816_v11 = vmax.f32 %v738_v2, 0.0  ;;  %v1415_v16 = vrot.slane %v1210_v7, 1 }
 0x121   : > { %v1413_v13 = vsel %vm1409_vm3, %v7394_v56, %v1412_v5  ;;  %v1414_v14 = vor.u32 %v1412_v5, %v1199_v60  ;;  %v1204_v15 = vor.u32 %v1202_v61, %v7432_v6  ;;  %v7443_v21 = vrot.slane %v1207_v8, 7 }
 0x122   : > { %v6164_v18 = vpack.c.bf16 %v804_v9, %v804_v9  ;;  %v805_v19 = vmax.f32 %v693_v10, 0.0  ;;  %v6307_v20 = vpop.f32.mrb[12].mxu0  ;;  %6497 = vmatprep.mubr.bf16.mxu0 %v1413_v13  ;;  %v6176_v22 = vpack.c.bf16 %v816_v11, %v816_v11  ;;  %v6343_v23 = vpop.f32.mrb[12].mxu1  ;;  %v741_v26 = vadd.f32 %v6342_v12, %v7415_v0  ;;  %v6840_v13 = vld [vmem:[%s9221_s3 + $0xd8] sm:$0xff]  }
 0x123   : > { %v6308_v24 = vpop.f32.mrb[13].mxu0  ;;  %v1205_v56 = vsel %vm1190_vm0, %v7375_v45, %v1204_v15  ;;  %v1416_v25 = vsel %vm1409_vm3, %v1414_v14, %v1415_v16  ;;  %v6344_v27 = vpop.f32.mrb[13].mxu1  ;;  %v1212_v37 = vor.u32 %v1210_v7, %v7443_v21  ;;  %v1417_v49 = vor.u32 %v1415_v16, %v1207_v8 }
 0x124   : > { %965 = vst [vmem:[#allocation2 + $0x24] sm:$0xf] %v6164_v18  ;;  %v6165_v28 = vpack.c.bf16 %v805_v19, %v805_v19  ;;  %v6309_v29 = vadd.f32 %v6308_v24, %v6307_v20  ;;  %v6310_v30 = vpop.f32.mrb[14].mxu0  ;;  %1771 = vmatmul.mubr.bf16.gmra.mrb[44].mxu1 %v1205_v56  ;;  %6498 = vmatmul.mubr.bf16.vlgmr.msra.gmra.mrb[24].mxu0 %v1416_v25  ;;  %977 = vst [vmem:[#allocation2 + $0x6c] sm:$0xf] %v6176_v22  ;;  %v6346_v31 = vpop.f32.mrb[14].mxu1 }
 0x125   : > { %v6311_v33 = vpop.f32.mrb[15].mxu0  ;;  %1778 = vmatprep.mubr.bf16.mxu1 %v7428_v62  ;;  %v6825_v45 = vld [vmem:[#allocation2 + $0x18] sm:$0xff]   ;;  %v6345_v34 = vadd.f32 %v6344_v27, %v6343_v23  ;;  %2938 = vmatpush1.bf16.msra.mxu0 %v6835_v17  ;;  %v817_v38 = vmax.f32 %v741_v26, 0.0  ;;  %v6347_v39 = vpop.f32.mrb[15].mxu1  ;;  %v1213_v61 = vsel %vm1190_vm0, %v7432_v6, %v1212_v37 }
 0x126   : > { %966 = vst [vmem:[#allocation2 + $0x28] sm:$0xf] %v6165_v28  ;;  %v698_v35 = vadd.f32 %v6309_v29, %v7415_v0  ;;  %v6312_v36 = vadd.f32 %v6311_v33, %v6310_v30  ;;  %2939 = vmatprep.subr.bf16.mxu0 %v9226_v3  ;;  %v1218_v40 = vshll.u32 %v6825_v45, 16  ;;  %v1215_v41 = vshrl.u32 %v6825_v45, 16  ;;  %v6843_v30 = vld [vmem:[%s9221_s3 + $0xe0] sm:$0xff]  }
 0x127   : > { %v746_v42 = vadd.f32 %v6345_v34, %v7415_v0  ;;  %v6348_v43 = vadd.f32 %v6347_v39, %v6346_v31  ;;  %v6177_v47 = vpack.c.bf16 %v817_v38, %v817_v38 }
 0x128   : > { %v806_v44 = vmax.f32 %v698_v35, 0.0  ;;  %v701_v46 = vadd.f32 %v6312_v36, %v7415_v0  ;;  %v1418_v50 = vrot.slane %v1218_v40, 1  ;;  %v7465_v58 = vrot.slane %v1215_v41, 7 }
 0x129   : > { %v818_v52 = vmax.f32 %v746_v42, 0.0  ;;  %v749_v53 = vadd.f32 %v6348_v43, %v7415_v0  ;;  %2940 = vmatpush1.bf16.msra.mxu0 %v6836_v32  ;;  %978 = vst [vmem:[#allocation2 + $0x70] sm:$0xf] %v6177_v47 }
 0x12a   : > { %v807_v55 = vmax.f32 %v701_v46, 0.0  ;;  %v6313_v57 = vpop.f32.mrb[16].mxu0  ;;  %v6349_v59 = vpop.f32.mrb[16].mxu1  ;;  %2941 = vmatprep.subr.bf16.mxu0 %v9226_v3  ;;  %v1419_v62 = vsel %vm1409_vm3, %v1417_v49, %v1418_v50  ;;  %v1420_v16 = vor.u32 %v1418_v50, %v1215_v41  ;;  %v1220_v20 = vor.u32 %v1218_v40, %v7465_v58 }
 0x12b   : > { %v6314_v60 = vpop.f32.mrb[17].mxu0  ;;  %v7471_v63 = vld [vmem:[#allocation2 + $0x20] sm:$0xff]   ;;  %v819_v1 = vmax.f32 %v749_v53, 0.0  ;;  %v6350_v2 = vpop.f32.mrb[17].mxu1  ;;  %6501 = vmatprep.mubr.bf16.mxu0 %v1419_v62 }
 0x12c   : > { %v6233_v4 = vpack.c.bf16 %v807_v55, %v806_v44  ;;  %v6315_v5 = vadd.f32 %v6314_v60, %v6313_v57  ;;  %v6316_v7 = vpop.f32.mrb[18].mxu0  ;;  %1779 = vmatmul.mubr.bf16.gmra.mrb[48].mxu1 %v1213_v61  ;;  %v6351_v8 = vadd.f32 %v6350_v2, %v6349_v59  ;;  %v6352_v9 = vpop.f32.mrb[18].mxu1  ;;  %v1226_v11 = vshll.u32 %v7471_v63, 16 }
 0x12d   : > { %v6317_v10 = vpop.f32.mrb[19].mxu0  ;;  %1786 = vmatprep.mubr.bf16.mxu1 %v6825_v45  ;;  %v7474_v12 = vld [vmem:[#allocation2 + $0x28] sm:$0xff]   ;;  %v6248_v6 = vpack.c.bf16 %v819_v1, %v818_v52  ;;  %2942 = vmatpush1.bf16.msra.mxu0 %v6839_v54  ;;  %v6353_v18 = vpop.f32.mrb[19].mxu1  ;;  %v1223_v22 = vshrl.u32 %v7471_v63, 16  ;;  %v1221_v37 = vsel %vm1190_vm0, %v7443_v21, %v1220_v20  ;;  %v6849_v20 = vld [vmem:[%s9221_s3 + $0xf8] sm:$0xff]  }
 0x12e   : > { %6266 = vst [vmem:[#allocation2 + $0x30] sm:$0xff] %v6233_v4   ;;  %v706_v14 = vadd.f32 %v6315_v5, %v7415_v0  ;;  %v6318_v15 = vadd.f32 %v6317_v10, %v6316_v7  ;;  %v754_v17 = vadd.f32 %v6351_v8, %v7415_v0  ;;  %2943 = vmatprep.subr.bf16.mxu0 %v9226_v3  ;;  %v1421_v19 = vrot.slane %v1226_v11, 1  ;;  %v6844_v21 = vld [vmem:[%s9221_s3 + $0xe8] sm:$0xff]   ;;  %v6848_v7 = vld [vmem:[%s9221_s3 + $0xf0] sm:$0xff]  }
 0x12f   : > { %v1234_v23 = vshll.u32 %v7474_v12, 16  ;;  %6269 = vst [vmem:[#allocation2 + $0x78] sm:$0xff] %v6248_v6   ;;  %v6354_v26 = vadd.f32 %v6353_v18, %v6352_v9  ;;  %v7497_v39 = vrot.slane %v1223_v22, 7  ;;  %v1231_v40 = vshrl.u32 %v7474_v12, 16 }
 0x130   : > { %v808_v24 = vmax.f32 %v706_v14, 0.0  ;;  %v709_v56 = vadd.f32 %v6318_v15, %v7415_v0  ;;  %v820_v25 = vmax.f32 %v754_v17, 0.0  ;;  %v1422_v27 = vsel %vm1409_vm3, %v1420_v16, %v1421_v19 }
 0x131   : > { %v1423_v28 = vor.u32 %v1421_v19, %v1223_v22  ;;  %v1424_v29 = vrot.slane %v1234_v23, 1  ;;  %2944 = vmatpush1.bf16.msra.mxu0 %v6840_v13  ;;  %v757_v34 = vadd.f32 %v6354_v26, %v7415_v0  ;;  %v1228_v59 = vor.u32 %v1226_v11, %v7497_v39 }
 0x132   : > { %v6168_v31 = vpack.c.bf16 %v808_v24, %v808_v24  ;;  %v809_v32 = vmax.f32 %v709_v56, 0.0  ;;  %v6319_v33 = vpop.f32.mrb[20].mxu0  ;;  %6502 = vmatmul.mubr.bf16.gmra.mrb[28].mxu0 %v1422_v27  ;;  %v6180_v45 = vpack.c.bf16 %v820_v25, %v820_v25  ;;  %v6355_v35 = vpop.f32.mrb[20].mxu1  ;;  %2945 = vmatprep.subr.bf16.mxu0 %v9226_v3  ;;  %v7518_v9 = vrot.slane %v1231_v40, 7 }
 0x133   : > { %v6320_v36 = vpop.f32.mrb[21].mxu0  ;;  %v1425_v38 = vsel %vm1409_vm3, %v1423_v28, %v1424_v29  ;;  %v6356_v41 = vpop.f32.mrb[21].mxu1  ;;  %v821_v46 = vmax.f32 %v757_v34, 0.0  ;;  %v1426_v1 = vor.u32 %v1424_v29, %v1231_v40  ;;  %v1229_v11 = vsel %vm1190_vm0, %v7465_v58, %v1228_v59  ;;  %v7536_v29 = vld [vmem:[#allocation2 + $0x50] sm:$0xff]   ;;  %v7546_v34 = vld [vmem:[#allocation2 + $0x58] sm:$0xff]  }
 0x134   : > { %969 = vst [vmem:[#allocation2 + $0x3c] sm:$0xf] %v6168_v31  ;;  %v6169_v42 = vpack.c.bf16 %v809_v32, %v809_v32  ;;  %v6321_v43 = vadd.f32 %v6320_v36, %v6319_v33  ;;  %v6322_v44 = vpop.f32.mrb[22].mxu0  ;;  %1787 = vmatmul.mubr.bf16.gmra.mrb[52].mxu1 %v1221_v37  ;;  %6505 = vmatprep.mubr.bf16.mxu0 %v1425_v38  ;;  %981 = vst [vmem:[#allocation2 + $0x84] sm:$0xf] %v6180_v45  ;;  %v6358_v48 = vpop.f32.mrb[22].mxu1 }
 0x135   : > { %v6357_v47 = vadd.f32 %v6356_v41, %v6355_v35  ;;  %v6323_v49 = vpop.f32.mrb[23].mxu0  ;;  %1794 = vmatprep.mubr.bf16.mxu1 %v7471_v63  ;;  %v7504_v50 = vld [vmem:[#allocation2 + $0x30] sm:$0xff]   ;;  %2946 = vmatpush1.bf16.msra.mxu0 %v6843_v30  ;;  %v6181_v54 = vpack.c.bf16 %v821_v46, %v821_v46  ;;  %v6359_v57 = vpop.f32.mrb[23].mxu1  ;;  %v1236_v30 = vor.u32 %v1234_v23, %v7518_v9  ;;  %v6878_v35 = vld [vmem:[%s9221_s3 + $0x178] sm:$0xff]   ;;  %v6852_v37 = vld [vmem:[%s9221_s3 + $0x100] sm:$0xff]  }
 0x136   : > { %970 = vst [vmem:[#allocation2 + $0x40] sm:$0xf] %v6169_v42  ;;  %v714_v52 = vadd.f32 %v6321_v43, %v7415_v0  ;;  %v6324_v53 = vadd.f32 %v6323_v49, %v6322_v44  ;;  %2947 = vmatprep.subr.bf16.mxu0 %v9226_v3  ;;  %v1242_v60 = vshll.u32 %v7504_v50, 16  ;;  %v6360_v61 = vadd.f32 %v6359_v57, %v6358_v48  ;;  %v7568_v49 = vld [vmem:[#allocation2 + $0x60] sm:$0xff]  }
 0x137   : > { %v762_v55 = vadd.f32 %v6357_v47, %v7415_v0  ;;  %982 = vst [vmem:[#allocation2 + $0x88] sm:$0xf] %v6181_v54  ;;  %v1239_v15 = vshrl.u32 %v7504_v50, 16  ;;  %v1274_v42 = vshll.u32 %v7536_v29, 16  ;;  %v1271_v43 = vshrl.u32 %v7536_v29, 16  ;;  %6559 = vmatprep.subr.bf16.mxu1 %v6878_v35 }
 0x138   : > { %v810_v62 = vmax.f32 %v714_v52, 0.0  ;;  %v717_v63 = vadd.f32 %v6324_v53, %v7415_v0  ;;  %v1427_v2 = vrot.slane %v1242_v60, 1  ;;  %v765_v5 = vadd.f32 %v6360_v61, %v7415_v0  ;;  %v6853_v52 = vld [vmem:[%s9221_s3 + $0x108] sm:$0xff]   ;;  %6560 = vmatpush3.bf16.msra.mxu1 %v6878_v35 }
 0x139   : > { %v822_v4 = vmax.f32 %v762_v55, 0.0  ;;  %2948 = vmatpush1.bf16.msra.mxu0 %v6844_v21  ;;  %v1237_v44 = vsel %vm1190_vm0, %v7497_v39, %v1236_v30  ;;  %v7565_v48 = vrot.slane %v1239_v15, 7  ;;  %v1282_v55 = vshll.u32 %v7546_v34, 16  ;;  %4241 = vmatprep.subr.bf16.mxu1 %v9226_v3 }
 0x13a   : > { %v811_v8 = vmax.f32 %v717_v63, 0.0  ;;  %v6361_v10 = vpop.f32.mrb[24].mxu1  ;;  %2949 = vmatprep.subr.bf16.mxu0 %v9226_v3  ;;  %v1428_v6 = vsel %vm1409_vm3, %v1426_v1, %v1427_v2  ;;  %v823_v13 = vmax.f32 %v765_v5, 0.0  ;;  %v1429_v24 = vor.u32 %v1427_v2, %v1239_v15  ;;  %v7580_v1 = vld [vmem:[#allocation2 + $0x68] sm:$0xff]   ;;  %v6856_v15 = vld [vmem:[%s9221_s3 + $0x110] sm:$0xff]  }
 0x13b   : > { %v7524_v14 = vld [vmem:[#allocation2 + $0x38] sm:$0xff]   ;;  %v6362_v16 = vpop.f32.mrb[25].mxu1  ;;  %6506 = vmatmul.mubr.bf16.gmra.mrb[32].mxu0 %v1428_v6  ;;  %v1439_v63 = vrot.slane %v1274_v42, 1  ;;  %v1244_v2 = vor.u32 %v1242_v60, %v7565_v48  ;;  %v1442_v6 = vrot.slane %v1282_v55, 1  ;;  %v1279_v60 = vshrl.u32 %v7546_v34, 16 }
 0x13c   : > { %v6238_v17 = vpack.c.bf16 %v811_v8, %v810_v62  ;;  %1795 = vmatmul.mubr.bf16.gmra.mrb[56].mxu1 %v1229_v11  ;;  %v6363_v18 = vadd.f32 %v6362_v16, %v6361_v10  ;;  %v6364_v19 = vpop.f32.mrb[26].mxu1  ;;  %v6253_v58 = vpack.c.bf16 %v823_v13, %v822_v4  ;;  %v1250_v22 = vshll.u32 %v7524_v14, 16 }
 0x13d   : > { %1802 = vmatprep.mubr.bf16.mxu1 %v7474_v12  ;;  %v7532_v56 = vld [vmem:[#allocation2 + $0x40] sm:$0xff]   ;;  %v1247_v25 = vshrl.u32 %v7524_v14, 16  ;;  %v6365_v26 = vpop.f32.mrb[27].mxu1  ;;  %2950 = vmatpush1.bf16.msra.mxu0 %v6848_v7  ;;  %v1441_v11 = vor.u32 %v1439_v63, %v1271_v43  ;;  %v1290_v13 = vshll.u32 %v7568_v49, 16 }
 0x13e   : > { %6267 = vst [vmem:[#allocation2 + $0x48] sm:$0xff] %v6238_v17   ;;  %v770_v27 = vadd.f32 %v6363_v18, %v7415_v0  ;;  %v6366_v28 = vadd.f32 %v6365_v26, %v6364_v19  ;;  %2951 = vmatprep.subr.bf16.mxu0 %v9226_v3  ;;  %6270 = vst [vmem:[#allocation2 + $0x90] sm:$0xff] %v6253_v58   ;;  %v1430_v31 = vrot.slane %v1250_v22, 1  ;;  %v1258_v32 = vshll.u32 %v7532_v56, 16 }
 0x13f   : > { %v1255_v21 = vshrl.u32 %v7532_v56, 16  ;;  %v1287_v18 = vshrl.u32 %v7568_v49, 16  ;;  %v1298_v19 = vshll.u32 %v7580_v1, 16  ;;  %v1445_v35 = vrot.slane %v1290_v13, 1 }
 0x140   : > { %v824_v33 = vmax.f32 %v770_v27, 0.0  ;;  %v773_v45 = vadd.f32 %v6366_v28, %v7415_v0  ;;  %v1431_v36 = vsel %vm1409_vm3, %v1429_v24, %v1430_v31  ;;  %v1432_v12 = vor.u32 %v1430_v31, %v1247_v25 }
 0x141   : > { %v1433_v23 = vrot.slane %v1258_v32, 1  ;;  %2952 = vmatpush1.bf16.msra.mxu0 %v6849_v20  ;;  %6509 = vmatprep.mubr.bf16.mxu0 %v1431_v36  ;;  %v1245_v20 = vsel %vm1190_vm0, %v7518_v9, %v1244_v2  ;;  %v7613_v27 = vrot.slane %v1247_v25, 7  ;;  %v7620_v36 = vld [vmem:[#allocation2 + $0x70] sm:$0xff]   ;;  %v6857_v25 = vld [vmem:[%s9221_s3 + $0x118] sm:$0xff]  }
 0x142   : > { %v6184_v38 = vpack.c.bf16 %v824_v33, %v824_v33  ;;  %v825_v40 = vmax.f32 %v773_v45, 0.0  ;;  %v6367_v41 = vpop.f32.mrb[28].mxu1  ;;  %2953 = vmatprep.subr.bf16.mxu0 %v9226_v3  ;;  %v1443_v33 = vsel %vm1409_vm3, %v1441_v11, %v1442_v6  ;;  %v1303_v11 = vshrl.u32 %v7620_v36, 16 }
 0x143   : > { %v1434_v46 = vsel %vm1409_vm3, %v1432_v12, %v1433_v23  ;;  %v6368_v47 = vpop.f32.mrb[29].mxu1  ;;  %v1435_v5 = vor.u32 %v1433_v23, %v1255_v21 }
 0x144   : > { %1803 = vmatmul.mubr.bf16.gmra.mrb[60].mxu1 %v1237_v44  ;;  %985 = vst [vmem:[#allocation2 + $0x9c] sm:$0xf] %v6184_v38  ;;  %6510 = vmatmul.mubr.bf16.gmra.mrb[36].mxu0 %v1434_v46  ;;  %v6185_v53 = vpack.c.bf16 %v825_v40, %v825_v40  ;;  %v6369_v54 = vadd.f32 %v6368_v47, %v6367_v41  ;;  %v6370_v39 = vpop.f32.mrb[30].mxu1  ;;  %v1448_v41 = vrot.slane %v1298_v19, 1  ;;  %v7637_v47 = vld [vmem:[#allocation2 + $0x78] sm:$0xff]  }
 0x145   : > { %1810 = vmatprep.mubr.bf16.mxu1 %v7504_v50  ;;  %v6371_v57 = vpop.f32.mrb[31].mxu1  ;;  %v7575_v59 = vld [vmem:[#allocation2 + $0x48] sm:$0xff]   ;;  %2954 = vmatpush1.bf16.msra.mxu0 %v6852_v37  ;;  %v1252_v37 = vor.u32 %v1250_v22, %v7613_v27  ;;  %v1444_v38 = vor.u32 %v1442_v6, %v1279_v60  ;;  %v1447_v40 = vor.u32 %v1445_v35, %v1287_v18  ;;  %v6861_v22 = vld [vmem:[%s9221_s3 + $0x120] sm:$0xff]   ;;  %v1314_v6 = vshll.u32 %v7637_v47, 16 }
 0x146   : > { %986 = vst [vmem:[#allocation2 + $0xa0] sm:$0xf] %v6185_v53  ;;  %v778_v61 = vadd.f32 %v6369_v54, %v7415_v0  ;;  %v6372_v62 = vadd.f32 %v6371_v57, %v6370_v39  ;;  %2955 = vmatprep.subr.bf16.mxu0 %v9226_v3  ;;  %v1266_v4 = vshll.u32 %v7575_v59, 16  ;;  %v1263_v7 = vshrl.u32 %v7575_v59, 16 }
 0x147   : > { %v1449_v2 = vsel %vm1409_vm3, %v1447_v40, %v1448_v41  ;;  %v7700_v40 = vld [vmem:[%s9221_s3 + $0x200] sm:$0xff]  }
 0x148   : > { %v826_v8 = vmax.f32 %v778_v61, 0.0  ;;  %v781_v10 = vadd.f32 %v6372_v62, %v7415_v0  ;;  %v1436_v50 = vrot.slane %v1266_v4, 1  ;;  %v1253_v61 = vsel %vm1190_vm0, %v7565_v48, %v1252_v37  ;;  %v6862_v48 = vld [vmem:[%s9221_s3 + $0x128] sm:$0xff]  }
 0x149   : > { %2956 = vmatpush1.bf16.msra.mxu0 %v6853_v52  ;;  %v1295_v52 = vshrl.u32 %v7580_v1, 16  ;;  %v1446_v62 = vsel %vm1409_vm3, %v1444_v38, %v1445_v35  ;;  %v1311_v35 = vshrl.u32 %v7637_v47, 16  ;;  %v7694_v38 = vld [vmem:[#allocation2 + $0x90] sm:$0xff]  }
 0x14a   : > { %v827_v16 = vmax.f32 %v781_v10, 0.0  ;;  %v6373_v17 = vpop.f32.mrb[32].mxu1  ;;  %2957 = vmatprep.subr.bf16.mxu0 %v9226_v3  ;;  %v1437_v58 = vsel %vm1409_vm3, %v1435_v5, %v1436_v50  ;;  %v1438_v26 = vor.u32 %v1436_v50, %v1263_v7 }
 0x14b   : > { %v6374_v24 = vpop.f32.mrb[33].mxu1  ;;  %6513 = vmatprep.mubr.bf16.mxu0 %v1437_v58  ;;  %v1450_v58 = vor.u32 %v1448_v41, %v1295_v52 }
 0x14c   : > { %v6258_v28 = vpack.c.bf16 %v827_v16, %v826_v8  ;;  %1811 = vmatmul.mubr.bf16.gmra.mrb[64].mxu1 %v1245_v20  ;;  %v6375_v30 = vadd.f32 %v6374_v24, %v6373_v17  ;;  %v6376_v31 = vpop.f32.mrb[34].mxu1  ;;  %v1440_v9 = vsel %vm1409_vm3, %v1438_v26, %v1439_v63  ;;  %v1257_v63 = vrot.slane %v1255_v21, 7  ;;  %v7660_v17 = vld [vmem:[#allocation2 + $0x80] sm:$0xff]  }
 0x14d   : > { %1818 = vmatprep.mubr.bf16.mxu1 %v7524_v14  ;;  %v6377_v45 = vpop.f32.mrb[35].mxu1  ;;  %2958 = vmatpush1.bf16.msra.mxu0 %v6856_v15  ;;  %v1306_v14 = vshll.u32 %v7620_v36, 16 }
 0x14e   : > { %6271 = vst [vmem:[#allocation2 + $0xa8] sm:$0xff] %v6258_v28   ;;  %v786_v12 = vadd.f32 %v6375_v30, %v7415_v0  ;;  %6514 = vmatmul.mubr.bf16.gmra.mrb[40].mxu0 %v1440_v9  ;;  %v6378_v23 = vadd.f32 %v6377_v45, %v6376_v31  ;;  %2959 = vmatprep.subr.bf16.mxu0 %v9226_v3  ;;  %v1454_v30 = vrot.slane %v1314_v6, 1  ;;  %v7672_v31 = vld [vmem:[#allocation2 + $0x88] sm:$0xff]   ;;  %v1265_v45 = vrot.slane %v1263_v7, 7 }
 0x14f   : > { %6517 = vmatprep.mubr.bf16.mxu0 %v1443_v33  ;;  %v1451_v16 = vrot.slane %v1306_v14, 1  ;;  %v1260_v20 = vor.u32 %v1258_v32, %v1257_v63  ;;  %v9233_v33 = vshll.u32 %v7660_v17, 16  ;;  %v9231_v37 = vshll.u32 %v7672_v31, 16 }
 0x150   : > { %v828_v44 = vmax.f32 %v786_v12, 0.0  ;;  %v789_v46 = vadd.f32 %v6378_v23, %v7415_v0  ;;  %v1319_v23 = vshrl.u32 %v7660_v17, 16  ;;  %v1268_v41 = vor.u32 %v1266_v4, %v1265_v45 }
 0x151   : > { %2960 = vmatpush1.bf16.msra.mxu0 %v6857_v25  ;;  %v1453_v28 = vor.u32 %v1451_v16, %v1303_v11  ;;  %v1452_v9 = vsel %vm1409_vm3, %v1450_v58, %v1451_v16  ;;  %v1457_v7 = vrot.slane %v9233_v33, 1 }
 0x152   : > { %v6188_v53 = vpack.c.bf16 %v828_v44, %v828_v44  ;;  %v829_v54 = vmax.f32 %v789_v46, 0.0  ;;  %v6379_v39 = vpop.f32.mrb[36].mxu1  ;;  %2961 = vmatprep.subr.bf16.mxu0 %v9226_v3  ;;  %v1456_v44 = vor.u32 %v1454_v30, %v1311_v35  ;;  %v7708_v46 = vrot.slane %v1271_v43, 7 }
 0x153   : > { %v6380_v57 = vpop.f32.mrb[37].mxu1  ;;  %v1455_v12 = vsel %vm1409_vm3, %v1453_v28, %v1454_v30  ;;  %v1269_v4 = vsel %vm1190_vm0, %v1257_v63, %v1268_v41 }
 0x154   : > { %989 = vst [vmem:[#allocation2 + $0xb4] sm:$0xf] %v6188_v53  ;;  %v6189_v5 = vpack.c.bf16 %v829_v54, %v829_v54  ;;  %v6381_v8 = vadd.f32 %v6380_v57, %v6379_v39  ;;  %v6382_v10 = vpop.f32.mrb[38].mxu1  ;;  %1819 = vmatmul.mubr.bf16.gmra.mrb[68].mxu1 %v1253_v61  ;;  %v1460_v53 = vrot.slane %v9231_v37, 1  ;;  %v7714_v54 = vld [vmem:[#allocation2 + $0x98] sm:$0xff]   ;;  %v1458_v39 = vsel %vm1409_vm3, %v1456_v44, %v1457_v7 }
 0x155   : > { %v6383_v50 = vpop.f32.mrb[39].mxu1  ;;  %1826 = vmatprep.mubr.bf16.mxu1 %v7532_v56  ;;  %2962 = vmatpush1.bf16.msra.mxu0 %v6861_v22  ;;  %v6863_v56 = vld [vmem:[%s9221_s3 + $0x130] sm:$0xff]   ;;  %v1459_v22 = vor.u32 %v1457_v7, %v1319_v23  ;;  %v1276_v43 = vor.u32 %v1274_v42, %v7708_v46  ;;  %v9232_v57 = vshrl.u32 %v7672_v31, 16  ;;  %v7730_v63 = vld [vmem:[#allocation2 + $0xa8] sm:$0xff]  }
 0x156   : > { %990 = vst [vmem:[#allocation2 + $0xb8] sm:$0xf] %v6189_v5  ;;  %v794_v21 = vadd.f32 %v6381_v8, %v7415_v0  ;;  %v6384_v15 = vadd.f32 %v6383_v50, %v6382_v10  ;;  %6518 = vmatmul.mubr.bf16.gmra.mrb[44].mxu0 %v1446_v62  ;;  %2963 = vmatprep.subr.bf16.mxu0 %v9226_v3  ;;  %v2229_v61 = vld [vmem:[#allocation2 + $0x10] sm:$0xf]  ;;  %v9228_v5 = vshll.u32 %v7714_v54, 16  ;;  %v7727_v8 = vld [vmem:[#allocation2 + $0xa0] sm:$0xff]  }
 0x157   : > { %6521 = vmatprep.mubr.bf16.mxu0 %v1449_v2  ;;  %v1461_v62 = vsel %vm1409_vm3, %v1459_v22, %v1460_v53  ;;  %v9230_v2 = vshrl.u32 %v7694_v38, 16  ;;  %v2228_v10 = vld [vmem:[#allocation2 + $0xc] sm:$0xf]  ;;  %v7736_v50 = vrot.slane %v1279_v60, 7  ;;  %v1277_v16 = vsel %vm1190_vm0, %v1265_v45, %v1276_v43  ;;  %v6968_v45 = vld [vmem:[#allocation2 + $0xbc] sm:$0xf] }
 0x158   : > { %v830_v24 = vmax.f32 %v794_v21, 0.0  ;;  %v797_v26 = vadd.f32 %v6384_v15, %v7415_v0  ;;  %v1261_v0 = vsel %vm1190_vm0, %v7613_v27, %v1260_v20  ;;  %v6866_v27 = vld [vmem:[%s9221_s3 + $0x138] sm:$0xff]   ;;  %v7739_v21 = vcombine.low %v2228_v10, %v2229_v61 }
 0x159   : > { %2964 = vmatpush1.bf16.msra.mxu0 %v6862_v48  ;;  %v1351_v48 = vshrl.u32 %v7727_v8, 16  ;;  %v7741_v15 = vld [vmem:[#allocation2 + $0x14] sm:$0xff]   ;;  %v1359_v58 = vshrl.u32 %v7730_v63, 16  ;;  %v1354_v28 = vshll.u32 %v7727_v8, 16 }
 0x15a   : > { %v831_v32 = vmax.f32 %v797_v26, 0.0  ;;  %2965 = vmatprep.subr.bf16.mxu0 %v9226_v3  ;;  %v1466_v26 = vrot.slane %v9228_v5, 1  ;;  %v7767_v61 = vpop.f32.mrb[40].mxu1  ;;  %v2410_v10 = vshrl.u32 %v7741_v15, 16  ;;  %v1284_v5 = vor.u32 %v1282_v55, %v7736_v50 }
 0x15b   : > { %v7746_v20 = vld [vmem:[#allocation2 + $0xb0] sm:$0xff]   ;;  %v1353_v30 = vrot.slane %v1351_v48, 7 }
 0x15c   : > { %v6263_v25 = vpack.c.bf16 %v831_v32, %v830_v24  ;;  %1827 = vmatmul.mubr.bf16.gmra.mrb[72].mxu1 %v1261_v0  ;;  %v1362_v32 = vshll.u32 %v7730_v63, 16  ;;  %v1367_v0 = vshrl.u32 %v7746_v20, 16  ;;  %v1370_v44 = vshll.u32 %v7746_v20, 16 }
 0x15d   : > { %1834 = vmatprep.mubr.bf16.mxu1 %v7575_v59  ;;  %2966 = vmatpush1.bf16.msra.mxu0 %v6863_v56  ;;  %v9229_v59 = vshll.u32 %v7694_v38, 16  ;;  %v1062_v24 = vld [vmem:[#allocation2 + $0xb8] sm:$0xf]  ;;  %v1343_v56 = vshrl.u32 %v7714_v54, 16  ;;  %v7761_v7 = vor.u32 %v1354_v28, %v1353_v30  ;;  %v1285_v55 = vsel %vm1190_vm0, %v7708_v46, %v1284_v5 }
 0x15e   : > { %6272 = vst [vmem:[#allocation2 + $0xc0] sm:$0xff] %v6263_v25   ;;  %6522 = vmatmul.mubr.bf16.gmra.mrb[48].mxu0 %v1452_v9  ;;  %2967 = vmatprep.subr.bf16.mxu0 %v9226_v3  ;;  %v1361_v9 = vrot.slane %v1359_v58, 7  ;;  %v7757_v25 = vcombine.low %v1062_v24, %v6968_v45  ;;  %v1766_v24 = vpop.f32.mrb[41].mxu1 }
 0x15f   : > { %6525 = vmatprep.mubr.bf16.mxu0 %v1455_v12  ;;  %v1463_v42 = vrot.slane %v9229_v59, 1  ;;  %v2406_v12 = vshll.u32 %v7739_v21, 16  ;;  %v7780_v3 = vpop.f32.mrb[42].mxu1  ;;  %v1472_v59 = vrot.slane %v1362_v32, 1 }
 0x160   : > { %v1364_v22 = vor.u32 %v1362_v32, %v1361_v9  ;;  %v1375_v43 = vshrl.u32 %v7757_v25, 16  ;;  %v1769_v24 = vpop.f32.mrb[43].mxu1 }
 0x161   : > { %2968 = vmatpush1.bf16.msra.mxu0 %v6866_v27  ;;  %v1465_v60 = vor.u32 %v1463_v42, %v9230_v2  ;;  %v2413_v27 = vshll.u32 %v7741_v15, 16 }
 0x162   : > { %6609 = vmatprep.subr.bf16.mxu0 %v7700_v40 }
 0x163   : > { %v2620_v45 = vrot.slane %v2413_v27, 1 }
 0x164   : > { %1835 = vmatmul.mubr.bf16.gmra.mrb[76].mxu1 %v1269_v4  ;;  %v1467_v4 = vsel %vm1409_vm3, %v1465_v60, %v1466_v26  ;;  %v1377_v60 = vrot.slane %v1375_v43, 7 }
 0x165   : > { %1842 = vmatprep.mubr.bf16.mxu1 %v7536_v29  ;;  %v1462_v29 = vor.u32 %v1460_v53, %v9232_v57  ;;  %v1369_v53 = vrot.slane %v1367_v0, 7  ;;  %v7792_v57 = vor.u32 %v2620_v45, %v2410_v10 }
 0x166   : > { %6526 = vmatmul.mubr.bf16.gmra.mrb[52].mxu0 %v1458_v39  ;;  %v1469_v39 = vrot.slane %v1354_v28, 1  ;;  %v2618_v28 = vrot.slane %v2406_v12, 1 }
 0x167   : > { %6529 = vmatprep.mubr.bf16.mxu0 %v1461_v62  ;;  %v1464_v41 = vsel %vm1409_vm3, %v1462_v29, %v1463_v42  ;;  %v2403_v62 = vshrl.u32 %v7739_v21, 16  ;;  %v7773_v42 = vsel %vm1190_vm0, %v1353_v30, %v1364_v22  ;;  %v1372_v29 = vor.u32 %v1370_v44, %v1369_v53 }
 0x168   : > { %v1468_v30 = vor.u32 %v1466_v26, %v1343_v56  ;;  %v1289_v26 = vrot.slane %v1287_v18, 7 }
 0x169   : > { %v7788_v22 = vsel %vm1190_vm0, %v1361_v9, %v1372_v29  ;;  %v2619_v37 = vor.u32 %v2618_v28, %v2403_v62  ;;  %v1475_v9 = vrot.slane %v1370_v44, 1 }
 0x16b   : > { %v1477_v46 = vor.u32 %v1475_v9, %v1367_v0 }
 0x16c   : > { %1843 = vmatmul.mubr.bf16.gmra.mrb[80].mxu1 %v1277_v16  ;;  %v1378_v16 = vshll.u32 %v7757_v25, 16 }
 0x16d   : > { %1850 = vmatprep.mubr.bf16.mxu1 %v7546_v34  ;;  %v7798_v34 = vsel %vm1409_vm3, %v2619_v37, %v2620_v45  ;;  %v1292_v37 = vor.u32 %v1290_v13, %v1289_v26 }
 0x16e   : > { %6530 = vmatmul.mubr.bf16.gmra.mrb[56].mxu0 %v1464_v41  ;;  %v1471_v41 = vor.u32 %v1469_v39, %v1351_v48  ;;  %v1380_v2 = vor.u32 %v1378_v16, %v1377_v60  ;;  %v1470_v48 = vsel %vm1409_vm3, %v1468_v30, %v1469_v39  ;;  %v1478_v5 = vrot.slane %v1378_v16, 1 }
 0x16f   : > { %6533 = vmatprep.mubr.bf16.mxu0 %v1467_v4  ;;  %v1474_v4 = vor.u32 %v1472_v59, %v1359_v58  ;;  %v1293_v18 = vsel %vm1190_vm0, %v7736_v50, %v1292_v37  ;;  %v1297_v60 = vrot.slane %v1295_v52, 7  ;;  %v9269_v37 = vshrl.u32 %v7672_v31, 16  ;;  %v6959_v52 = vld [vmem:[%s9223_s5 + $0x50] ss:$8 sps:$4 sm:$0xff]  }
 0x170   : > { %v7795_v33 = vsel %vm1190_vm0, %v1369_v53, %v1380_v2  ;;  %v1473_v32 = vsel %vm1409_vm3, %v1471_v41, %v1472_v59  ;;  %v6969_v2 = vld [vmem:[#allocation2] sm:$0xf]  ;;  %v1479_v44 = vsel %vm1409_vm3, %v1477_v46, %v1478_v5  ;;  %v1480_v59 = vor.u32 %v1478_v5, %v1375_v43  ;;  %v7890_v5 = vld [vmem:[#allocation2 + $0x2c] sm:$0xff]  }
 0x171   : > { %v5884_v53 = vcombine.low %v6969_v2, %v6969_v2  ;;  %v1476_v29 = vsel %vm1409_vm3, %v1474_v4, %v1475_v9  ;;  %v1300_v13 = vor.u32 %v1298_v19, %v1297_v60  ;;  %v2405_v19 = vrot.slane %v2403_v62, 7  ;;  %v6881_v62 = vld [vmem:[%s9221_s3 + $0x208] sm:$0xff]  }
 0x172   : > { %v1329_v4 = vrot.slane %v9269_v37, 7 }
 0x173   : > { %v1507_v39 = vshll.u32 %v5884_v53, 16  ;;  %v1301_v0 = vsel %vm1190_vm0, %v1289_v26, %v1300_v13  ;;  %v2408_v30 = vor.u32 %v2406_v12, %v2405_v19  ;;  %v6888_v12 = vld [vmem:[%s9221_s3 + $0x210] sm:$0xff]  }
 0x174   : > { %1851 = vmatmul.mubr.bf16.gmra.mrb[84].mxu1 %v1285_v55 }
 0x175   : > { %1858 = vmatprep.mubr.bf16.mxu1 %v7568_v49  ;;  %v7816_v49 = vld [vmem:[#allocation2 + $0xc8] sm:$0xf]  ;;  %v1509_v58 = vrot.slane %v1507_v39, 1  ;;  %v9270_v39 = vshll.u32 %v7672_v31, 16 }
 0x176   : > { %6534 = vmatmul.mubr.bf16.gmra.mrb[60].mxu0 %v1470_v48  ;;  %v5909_v50 = vcombine.low %v7816_v49, %v7816_v49  ;;  %v1321_v48 = vrot.slane %v1319_v23, 7  ;;  %v9268_v23 = vshll.u32 %v7660_v17, 16 }
 0x177   : > { %6537 = vmatprep.mubr.bf16.mxu0 %v1473_v32  ;;  %v1513_v16 = vsel %vm7823_vm5, %v1480_v59, %v1509_v58  ;;  %v6904_v32 = vld [vmem:[%s9221_s3 + $0x220] sm:$0xff]   ;;  %v9271_v59 = vshrl.u32 %v7694_v38, 16 }
 0x178   : > { %v2280_v43 = vshrl.u32 %v5909_v50, 16 }
 0x179   : > { %v1337_v58 = vrot.slane %v9271_v59, 7 }
 0x17a   : > { %v2282_v45 = vrot.slane %v2280_v43, 3 }
 0x17c   : > { %1859 = vmatmul.mubr.bf16.gmra.mrb[88].mxu1 %v1293_v18  ;;  %v1332_v18 = vor.u32 %v9270_v39, %v1329_v4 }
 0x17d   : > { %1866 = vmatprep.mubr.bf16.mxu1 %v7580_v1  ;;  %v1305_v1 = vrot.slane %v1303_v11, 7  ;;  %v1313_v11 = vrot.slane %v1311_v35, 7 }
 0x17e   : > { %6538 = vmatmul.mubr.bf16.gmra.mrb[64].mxu0 %v1476_v29  ;;  %v1333_v13 = vsel %vm1190_vm0, %v1321_v48, %v1332_v18 }
 0x17f   : > { %6541 = vmatprep.mubr.bf16.mxu0 %v1479_v44  ;;  %v1308_v28 = vor.u32 %v1306_v14, %v1305_v1  ;;  %v2412_v14 = vrot.slane %v2410_v10, 7  ;;  %v1316_v35 = vor.u32 %v1314_v6, %v1313_v11  ;;  %v2434_v44 = vshrl.u32 %v7890_v5, 16 }
 0x181   : > { %v1309_v41 = vsel %vm1190_vm0, %v1297_v60, %v1308_v28  ;;  %v2415_v24 = vor.u32 %v2413_v27, %v2412_v14  ;;  %v1317_v55 = vsel %vm1190_vm0, %v1305_v1, %v1316_v35  ;;  %v1324_v27 = vor.u32 %v9268_v23, %v1321_v48 }
 0x183   : > { %v2416_v6 = vsel %vm1190_vm0, %v2405_v19, %v2415_v24  ;;  %v1325_v53 = vsel %vm1190_vm0, %v1313_v11, %v1324_v27  ;;  %v2437_v19 = vshll.u32 %v7890_v5, 16  ;;  %v7922_v11 = vld [vmem:[#allocation2 + $0x3c] sm:$0xff]  }
 0x184   : > { %1867 = vmatmul.mubr.bf16.gmra.mrb[92].mxu1 %v1301_v0  ;;  %v7906_v0 = vld [vmem:[#allocation2 + $0x34] sm:$0xff]  }
 0x185   : > { %1874 = vmatprep.mubr.bf16.mxu1 %v7620_v36  ;;  %v2617_v36 = vsel %vm7382_vm2, %v2282_v45, %v2408_v30  ;;  %v2442_v28 = vshrl.u32 %v7906_v0, 16  ;;  %v1345_v30 = vrot.slane %v1343_v56, 7  ;;  %v6914_v56 = vld [vmem:[%s9221_s3 + $0x228] sm:$0xff]   ;;  %v7934_v24 = vld [vmem:[#allocation2 + $0xb8] sm:$0xff]  }
 0x186   : > { %6542 = vmatmul.mubr.bf16.gmra.mrb[68].mxu0 %v1513_v16  ;;  %v9272_v16 = vshll.u32 %v7694_v38, 16  ;;  %v9238_v23 = vshrl.u32 %v7934_v24, 16  ;;  %v9239_v27 = vshll.u32 %v7934_v24, 16 }
 0x187   : > { %2969 = vmatprep.mubr.bf16.mxu0 %v7739_v21  ;;  %v7849_v21 = vld [vmem:[#allocation2 + $0x1c] sm:$0xff]  }
 0x188   : > { %v2418_v10 = vshrl.u32 %v7849_v21, 16  ;;  %v2421_v26 = vshll.u32 %v7849_v21, 16  ;;  %v1340_v1 = vor.u32 %v9272_v16, %v1337_v58  ;;  %v7988_v16 = vld [vmem:[#allocation2 + $0x54] sm:$0xff]  }
 0x18a   : > { %v1341_v45 = vsel %vm1190_vm0, %v1329_v4, %v1340_v1  ;;  %v6921_v1 = vld [vmem:[%s9221_s3 + $0x230] sm:$0xff]  }
 0x18c   : > { %1875 = vmatmul.mubr.bf16.gmra.mrb[96].mxu1 %v1309_v41 }
 0x18d   : > { %1882 = vmatprep.mubr.bf16.mxu1 %v7637_v47  ;;  %v6896_v47 = vld [vmem:[%s9221_s3 + $0x218] sm:$0xff]  }
 0x18e   : > { %2970 = vmatmul.mubr.bf16.vlgmr.msra.gmra.mrb[72].mxu0 %v2617_v36 }
 0x18f   : > { %2977 = vmatprep.mubr.bf16.mxu0 %v7741_v15  ;;  %6610 = vmatpush3.bf16.msra.mxu0 %v7700_v40  ;;  %v2420_v40 = vrot.slane %v2418_v10, 7  ;;  %v7871_v15 = vld [vmem:[#allocation2 + $0x24] sm:$0xff]  }
 0x190   : > { %6611 = vmatprep.subr.bf16.mxu0 %v6881_v62  ;;  %v2426_v2 = vshrl.u32 %v7871_v15, 16  ;;  %v2429_v29 = vshll.u32 %v7871_v15, 16 }
 0x191   : > { %v2423_v9 = vor.u32 %v2421_v26, %v2420_v40 }
 0x192   : > { %v2428_v46 = vrot.slane %v2426_v2, 7 }
 0x193   : > { %6612 = vmatpush3.bf16.msra.mxu0 %v6881_v62  ;;  %v9273_v62 = vshll.u32 %v7714_v54, 16 }
 0x194   : > { %1883 = vmatmul.mubr.bf16.gmra.mrb[100].mxu1 %v1317_v55  ;;  %6613 = vmatprep.subr.bf16.mxu0 %v6888_v12  ;;  %v2431_v60 = vor.u32 %v2429_v29, %v2428_v46 }
 0x195   : > { %1890 = vmatprep.mubr.bf16.mxu1 %v7660_v17  ;;  %v2424_v17 = vsel %vm1190_vm0, %v2412_v14, %v2423_v9  ;;  %v1348_v36 = vor.u32 %v9273_v62, %v1345_v30  ;;  %v2445_v14 = vshll.u32 %v7906_v0, 16  ;;  %v8007_v62 = vld [vmem:[#allocation2 + $0x5c] sm:$0xff]  }
 0x196   : > { %2978 = vmatmul.mubr.bf16.gmra.mrb[76].mxu0 %v2416_v6  ;;  %v2432_v50 = vsel %vm1190_vm0, %v2420_v40, %v2431_v60  ;;  %v2453_v6 = vshll.u32 %v7922_v11, 16  ;;  %v7944_v40 = vld [vmem:[#allocation2 + $0x44] sm:$0xff]  }
 0x197   : > { %2985 = vmatprep.mubr.bf16.mxu0 %v7849_v21  ;;  %6614 = vmatpush3.bf16.msra.mxu0 %v6888_v12  ;;  %v2450_v12 = vshrl.u32 %v7922_v11, 16  ;;  %v1349_v55 = vsel %vm1190_vm0, %v1337_v58, %v1348_v36  ;;  %v2461_v60 = vshll.u32 %v7944_v40, 16  ;;  %v9276_v21 = vmov 0  }
 0x198   : > { %6615 = vmatprep.subr.bf16.mxu0 %v6896_v47 }
 0x19b   : > { %6616 = vmatpush3.bf16.msra.mxu0 %v6896_v47  ;;  %v2452_v47 = vrot.slane %v2450_v12, 7 }
 0x19c   : > { %1891 = vmatmul.mubr.bf16.gmra.mrb[104].mxu1 %v1325_v53  ;;  %6617 = vmatprep.subr.bf16.mxu0 %v6904_v32  ;;  %v2458_v53 = vshrl.u32 %v7944_v40, 16 }
 0x19d   : > { %1898 = vmatprep.mubr.bf16.mxu1 %v7672_v31  ;;  %v2436_v31 = vrot.slane %v2434_v44, 7  ;;  %v2455_v9 = vor.u32 %v2453_v6, %v2452_v47 }
 0x19e   : > { %2986 = vmatmul.mubr.bf16.gmra.mrb[80].mxu0 %v2424_v17  ;;  %v1357_v17 = vsel %vm1190_vm0, %v1345_v30, %v7761_v7  ;;  %v2460_v18 = vrot.slane %v2458_v53, 7 }
 0x19f   : > { %2993 = vmatprep.mubr.bf16.mxu0 %v7871_v15  ;;  %6618 = vmatpush3.bf16.msra.mxu0 %v6904_v32  ;;  %v2439_v43 = vor.u32 %v2437_v19, %v2436_v31  ;;  %v3868_v32 = vrot.slane %v9238_v23, 7  ;;  %v8406_v23 = vld [vmem:[#allocation2 + $0x58] sm:$0xff]  }
 0x1a0   : > { %6619 = vmatprep.subr.bf16.mxu0 %v6914_v56 }
 0x1a1   : > { %v2440_v41 = vsel %vm1190_vm0, %v2428_v46, %v2439_v43  ;;  %v7958_v4 = vor.u32 %v9239_v27, %v3868_v32 }
 0x1a3   : > { %6620 = vmatpush3.bf16.msra.mxu0 %v6914_v56  ;;  %9274 = vst [vmem:[#allocation7_spill] sm:$0xff] %v7958_v4 }
 0x1a4   : > { %1899 = vmatmul.mubr.bf16.gmra.mrb[108].mxu1 %v1333_v13  ;;  %v7971_v13 = vld [vmem:[#allocation2 + $0x4c] sm:$0xff]   ;;  %6621 = vmatprep.subr.bf16.mxu0 %v6921_v1 }
 0x1a5   : > { %1906 = vmatprep.mubr.bf16.mxu1 %v7694_v38  ;;  %v2444_v38 = vrot.slane %v2442_v28, 7  ;;  %v2466_v58 = vshrl.u32 %v7971_v13, 16  ;;  %v2469_v43 = vshll.u32 %v7971_v13, 16 }
 0x1a6   : > { %2994 = vmatmul.mubr.bf16.gmra.mrb[84].mxu0 %v2432_v50 }
 0x1a7   : > { %3001 = vmatprep.mubr.bf16.mxu0 %v7890_v5  ;;  %v2447_v35 = vor.u32 %v2445_v14, %v2444_v38  ;;  %v2456_v39 = vsel %vm1190_vm0, %v2444_v38, %v2455_v9  ;;  %6622 = vmatpush3.bf16.msra.mxu0 %v6921_v1  ;;  %v2477_v38 = vshll.u32 %v7988_v16, 16 }
 0x1a9   : > { %v2448_v48 = vsel %vm1190_vm0, %v2436_v31, %v2447_v35  ;;  %v2468_v31 = vrot.slane %v2466_v58, 7  ;;  %v2485_v35 = vshll.u32 %v8007_v62, 16 }
 0x1ac   : > { %1907 = vmatmul.mubr.bf16.gmra.mrb[112].mxu1 %v1341_v45  ;;  %v6922_v45 = vld [vmem:[%s9221_s3 + $0x238] sm:$0xff]  }
 0x1ad   : > { %1914 = vmatprep.mubr.bf16.mxu1 %v7714_v54  ;;  %v7937_v54 = vld [vmem:[#allocation2 + $0xc0] sm:$0xff]   ;;  %6623 = vmatprep.subr.bf16.mxu0 %v6922_v45 }
 0x1ae   : > { %3002 = vmatmul.mubr.bf16.gmra.mrb[88].mxu0 %v2440_v41  ;;  %v9237_v37 = vshll.u32 %v7937_v54, 16 }
 0x1af   : > { %3009 = vmatprep.mubr.bf16.mxu0 %v7906_v0  ;;  %6624 = vmatpush3.bf16.msra.mxu0 %v6922_v45  ;;  %v6891_v0 = vld [vmem:[%s9221_s3 + $0x1a0] sm:$0xff]  }
 0x1b4   : > { %1915 = vmatmul.mubr.bf16.gmra.mrb[116].mxu1 %v1349_v55  ;;  %v8019_v55 = vld [vmem:[#allocation2 + $0x64] sm:$0xff]  }
 0x1b5   : > { %1922 = vmatprep.mubr.bf16.mxu1 %v7727_v8  ;;  %v9234_v8 = vshrl.u32 %v7937_v54, 16 }
 0x1b6   : > { %3010 = vmatmul.mubr.bf16.gmra.mrb[92].mxu0 %v2448_v48  ;;  %v2623_v48 = vrot.slane %v2421_v26, 1 }
 0x1b7   : > { %3017 = vmatprep.mubr.bf16.mxu0 %v7922_v11  ;;  %v7964_v46 = vrot.slane %v9234_v8, 7 }
 0x1b8   : > { %v2625_v9 = vor.u32 %v2623_v48, %v2418_v10  ;;  %v2624_v26 = vsel %vm1409_vm3, %v7792_v57, %v2623_v48  ;;  %v2629_v57 = vrot.slane %v2437_v19, 1  ;;  %v2493_v10 = vshll.u32 %v8019_v55, 16  ;;  %v6887_v19 = vld [vmem:[%s9221_s3 + $0x190] sm:$0xff]  }
 0x1b9   : > { %v3879_v7 = vor.u32 %v9237_v37, %v7964_v46 }
 0x1bb   : > { %v7978_v59 = vsel %vm1190_vm0, %v3868_v32, %v3879_v7  ;;  %v2490_v32 = vshrl.u32 %v8019_v55, 16  ;;  %v8043_v7 = vld [vmem:[#allocation2 + $0x6c] sm:$0xff]  }
 0x1bc   : > { %1923 = vmatmul.mubr.bf16.gmra.mrb[120].mxu1 %v1357_v17  ;;  %9275 = vst [vmem:[#allocation8_spill] sm:$0xff] %v7978_v59  ;;  %v2498_v1 = vshrl.u32 %v8043_v7, 16  ;;  %v8423_v59 = vld [vmem:[#allocation2 + $0x60] sm:$0xff]  }
 0x1bd   : > { %1930 = vmatprep.mubr.bf16.mxu1 %v7730_v63  ;;  %v2463_v63 = vor.u32 %v2461_v60, %v2460_v18 }
 0x1be   : > { %3018 = vmatmul.mubr.bf16.gmra.mrb[96].mxu0 %v2456_v39  ;;  %v6885_v39 = vld [vmem:[%s9221_s3 + $0x188] sm:$0xff]   ;;  %v2500_v45 = vrot.slane %v2498_v1, 7 }
 0x1bf   : > { %3025 = vmatprep.mubr.bf16.mxu0 %v7944_v40  ;;  %v2464_v50 = vsel %vm1190_vm0, %v2452_v47, %v2463_v63  ;;  %v2631_v63 = vor.u32 %v2629_v57, %v2434_v44 }
 0x1c4   : > { %1931 = vmatmul.mubr.bf16.gmra.mrb[124].mxu1 %v7773_v42  ;;  %v2474_v42 = vshrl.u32 %v7988_v16, 16 }
 0x1c5   : > { %1938 = vmatprep.mubr.bf16.mxu1 %v7746_v20  ;;  %v2471_v20 = vor.u32 %v2469_v43, %v2468_v31 }
 0x1c6   : > { %3026 = vmatmul.mubr.bf16.gmra.mrb[100].mxu0 %v2464_v50  ;;  %v2476_v41 = vrot.slane %v2474_v42, 7 }
 0x1c7   : > { %3033 = vmatprep.mubr.bf16.mxu0 %v7971_v13  ;;  %v2472_v30 = vsel %vm1190_vm0, %v2460_v18, %v2471_v20  ;;  %v2492_v18 = vrot.slane %v2490_v32, 7  ;;  %v2632_v20 = vrot.slane %v2445_v14, 1  ;;  %v6889_v14 = vld [vmem:[%s9221_s3 + $0x198] sm:$0xff]  }
 0x1c8   : > { %v2479_v36 = vor.u32 %v2477_v38, %v2476_v41 }
 0x1c9   : > { %v2633_v15 = vsel %vm1409_vm3, %v2631_v63, %v2632_v20  ;;  %v2644_v63 = vrot.slane %v2477_v38, 1  ;;  %v8137_v38 = vld [vmem:[#allocation2 + $0x84] sm:$0xff]  }
 0x1cc   : > { %1939 = vmatmul.mubr.bf16.gmra.mrb[128].mxu1 %v7788_v22  ;;  %v2482_v22 = vshrl.u32 %v8007_v62, 16 }
 0x1cd   : > { %1946 = vmatprep.mubr.bf16.mxu1 %v7757_v25  ;;  %v2480_v25 = vsel %vm1190_vm0, %v2468_v31, %v2479_v36  ;;  %v2495_v31 = vor.u32 %v2493_v10, %v2492_v18  ;;  %v2635_v36 = vrot.slane %v2453_v6, 1 }
 0x1ce   : > { %3034 = vmatmul.mubr.bf16.gmra.mrb[104].mxu0 %v2472_v30  ;;  %v2484_v56 = vrot.slane %v2482_v22, 7  ;;  %v2501_v30 = vshll.u32 %v8043_v7, 16 }
 0x1cf   : > { %3041 = vmatprep.mubr.bf16.mxu0 %v7988_v16  ;;  %v2637_v48 = vor.u32 %v2635_v36, %v2450_v12  ;;  %v6899_v16 = vld [vmem:[%s9221_s3 + $0x1c0] sm:$0xff]  }
 0x1d0   : > { %v2487_v47 = vor.u32 %v2485_v35, %v2484_v56  ;;  %v2496_v44 = vsel %vm1190_vm0, %v2484_v56, %v2495_v31  ;;  %v2634_v56 = vor.u32 %v2632_v20, %v2442_v28  ;;  %v6897_v20 = vld [vmem:[%s9221_s3 + $0x1b8] sm:$0xff]  }
 0x1d2   : > { %v2636_v11 = vsel %vm1409_vm3, %v2634_v56, %v2635_v36 }
 0x1d4   : > { %1947 = vmatmul.mubr.bf16.gmra.mrb[132].mxu1 %v7795_v33  ;;  %v2626_v33 = vrot.slane %v2429_v29, 1  ;;  %v2488_v29 = vsel %vm1190_vm0, %v2476_v41, %v2487_v47  ;;  %v8074_v41 = vld [vmem:[#allocation2 + $0x74] sm:$0xff]   ;;  %v2503_v47 = vor.u32 %v2501_v30, %v2500_v45 }
 0x1d5   : > { %6561 = vmatprep.mubr.bf16.mxu1 %v7798_v34  ;;  %v6883_v34 = vld [vmem:[%s9221_s3 + $0x180] sm:$0xff]  }
 0x1d6   : > { %3042 = vmatmul.mubr.bf16.gmra.mrb[108].mxu0 %v2480_v25  ;;  %v2627_v17 = vsel %vm1409_vm3, %v2625_v9, %v2626_v33  ;;  %v2628_v50 = vor.u32 %v2626_v33, %v2426_v2  ;;  %v8065_v2 = vld [vmem:[#allocation2 + $0xc8] sm:$0xff]   ;;  %v2638_v33 = vrot.slane %v2461_v60, 1  ;;  %v2506_v9 = vshrl.u32 %v8074_v41, 16 }
 0x1d7   : > { %3049 = vmatprep.mubr.bf16.mxu0 %v8007_v62  ;;  %v9235_v25 = vshrl.u32 %v8065_v2, 16  ;;  %v2641_v60 = vrot.slane %v2469_v43, 1  ;;  %v2650_v62 = vrot.slane %v2493_v10, 1  ;;  %v2653_v10 = vrot.slane %v2501_v30, 1  ;;  %v6903_v30 = vld [vmem:[%s9221_s3 + $0x1d0] sm:$0xff]  }
 0x1d8   : > { %v2630_v5 = vsel %vm1409_vm3, %v2628_v50, %v2629_v57  ;;  %v2639_v12 = vsel %vm1409_vm3, %v2637_v48, %v2638_v33  ;;  %v6893_v57 = vld [vmem:[%s9221_s3 + $0x1a8] sm:$0xff]   ;;  %v2640_v43 = vor.u32 %v2638_v33, %v2458_v53 }
 0x1d9   : > { %v8090_v6 = vrot.slane %v9235_v25, 7 }
 0x1da   : > { %v2642_v40 = vsel %vm1409_vm3, %v2640_v43, %v2641_v60 }
 0x1db   : > { %9277 = vst [vmem:[#allocation9_spill] sm:$0xff] %v8090_v6 }
 0x1dc   : > { %6562 = vmatmul.mubr.bf16.vlgmr.msra.gmra.mrb[136].mxu1 %v2624_v26  ;;  %v2504_v26 = vsel %vm1190_vm0, %v2492_v18, %v2503_v47  ;;  %v2643_v18 = vor.u32 %v2641_v60, %v2466_v58 }
 0x1dd   : > { %4242 = vmatpush1.bf16.msra.mxu1 %v6883_v34  ;;  %6565 = vmatprep.mubr.bf16.mxu1 %v2627_v17  ;;  %v9236_v34 = vshll.u32 %v8065_v2, 16  ;;  %v2508_v17 = vrot.slane %v2506_v9, 7 }
 0x1de   : > { %3050 = vmatmul.mubr.bf16.gmra.mrb[112].mxu0 %v2488_v29  ;;  %4243 = vmatprep.subr.bf16.mxu1 %v9276_v21  ;;  %v2509_v29 = vshll.u32 %v8074_v41, 16  ;;  %v2645_v53 = vsel %vm1409_vm3, %v2643_v18, %v2644_v63  ;;  %v2525_v18 = vshll.u32 %v8137_v38, 16 }
 0x1df   : > { %3057 = vmatprep.mubr.bf16.mxu0 %v8019_v55  ;;  %v8102_v28 = vor.u32 %v9236_v34, %v8090_v6 }
 0x1e0   : > { %v2511_v50 = vor.u32 %v2509_v29, %v2508_v17 }
 0x1e1   : > { %4244 = vmatpush1.bf16.msra.mxu1 %v6885_v39  ;;  %v8112_v39 = vld [vmem:[#allocation2 + $0x7c] sm:$0xff]  }
 0x1e2   : > { %4245 = vmatprep.subr.bf16.mxu1 %v9276_v21  ;;  %v2514_v31 = vshrl.u32 %v8112_v39, 16  ;;  %v2512_v13 = vsel %vm1190_vm0, %v2500_v45, %v2511_v50  ;;  %v2646_v45 = vor.u32 %v2644_v63, %v2474_v42  ;;  %v8172_v63 = vld [vmem:[#allocation2 + $0x8c] sm:$0xff]  }
 0x1e4   : > { %6566 = vmatmul.mubr.bf16.gmra.mrb[140].mxu1 %v2630_v5  ;;  %v2516_v58 = vrot.slane %v2514_v31, 7  ;;  %v2647_v5 = vrot.slane %v2485_v35, 1 }
 0x1e5   : > { %6569 = vmatprep.mubr.bf16.mxu1 %v2633_v15  ;;  %4246 = vmatpush1.bf16.msra.mxu1 %v6887_v19  ;;  %v6895_v19 = vld [vmem:[%s9221_s3 + $0x1b0] sm:$0xff]  }
 0x1e6   : > { %3058 = vmatmul.mubr.bf16.gmra.mrb[116].mxu0 %v2496_v44  ;;  %4247 = vmatprep.subr.bf16.mxu1 %v9276_v21  ;;  %v2649_v48 = vor.u32 %v2647_v5, %v2482_v22  ;;  %v2648_v22 = vsel %vm1409_vm3, %v2646_v45, %v2647_v5  ;;  %v2530_v5 = vshrl.u32 %v8172_v63, 16  ;;  %v2533_v45 = vshll.u32 %v8172_v63, 16 }
 0x1e7   : > { %3065 = vmatprep.mubr.bf16.mxu0 %v8043_v7 }
 0x1e9   : > { %4248 = vmatpush1.bf16.msra.mxu1 %v6889_v14  ;;  %v2517_v14 = vshll.u32 %v8112_v39, 16 }
 0x1ea   : > { %4249 = vmatprep.subr.bf16.mxu1 %v9276_v21 }
 0x1eb   : > { %v2659_v7 = vrot.slane %v2517_v14, 1 }
 0x1ec   : > { %6570 = vmatmul.mubr.bf16.gmra.mrb[144].mxu1 %v2636_v11  ;;  %v2522_v11 = vshrl.u32 %v8137_v38, 16 }
 0x1ed   : > { %6573 = vmatprep.mubr.bf16.mxu1 %v2639_v12  ;;  %4250 = vmatpush1.bf16.msra.mxu1 %v6891_v0  ;;  %v2519_v0 = vor.u32 %v2517_v14, %v2516_v58 }
 0x1ee   : > { %3066 = vmatmul.mubr.bf16.gmra.mrb[120].mxu0 %v2504_v26  ;;  %4251 = vmatprep.subr.bf16.mxu1 %v9276_v21  ;;  %v2651_v26 = vsel %vm1409_vm3, %v2649_v48, %v2650_v62  ;;  %v2524_v43 = vrot.slane %v2522_v11, 7 }
 0x1ef   : > { %3073 = vmatprep.mubr.bf16.mxu0 %v8074_v41 }
 0x1f1   : > { %4252 = vmatpush1.bf16.msra.mxu1 %v6893_v57  ;;  %v2520_v57 = vsel %vm1190_vm0, %v2508_v17, %v2519_v0  ;;  %v2652_v17 = vor.u32 %v2650_v62, %v2490_v32  ;;  %v2662_v62 = vrot.slane %v2525_v18, 1 }
 0x1f2   : > { %4253 = vmatprep.subr.bf16.mxu1 %v9276_v21 }
 0x1f3   : > { %v2654_v55 = vsel %vm1409_vm3, %v2652_v17, %v2653_v10  ;;  %v8232_v17 = vsel %vm1190_vm0, %v7964_v46, %v8102_v28 }
 0x1f4   : > { %6574 = vmatmul.mubr.bf16.gmra.mrb[148].mxu1 %v2642_v40  ;;  %v2655_v40 = vor.u32 %v2653_v10, %v2498_v1  ;;  %v6902_v10 = vld [vmem:[#allocation2 + $0x9c] sm:$0xff]   ;;  %9278 = vst [vmem:[#allocation10_spill] sm:$0xff] %v8232_v17 }
 0x1f5   : > { %6577 = vmatprep.mubr.bf16.mxu1 %v2645_v53  ;;  %4254 = vmatpush1.bf16.msra.mxu1 %v6895_v19  ;;  %v2656_v53 = vrot.slane %v2509_v29, 1  ;;  %v2546_v28 = vshrl.u32 %v6902_v10, 16 }
 0x1f6   : > { %3074 = vmatmul.mubr.bf16.gmra.mrb[124].mxu0 %v2512_v13  ;;  %4255 = vmatprep.subr.bf16.mxu1 %v9276_v21 }
 0x1f7   : > { %v1772_v15 = vpop.f32.mrb[44].mxu1  ;;  %v6499_v44 = vpop.f32.mrb[24].mxu0  ;;  %3081 = vmatprep.mubr.bf16.mxu0 %v8112_v39  ;;  %v2657_v32 = vsel %vm1409_vm3, %v2655_v40, %v2656_v53 }
 0x1f8   : > { %v1774_v36 = vpop.f32.mrb[45].mxu1  ;;  %v1989_v56 = vpop.f32.mrb[25].mxu0  ;;  %v8195_v44 = vrot.slane %v2530_v5, 7 }
 0x1f9   : > { %v8152_v33 = vadd.f32 %v1989_v56, %v7767_v61  ;;  %v1775_v35 = vpop.f32.mrb[46].mxu1  ;;  %v6500_v47 = vpop.f32.mrb[26].mxu0  ;;  %4256 = vmatpush1.bf16.msra.mxu1 %v6897_v20  ;;  %v2527_v20 = vor.u32 %v2525_v18, %v2524_v43  ;;  %v8198_v36 = vld [vmem:[#allocation2 + $0x94] sm:$0xff]  }
 0x1fa   : > { %v8158_v42 = vadd.f32 %v6500_v47, %v1775_v35  ;;  %v1777_v12 = vpop.f32.mrb[47].mxu1  ;;  %v1992_v60 = vpop.f32.mrb[27].mxu0  ;;  %4257 = vmatprep.subr.bf16.mxu1 %v9276_v21  ;;  %v6906_v56 = vld [vmem:[%s9221_s3 + $0x1d8] sm:$0xff]   ;;  %v2541_v40 = vshll.u32 %v8198_v36, 16 }
 0x1fb   : > { %v8164_v61 = vadd.f32 %v1992_v60, %v7780_v3  ;;  %v6901_v3 = vld [vmem:[%s9221_s3 + $0x1c8] sm:$0xff]   ;;  %v2528_v29 = vsel %vm1190_vm0, %v2516_v58, %v2527_v20  ;;  %v2658_v58 = vor.u32 %v2656_v53, %v2506_v9  ;;  %v2661_v60 = vor.u32 %v2659_v7, %v2514_v31 }
 0x1fc   : > { %6578 = vmatmul.mubr.bf16.gmra.mrb[152].mxu1 %v2648_v22 }
 0x1fd   : > { %6581 = vmatprep.mubr.bf16.mxu1 %v2651_v26  ;;  %4258 = vmatpush1.bf16.msra.mxu1 %v6899_v16  ;;  %v2535_v26 = vor.u32 %v2533_v45, %v8195_v44  ;;  %v2663_v39 = vsel %vm1409_vm3, %v2661_v60, %v2662_v62 }
 0x1fe   : > { %3082 = vmatmul.mubr.bf16.gmra.mrb[128].mxu0 %v2520_v57  ;;  %4259 = vmatprep.subr.bf16.mxu1 %v9276_v21  ;;  %v2538_v57 = vshrl.u32 %v8198_v36, 16 }
 0x1ff   : > { %v1780_v50 = vpop.f32.mrb[48].mxu1  ;;  %3089 = vmatprep.mubr.bf16.mxu0 %v8137_v38  ;;  %v2536_v31 = vsel %vm1190_vm0, %v2524_v43, %v2535_v26 }
 0x200   : > { %v1782_v19 = vpop.f32.mrb[49].mxu1  ;;  %v8224_v18 = vrot.slane %v2538_v57, 7 }
 0x201   : > { %v1783_v13 = vpop.f32.mrb[50].mxu1  ;;  %4260 = vmatpush1.bf16.msra.mxu1 %v6901_v3  ;;  %v2660_v3 = vsel %vm1409_vm3, %v2658_v58, %v2659_v7  ;;  %v2665_v19 = vrot.slane %v2533_v45, 1  ;;  %v6913_v7 = vld [vmem:[%s9221_s3 + $0x1f0] sm:$0xff]   ;;  %v2668_v45 = vrot.slane %v2541_v40, 1  ;;  %v2548_v58 = vrot.slane %v2546_v28, 7 }
 0x202   : > { %v1785_v15 = vpop.f32.mrb[51].mxu1  ;;  %4261 = vmatprep.subr.bf16.mxu1 %v9276_v21  ;;  %v2664_v13 = vor.u32 %v2662_v62, %v2522_v11  ;;  %v2543_v46 = vor.u32 %v2541_v40, %v8224_v18 }
 0x203   : > { %v2667_v15 = vor.u32 %v2665_v19, %v2530_v5  ;;  %v2670_v62 = vor.u32 %v2668_v45, %v2538_v57 }
 0x204   : > { %6582 = vmatmul.mubr.bf16.gmra.mrb[156].mxu1 %v2654_v55  ;;  %v2666_v11 = vsel %vm1409_vm3, %v2664_v13, %v2665_v19 }
 0x205   : > { %v6503_v1 = vpop.f32.mrb[28].mxu0  ;;  %6585 = vmatprep.mubr.bf16.mxu1 %v2657_v32  ;;  %4262 = vmatpush1.bf16.msra.mxu1 %v6903_v30  ;;  %v2669_v5 = vsel %vm1409_vm3, %v2667_v15, %v2668_v45 }
 0x206   : > { %v2005_v48 = vpop.f32.mrb[29].mxu0  ;;  %3090 = vmatmul.mubr.bf16.gmra.mrb[132].mxu0 %v2528_v29  ;;  %4263 = vmatprep.subr.bf16.mxu1 %v9276_v21 }
 0x207   : > { %v8204_v14 = vadd.f32 %v2005_v48, %v1780_v50  ;;  %v1788_v35 = vpop.f32.mrb[52].mxu1  ;;  %v6504_v47 = vpop.f32.mrb[30].mxu0  ;;  %3097 = vmatprep.mubr.bf16.mxu0 %v8172_v63  ;;  %v6908_v63 = vld [vmem:[%s9221_s3 + $0x1e0] sm:$0xff]   ;;  %v6910_v50 = vld [vmem:[%s9221_s3 + $0x1e8] sm:$0xff]  }
 0x208   : > { %v8209_v0 = vadd.f32 %v6503_v1, %v1788_v35  ;;  %v1790_v16 = vpop.f32.mrb[53].mxu1  ;;  %v2008_v12 = vpop.f32.mrb[31].mxu0  ;;  %v8248_v35 = vld [vmem:[#allocation2 + $0xac] sm:$0xff]  }
 0x209   : > { %v1791_v22 = vpop.f32.mrb[54].mxu1  ;;  %4264 = vmatpush1.bf16.msra.mxu1 %v6906_v56  ;;  %v6905_v56 = vld [vmem:[#allocation2 + $0xa4] sm:$0xff]   ;;  %v6917_v16 = vld [vmem:[%s9221_s3 + $0x1f8] sm:$0xff]  }
 0x20a   : > { %v8218_v41 = vadd.f32 %v6504_v47, %v1791_v22  ;;  %v1793_v9 = vpop.f32.mrb[55].mxu1  ;;  %4265 = vmatprep.subr.bf16.mxu1 %v9276_v21  ;;  %v2557_v48 = vshll.u32 %v6905_v56, 16  ;;  %v2544_v47 = vsel %vm1190_vm0, %v8195_v44, %v2543_v46  ;;  %v2554_v40 = vshrl.u32 %v6905_v56, 16 }
 0x20c   : > { %6586 = vmatmul.mubr.bf16.gmra.mrb[160].mxu1 %v2660_v3  ;;  %v2674_v3 = vrot.slane %v2557_v48, 1 }
 0x20d   : > { %6589 = vmatprep.mubr.bf16.mxu1 %v2663_v39  ;;  %4266 = vmatpush1.bf16.msra.mxu1 %v6908_v63  ;;  %v2565_v39 = vshll.u32 %v8248_v35, 16 }
 0x20e   : > { %3098 = vmatmul.mubr.bf16.gmra.mrb[136].mxu0 %v2536_v31  ;;  %4267 = vmatprep.subr.bf16.mxu1 %v9276_v21  ;;  %v6507_v53 = vpop.f32.mrb[32].mxu0 }
 0x20f   : > { %v1796_v43 = vpop.f32.mrb[56].mxu1  ;;  %3105 = vmatprep.mubr.bf16.mxu0 %v8198_v36  ;;  %v2021_v30 = vpop.f32.mrb[33].mxu0  ;;  %v2549_v36 = vshll.u32 %v6902_v10, 16 }
 0x210   : > { %v1798_v20 = vpop.f32.mrb[57].mxu1  ;;  %v6508_v32 = vpop.f32.mrb[34].mxu0 }
 0x211   : > { %v1799_v55 = vpop.f32.mrb[58].mxu1  ;;  %4268 = vmatpush1.bf16.msra.mxu1 %v6910_v50  ;;  %v2024_v29 = vpop.f32.mrb[35].mxu0  ;;  %v2671_v12 = vrot.slane %v2549_v36, 1  ;;  %v2551_v50 = vor.u32 %v2549_v36, %v2548_v58  ;;  %v8259_v20 = vld [vmem:[#allocation2 + $0xb4] sm:$0xff]   ;;  %v2562_v32 = vshrl.u32 %v8248_v35, 16 }
 0x212   : > { %v1801_v1 = vpop.f32.mrb[59].mxu1  ;;  %4269 = vmatprep.subr.bf16.mxu1 %v9276_v21  ;;  %v8244_v38 = vadd.f32 %v2024_v29, %v1799_v55  ;;  %v2573_v30 = vshll.u32 %v8259_v20, 16  ;;  %v2556_v55 = vrot.slane %v2554_v40, 7 }
 0x213   : > { %v2673_v9 = vor.u32 %v2671_v12, %v2546_v28  ;;  %v2672_v57 = vsel %vm1409_vm3, %v2670_v62, %v2671_v12  ;;  %v2552_v15 = vsel %vm1190_vm0, %v8224_v18, %v2551_v50  ;;  %v2676_v28 = vor.u32 %v2674_v3, %v2554_v40 }
 0x214   : > { %6590 = vmatmul.mubr.bf16.gmra.mrb[164].mxu1 %v2666_v11  ;;  %v2680_v36 = vrot.slane %v2573_v30, 1  ;;  %v8271_v11 = vld [vmem:[#allocation2 + $0xbc] sm:$0xff]  }
 0x215   : > { %6593 = vmatprep.mubr.bf16.mxu1 %v2669_v5  ;;  %4270 = vmatpush1.bf16.msra.mxu1 %v6913_v7  ;;  %v2274_v7 = vld [vmem:[#allocation2 + $0xc4] sm:$0xf]  ;;  %v2578_v50 = vshrl.u32 %v8271_v11, 16 }
 0x216   : > { %3106 = vmatmul.mubr.bf16.gmra.mrb[140].mxu0 %v2544_v47  ;;  %4271 = vmatprep.subr.bf16.mxu1 %v9276_v21  ;;  %v2559_v47 = vor.u32 %v2557_v48, %v2556_v55 }
 0x217   : > { %v1804_v60 = vpop.f32.mrb[60].mxu1  ;;  %3113 = vmatprep.mubr.bf16.mxu0 %v6902_v10  ;;  %v6511_v22 = vpop.f32.mrb[36].mxu0  ;;  %v2675_v10 = vsel %vm1409_vm3, %v2673_v9, %v2674_v3 }
 0x218   : > { %v8256_v26 = vadd.f32 %v6507_v53, %v1804_v60  ;;  %v1806_v63 = vpop.f32.mrb[61].mxu1  ;;  %v2037_v44 = vpop.f32.mrb[37].mxu0  ;;  %v2677_v53 = vrot.slane %v2565_v39, 1  ;;  %v8279_v60 = vcombine.low %v2274_v7, %v7816_v49  ;;  %v2560_v48 = vsel %vm1190_vm0, %v2548_v58, %v2559_v47  ;;  %v3533_v58 = vld [vmem:[#allocation2 + $0x1c] sm:$0xf] }
 0x219   : > { %v1807_v31 = vpop.f32.mrb[62].mxu1  ;;  %v6512_v19 = vpop.f32.mrb[38].mxu0  ;;  %4272 = vmatpush1.bf16.msra.mxu1 %v6917_v16 }
 0x21a   : > { %v1809_v43 = vpop.f32.mrb[63].mxu1  ;;  %v2040_v13 = vpop.f32.mrb[39].mxu0  ;;  %v2679_v45 = vor.u32 %v2677_v53, %v2562_v32  ;;  %v2678_v22 = vsel %vm1409_vm3, %v2676_v28, %v2677_v53  ;;  %v2564_v31 = vrot.slane %v2562_v32, 7  ;;  %v2589_v40 = vshll.u32 %v8279_v60, 16  ;;  %v8292_v53 = vld [vmem:[#allocation2 + $0x18] sm:$0xf] }
 0x21c   : > { %6594 = vmatmul.mubr.bf16.gmra.mrb[168].mxu1 %v2672_v57  ;;  %v2681_v9 = vsel %vm1409_vm3, %v2679_v45, %v2680_v36  ;;  %v2567_v28 = vor.u32 %v2565_v39, %v2564_v31 }
 0x21d   : > { %6597 = vmatprep.mubr.bf16.mxu1 %v2675_v10 }
 0x21e   : > { %3114 = vmatmul.mubr.bf16.gmra.mrb[144].mxu0 %v2552_v15  ;;  %v6970_v15 = vld [vmem:[#allocation2 + $0xc] sm:$0xf] }
 0x21f   : > { %v1812_v46 = vpop.f32.mrb[64].mxu1  ;;  %3121 = vmatprep.mubr.bf16.mxu0 %v6905_v56  ;;  %v2581_v56 = vshll.u32 %v8271_v11, 16 }
 0x220   : > { %v8267_v1 = vadd.f32 %v2037_v44, %v1812_v46  ;;  %v1814_v29 = vpop.f32.mrb[65].mxu1  ;;  %v2570_v44 = vshrl.u32 %v8259_v20, 16  ;;  %v5934_v46 = vcombine.low %v6970_v15, %v6970_v15 }
 0x221   : > { %v1815_v5 = vpop.f32.mrb[66].mxu1  ;;  %v8273_v18 = vpop.f32.mrb[40].mxu0  ;;  %v2683_v49 = vrot.slane %v2581_v56, 1 }
 0x222   : > { %v8275_v16 = vadd.f32 %v2040_v13, %v1815_v5  ;;  %v1817_v12 = vpop.f32.mrb[67].mxu1  ;;  %v2053_v62 = vpop.f32.mrb[41].mxu0  ;;  %v2682_v13 = vor.u32 %v2680_v36, %v2570_v44  ;;  %v2686_v5 = vrot.slane %v2589_v40, 1  ;;  %v2586_v36 = vshrl.u32 %v8279_v60, 16 }
 0x223   : > { %v8282_v63 = vpop.f32.mrb[42].mxu0  ;;  %v2685_v10 = vor.u32 %v2683_v49, %v2578_v50  ;;  %v8303_v12 = vcombine.low %v8292_v53, %v3533_v58 }
 0x224   : > { %6598 = vmatmul.mubr.bf16.gmra.mrb[172].mxu1 %v2678_v22  ;;  %v2056_v3 = vpop.f32.mrb[43].mxu0 }
 0x225   : > { %6601 = vmatprep.mubr.bf16.mxu1 %v2681_v9  ;;  %v2687_v39 = vsel %vm1409_vm3, %v2685_v10, %v2686_v5  ;;  %v2568_v3 = vsel %vm1190_vm0, %v2556_v55, %v2567_v28 }
 0x226   : > { %3122 = vmatmul.mubr.bf16.gmra.mrb[148].mxu0 %v2560_v48  ;;  %v2572_v48 = vrot.slane %v2570_v44, 7 }
 0x227   : > { %v1820_v43 = vpop.f32.mrb[68].mxu1  ;;  %3129 = vmatprep.mubr.bf16.mxu0 %v8248_v35  ;;  %v2684_v35 = vsel %vm1409_vm3, %v2682_v13, %v2683_v49  ;;  %v2688_v13 = vor.u32 %v2686_v5, %v2586_v36 }
 0x228   : > { %v1822_v57 = vpop.f32.mrb[69].mxu1  ;;  %v8309_v43 = vld [vmem:[#allocation2 + $0xd4] sm:$0xf]  ;;  %v2575_v55 = vor.u32 %v2573_v30, %v2572_v48 }
 0x229   : > { %v1823_v32 = vpop.f32.mrb[70].mxu1  ;;  %v8294_v7 = vpop.f32.mrb[44].mxu0  ;;  %v3707_v57 = vshrl.u32 %v8303_v12, 16  ;;  %v6007_v58 = vcombine.low %v8309_v43, %v8309_v43 }
 0x22a   : > { %v8296_v29 = vadd.f32 %v6512_v19, %v1823_v32  ;;  %v1825_v45 = vpop.f32.mrb[71].mxu1  ;;  %v2069_v47 = vpop.f32.mrb[45].mxu0  ;;  %v2715_v19 = vshll.u32 %v5934_v46, 16  ;;  %v2576_v30 = vsel %vm1190_vm0, %v2564_v31, %v2575_v55 }
 0x22b   : > { %v6520_v22 = vpop.f32.mrb[46].mxu0  ;;  %v3709_v47 = vrot.slane %v3707_v57, 7 }
 0x22c   : > { %6602 = vmatmul.mubr.bf16.gmra.mrb[176].mxu1 %v2684_v35  ;;  %v8306_v9 = vpop.f32.mrb[47].mxu0  ;;  %v2717_v32 = vrot.slane %v2715_v19, 1  ;;  %v3584_v35 = vshrl.u32 %v6007_v58, 16  ;;  %v8325_v22 = vld [vmem:[#allocation2 + $0x20] sm:$0xff]   ;;  %v2580_v19 = vrot.slane %v2578_v50, 7 }
 0x22d   : > { %6605 = vmatprep.mubr.bf16.mxu1 %v2687_v39  ;;  %v3714_v58 = vshrl.u32 %v8325_v22, 16 }
 0x22e   : > { %3130 = vmatmul.mubr.bf16.gmra.mrb[152].mxu0 %v2568_v3  ;;  %v2719_v5 = vsel %vm7823_vm5, %v2688_v13, %v2717_v32 }
 0x22f   : > { %v1828_v49 = vpop.f32.mrb[72].mxu1  ;;  %3137 = vmatprep.mubr.bf16.mxu0 %v8259_v20  ;;  %v3710_v20 = vshll.u32 %v8303_v12, 16 }
 0x230   : > { %v8315_v10 = vadd.f32 %v2053_v62, %v1828_v49  ;;  %v1830_v15 = vpop.f32.mrb[73].mxu1  ;;  %v3586_v49 = vrot.slane %v3584_v35, 3  ;;  %v3716_v35 = vrot.slane %v3714_v58, 7 }
 0x231   : > { %v1831_v46 = vpop.f32.mrb[74].mxu1  ;;  %v6523_v44 = vpop.f32.mrb[48].mxu0  ;;  %v3712_v13 = vor.u32 %v3710_v20, %v3709_v47 }
 0x232   : > { %v1833_v28 = vpop.f32.mrb[75].mxu1  ;;  %v8319_v45 = vpop.f32.mrb[49].mxu0  ;;  %v2583_v44 = vor.u32 %v2581_v56, %v2580_v19  ;;  %v3717_v56 = vshll.u32 %v8325_v22, 16 }
 0x233   : > { %v8327_v62 = vpop.f32.mrb[50].mxu0 }
 0x234   : > { %6606 = vmatmul.mubr.bf16.gmra.mrb[180].mxu1 %v2719_v5  ;;  %v8329_v39 = vpop.f32.mrb[51].mxu0  ;;  %v3921_v5 = vsel %vm7382_vm2, %v3586_v49, %v3712_v13  ;;  %v3922_v13 = vrot.slane %v3710_v20, 1 }
 0x235   : > { %4273 = vmatprep.mubr.bf16.mxu1 %v8303_v12 }
 0x236   : > { %3138 = vmatmul.mubr.bf16.gmra.mrb[156].mxu0 %v2576_v30  ;;  %v6920_v30 = vld [vmem:[#allocation2 + $0x28] sm:$0xff]   ;;  %v3923_v20 = vor.u32 %v3922_v13, %v3707_v57 }
 0x237   : > { %v1836_v3 = vpop.f32.mrb[76].mxu1  ;;  %3145 = vmatprep.mubr.bf16.mxu0 %v8271_v11  ;;  %v2584_v11 = vsel %vm1190_vm0, %v2572_v48, %v2583_v44  ;;  %v3722_v51 = vshrl.u32 %v6920_v30, 16 }
 0x238   : > { %v8337_v15 = vadd.f32 %v8273_v18, %v1836_v3  ;;  %v1838_v46 = vpop.f32.mrb[77].mxu1 }
 0x239   : > { %v1839_v32 = vpop.f32.mrb[78].mxu1  ;;  %v8341_v28 = vpop.f32.mrb[52].mxu0 }
 0x23a   : > { %v8344_v31 = vadd.f32 %v8282_v63, %v1839_v32  ;;  %v1841_v50 = vpop.f32.mrb[79].mxu1  ;;  %v8346_v55 = vpop.f32.mrb[53].mxu0  ;;  %v2588_v63 = vrot.slane %v2586_v36, 7  ;;  %v3719_v32 = vor.u32 %v3717_v56, %v3716_v35  ;;  %v6923_v36 = vld [vmem:[#allocation2 + $0x30] sm:$0xff]  }
 0x23b   : > { %v8350_v18 = vpop.f32.mrb[54].mxu0 }
 0x23c   : > { %4274 = vmatmul.mubr.bf16.vlgmr.msra.gmra.mrb[184].mxu1 %v3921_v5  ;;  %v2104_v3 = vpop.f32.mrb[55].mxu0  ;;  %v2591_v5 = vor.u32 %v2589_v40, %v2588_v63 }
 0x23d   : > { %4281 = vmatprep.mubr.bf16.mxu1 %v8325_v22  ;;  %v3924_v22 = vrot.slane %v3717_v56, 1  ;;  %v3733_v56 = vshll.u32 %v6923_v36, 16 }
 0x23e   : > { %3146 = vmatmul.mubr.bf16.gmra.mrb[160].mxu0 %v2584_v11  ;;  %v3720_v11 = vsel %vm1190_vm0, %v3709_v47, %v3719_v32  ;;  %v2592_v40 = vsel %vm1190_vm0, %v2580_v19, %v2591_v5  ;;  %v3730_v47 = vshrl.u32 %v6923_v36, 16 }
 0x23f   : > { %v1844_v46 = vpop.f32.mrb[80].mxu1  ;;  %3153 = vmatprep.mubr.bf16.mxu0 %v8279_v60  ;;  %v3926_v57 = vor.u32 %v3924_v22, %v3714_v58 }
 0x240   : > { %v1846_v49 = vpop.f32.mrb[81].mxu1  ;;  %v3724_v46 = vrot.slane %v3722_v51, 7 }
 0x241   : > { %v1847_v50 = vpop.f32.mrb[82].mxu1  ;;  %v8358_v3 = vpop.f32.mrb[56].mxu0  ;;  %v3725_v49 = vshll.u32 %v6920_v30, 16 }
 0x242   : > { %v8361_v8 = vadd.f32 %v8306_v9, %v1847_v50  ;;  %v1849_v48 = vpop.f32.mrb[83].mxu1  ;;  %v2117_v44 = vpop.f32.mrb[57].mxu0  ;;  %v3925_v9 = vsel %vm1409_vm3, %v3923_v20, %v3924_v22  ;;  %v3732_v20 = vrot.slane %v3730_v47, 7 }
 0x243   : > { %v6532_v25 = vpop.f32.mrb[58].mxu0  ;;  %v3727_v50 = vor.u32 %v3725_v49, %v3724_v46  ;;  %v3927_v12 = vrot.slane %v3725_v49, 1 }
 0x244   : > { %9279 = vst [vmem:[#allocation11_spill] sm:$0xff] %v8361_v8  ;;  %4282 = vmatmul.mubr.bf16.gmra.mrb[188].mxu1 %v3720_v11  ;;  %v8366_v60 = vpop.f32.mrb[59].mxu0  ;;  %v6924_v11 = vld [vmem:[#allocation2 + $0x38] sm:$0xff]  }
 0x245   : > { %4289 = vmatprep.mubr.bf16.mxu1 %v6920_v30  ;;  %v3930_v30 = vrot.slane %v3733_v56, 1  ;;  %v3728_v5 = vsel %vm1190_vm0, %v3716_v35, %v3727_v50  ;;  %v3741_v34 = vshll.u32 %v6924_v11, 16  ;;  %v3928_v58 = vsel %vm1409_vm3, %v3926_v57, %v3927_v12 }
 0x246   : > { %3154 = vmatmul.mubr.bf16.gmra.mrb[164].mxu0 %v2592_v40  ;;  %v3738_v35 = vshrl.u32 %v6924_v11, 16 }
 0x247   : > { %v1852_v63 = vpop.f32.mrb[84].mxu1  ;;  %6625 = vmatprep.mubr.bf16.mxu0 %v3925_v9  ;;  %v3929_v9 = vor.u32 %v3927_v12, %v3722_v51  ;;  %v3933_v51 = vrot.slane %v3741_v34, 1 }
 0x248   : > { %v8371_v25 = vadd.f32 %v8294_v7, %v1852_v63  ;;  %v1854_v32 = vpop.f32.mrb[85].mxu1  ;;  %v8378_v7 = vld [vmem:[#allocation2 + $0x40] sm:$0xff]  }
 0x249   : > { %v1855_v13 = vpop.f32.mrb[86].mxu1  ;;  %v6535_v48 = vpop.f32.mrb[60].mxu0  ;;  %v3931_v22 = vsel %vm1409_vm3, %v3929_v9, %v3930_v30  ;;  %v3735_v32 = vor.u32 %v3733_v56, %v3732_v20  ;;  %v3935_v57 = vor.u32 %v3933_v51, %v3738_v35  ;;  %v8395_v56 = vld [vmem:[#allocation2 + $0x48] sm:$0xff]  }
 0x24a   : > { %9280 = vst [vmem:[#allocation12_spill] sm:$0xff] %v8371_v25  ;;  %v1857_v44 = vpop.f32.mrb[87].mxu1  ;;  %v8373_v19 = vpop.f32.mrb[61].mxu0  ;;  %v3749_v48 = vshll.u32 %v8378_v7, 16 }
 0x24b   : > { %v8376_v40 = vpop.f32.mrb[62].mxu0 }
 0x24c   : > { %4290 = vmatmul.mubr.bf16.gmra.mrb[192].mxu1 %v3728_v5  ;;  %v8380_v63 = vpop.f32.mrb[63].mxu0  ;;  %v3932_v5 = vor.u32 %v3930_v30, %v3730_v47  ;;  %v9241_v47 = vshll.u32 %v8395_v56, 16  ;;  %v8401_v30 = vld [vmem:[#allocation2 + $0x50] sm:$0xff]  }
 0x24d   : > { %4297 = vmatprep.mubr.bf16.mxu1 %v6923_v36 }
 0x24e   : > { %6626 = vmatmul.mubr.bf16.vlgmr.msra.gmra.mrb[168].mxu0 %v3928_v58 }
 0x24f   : > { %v1860_v49 = vpop.f32.mrb[88].mxu1  ;;  %6629 = vmatprep.mubr.bf16.mxu0 %v3931_v22  ;;  %v3740_v22 = vrot.slane %v3738_v35, 7  ;;  %v3746_v35 = vshrl.u32 %v8378_v7, 16 }
 0x250   : > { %v8385_v50 = vadd.f32 %v8319_v45, %v1860_v49  ;;  %v1862_v13 = vpop.f32.mrb[89].mxu1  ;;  %v3736_v45 = vsel %vm1190_vm0, %v3724_v46, %v3735_v32  ;;  %v3936_v49 = vrot.slane %v3749_v48, 1 }
 0x251   : > { %v1863_v44 = vpop.f32.mrb[90].mxu1  ;;  %v8388_v37 = vpop.f32.mrb[64].mxu0  ;;  %v3743_v32 = vor.u32 %v3741_v34, %v3740_v22  ;;  %v9284_v34 = vshll.u32 %v8401_v30, 16  ;;  %v3748_v17 = vrot.slane %v3746_v35, 7 }
 0x252   : > { %9281 = vst [vmem:[#allocation13_spill] sm:$0xff] %v8385_v50  ;;  %v8391_v36 = vadd.f32 %v8329_v39, %v1863_v44  ;;  %v1865_v12 = vpop.f32.mrb[91].mxu1  ;;  %v8393_v9 = vpop.f32.mrb[65].mxu0  ;;  %v3934_v39 = vsel %vm1409_vm3, %v3932_v5, %v3933_v51  ;;  %v3937_v44 = vsel %vm1409_vm3, %v3935_v57, %v3936_v49  ;;  %v3938_v5 = vor.u32 %v3936_v49, %v3746_v35 }
 0x253   : > { %v8398_v58 = vpop.f32.mrb[66].mxu0  ;;  %v3744_v6 = vsel %vm1190_vm0, %v3732_v20, %v3743_v32  ;;  %v9292_v50 = vshrl.u32 %v8406_v23, 16 }
 0x254   : > { %9282 = vst [vmem:[#allocation14_spill] sm:$0xff] %v8391_v36  ;;  %4298 = vmatmul.mubr.bf16.gmra.mrb[196].mxu1 %v3736_v45  ;;  %v2152_v13 = vpop.f32.mrb[67].mxu0 }
 0x255   : > { %4305 = vmatprep.mubr.bf16.mxu1 %v6924_v11  ;;  %v3939_v13 = vrot.slane %v9241_v47, 1  ;;  %v3754_v11 = vshrl.u32 %v8395_v56, 16  ;;  %v3772_v8 = vrot.slane %v9292_v50, 7  ;;  %v9293_v50 = vshll.u32 %v8406_v23, 16 }
 0x256   : > { %6630 = vmatmul.mubr.bf16.gmra.mrb[172].mxu0 %v3934_v39 }
 0x257   : > { %v1868_v46 = vpop.f32.mrb[92].mxu1  ;;  %6633 = vmatprep.mubr.bf16.mxu0 %v3937_v44  ;;  %v3942_v44 = vrot.slane %v9284_v34, 1 }
 0x258   : > { %v1870_v45 = vpop.f32.mrb[93].mxu1  ;;  %v3941_v46 = vor.u32 %v3939_v13, %v3754_v11 }
 0x259   : > { %v1871_v27 = vpop.f32.mrb[94].mxu1  ;;  %v8412_v51 = vpop.f32.mrb[68].mxu0  ;;  %v9242_v45 = vshll.u32 %v8406_v23, 16 }
 0x25a   : > { %v8415_v57 = vadd.f32 %v8327_v62, %v1871_v27  ;;  %v1873_v39 = vpop.f32.mrb[95].mxu1  ;;  %v2165_v12 = vpop.f32.mrb[69].mxu0  ;;  %v3940_v27 = vsel %vm1409_vm3, %v3938_v5, %v3939_v13  ;;  %v3943_v62 = vsel %vm1409_vm3, %v3941_v46, %v3942_v44 }
 0x25b   : > { %v6544_v47 = vpop.f32.mrb[70].mxu0  ;;  %v3945_v49 = vrot.slane %v9242_v45, 1  ;;  %v9243_v12 = vshll.u32 %v8423_v59, 16 }
 0x25c   : > { %9283 = vst [vmem:[#allocation15_spill] sm:$0xff] %v8415_v57  ;;  %4306 = vmatmul.mubr.bf16.gmra.mrb[200].mxu1 %v3744_v6  ;;  %v8421_v36 = vpop.f32.mrb[71].mxu0  ;;  %v3751_v47 = vor.u32 %v3749_v48, %v3748_v17  ;;  %v3762_v6 = vshrl.u32 %v8401_v30, 16 }
 0x25d   : > { %4313 = vmatprep.mubr.bf16.mxu1 %v8378_v7  ;;  %v9244_v7 = vshrl.u32 %v8406_v23, 16  ;;  %v3948_v48 = vrot.slane %v9243_v12, 1 }
 0x25e   : > { %6634 = vmatmul.mubr.bf16.gmra.mrb[176].mxu0 %v3940_v27  ;;  %v3944_v39 = vor.u32 %v3942_v44, %v3762_v6  ;;  %v8448_v44 = vld [vmem:[#allocation2 + $0x70] sm:$0xff]  }
 0x25f   : > { %v1876_v20 = vpop.f32.mrb[96].mxu1  ;;  %6637 = vmatprep.mubr.bf16.mxu0 %v3943_v62  ;;  %v3947_v27 = vor.u32 %v3945_v49, %v9244_v7  ;;  %v8442_v62 = vld [vmem:[#allocation2 + $0x68] sm:$0xff]   ;;  %v9286_v7 = vshll.u32 %v8395_v56, 16 }
 0x260   : > { %v8433_v32 = vadd.f32 %v8346_v55, %v1876_v20  ;;  %v1878_v35 = vpop.f32.mrb[97].mxu1  ;;  %v3752_v55 = vsel %vm1190_vm0, %v3740_v22, %v3751_v47  ;;  %v3756_v20 = vrot.slane %v3754_v11, 7  ;;  %v9247_v22 = vshrl.u32 %v8423_v59, 16 }
 0x261   : > { %v1879_v13 = vpop.f32.mrb[98].mxu1  ;;  %v8436_v5 = vpop.f32.mrb[72].mxu0 }
 0x262   : > { %9285 = vst [vmem:[#allocation16_spill] sm:$0xff] %v8433_v32  ;;  %v1881_v46 = vpop.f32.mrb[99].mxu1  ;;  %v2973_v34 = vpop.f32.mrb[73].mxu0  ;;  %v9245_v13 = vshll.u32 %v8442_v62, 16  ;;  %v3759_v32 = vor.u32 %v9286_v7, %v3756_v20 }
 0x263   : > { %v8444_v45 = vpop.f32.mrb[74].mxu0  ;;  %v3946_v46 = vsel %vm1409_vm3, %v3944_v39, %v3945_v49  ;;  %v3949_v34 = vsel %vm1409_vm3, %v3947_v27, %v3948_v48  ;;  %v3764_v49 = vrot.slane %v3762_v6, 7 }
 0x264   : > { %v2976_v35 = vpop.f32.mrb[75].mxu0  ;;  %4314 = vmatmul.mubr.bf16.gmra.mrb[204].mxu1 %v3752_v55  ;;  %v3951_v55 = vrot.slane %v9245_v13, 1  ;;  %v3760_v13 = vsel %vm1190_vm0, %v3748_v17, %v3759_v32  ;;  %v8484_v17 = vld [vmem:[#allocation2 + $0x88] sm:$0xff]   ;;  %v9290_v32 = vshll.u32 %v8401_v30, 16 }
 0x265   : > { %4321 = vmatprep.mubr.bf16.mxu1 %v8395_v56  ;;  %v9246_v35 = vshrl.u32 %v8442_v62, 16 }
 0x266   : > { %6638 = vmatmul.mubr.bf16.gmra.mrb[180].mxu0 %v3946_v46  ;;  %v3950_v46 = vor.u32 %v3948_v48, %v9247_v22 }
 0x267   : > { %v1884_v12 = vpop.f32.mrb[100].mxu1  ;;  %6641 = vmatprep.mubr.bf16.mxu0 %v3949_v34 }
 0x268   : > { %v8457_v11 = vadd.f32 %v8341_v28, %v1884_v12  ;;  %v1886_v47 = vpop.f32.mrb[101].mxu1  ;;  %v3953_v28 = vor.u32 %v3951_v55, %v9246_v35  ;;  %v8470_v12 = vld [vmem:[#allocation2 + $0x78] sm:$0xff]  }
 0x269   : > { %v1887_v39 = vpop.f32.mrb[102].mxu1  ;;  %v2979_v27 = vpop.f32.mrb[76].mxu0 }
 0x26a   : > { %9287 = vst [vmem:[#allocation17_spill] sm:$0xff] %v8457_v11  ;;  %v8466_v56 = vadd.f32 %v8350_v18, %v1887_v39  ;;  %v1889_v7 = vpop.f32.mrb[103].mxu1  ;;  %v2981_v34 = vpop.f32.mrb[77].mxu0  ;;  %v9289_v27 = vshll.u32 %v8448_v44, 16  ;;  %v9248_v18 = vshll.u32 %v8470_v12, 16  ;;  %v8478_v39 = vld [vmem:[#allocation2 + $0x80] sm:$0xff]  }
 0x26b   : > { %v8472_v47 = vpop.f32.mrb[78].mxu0  ;;  %v3952_v7 = vsel %vm1409_vm3, %v3950_v46, %v3951_v55  ;;  %v9249_v35 = vshll.u32 %v8478_v39, 16  ;;  %v9251_v55 = vshrl.u32 %v8470_v12, 16 }
 0x26c   : > { %9288 = vst [vmem:[#allocation18_spill] sm:$0xff] %v8466_v56  ;;  %v2984_v11 = vpop.f32.mrb[79].mxu0  ;;  %4322 = vmatmul.mubr.bf16.gmra.mrb[208].mxu1 %v3760_v13  ;;  %v3954_v48 = vrot.slane %v9289_v27, 1  ;;  %v3767_v13 = vor.u32 %v9290_v32, %v3764_v49  ;;  %v3957_v22 = vrot.slane %v9248_v18, 1  ;;  %v9250_v18 = vshll.u32 %v8484_v17, 16 }
 0x26d   : > { %4329 = vmatprep.mubr.bf16.mxu1 %v8401_v30  ;;  %v9252_v11 = vshrl.u32 %v8448_v44, 16 }
 0x26e   : > { %6642 = vmatmul.mubr.bf16.gmra.mrb[184].mxu0 %v3952_v7  ;;  %v3955_v34 = vsel %vm1409_vm3, %v3953_v28, %v3954_v48  ;;  %v3959_v32 = vor.u32 %v3957_v22, %v9251_v55  ;;  %v3768_v57 = vsel %vm1190_vm0, %v3756_v20, %v3767_v13  ;;  %v3775_v13 = vor.u32 %v9293_v50, %v3772_v8  ;;  %v8530_v50 = vld [vmem:[#allocation2 + $0x98] sm:$0xff]  }
 0x26f   : > { %v1892_v6 = vpop.f32.mrb[104].mxu1  ;;  %6645 = vmatprep.mubr.bf16.mxu0 %v3955_v34  ;;  %v3956_v28 = vor.u32 %v3954_v48, %v9252_v11 }
 0x270   : > { %v1894_v27 = vpop.f32.mrb[105].mxu1 }
 0x271   : > { %v1895_v46 = vpop.f32.mrb[106].mxu1  ;;  %v8492_v7 = vpop.f32.mrb[80].mxu0  ;;  %v3960_v27 = vrot.slane %v9249_v35, 1 }
 0x272   : > { %v8497_v6 = vadd.f32 %v8366_v60, %v1895_v46  ;;  %v1897_v34 = vpop.f32.mrb[107].mxu1  ;;  %v2989_v30 = vpop.f32.mrb[81].mxu0  ;;  %v8507_v60 = vld [vmem:[#allocation2 + $0x90] sm:$0xff]   ;;  %v3958_v46 = vsel %vm1409_vm3, %v3956_v28, %v3957_v22  ;;  %v9254_v22 = vshrl.u32 %v8484_v17, 16 }
 0x273   : > { %v2990_v56 = vpop.f32.mrb[82].mxu0  ;;  %v3961_v34 = vsel %vm1409_vm3, %v3959_v32, %v3960_v27  ;;  %v3963_v30 = vrot.slane %v9250_v18, 1 }
 0x274   : > { %9291 = vst [vmem:[#allocation19_spill] sm:$0xff] %v8497_v6  ;;  %v2992_v48 = vpop.f32.mrb[83].mxu0  ;;  %4330 = vmatmul.mubr.bf16.gmra.mrb[212].mxu1 %v3768_v57  ;;  %v9253_v56 = vshll.u32 %v8507_v60, 16  ;;  %v9255_v57 = vshrl.u32 %v8478_v39, 16  ;;  %v9256_v6 = vshrl.u32 %v8507_v60, 16 }
 0x275   : > { %4337 = vmatprep.mubr.bf16.mxu1 %v8406_v23  ;;  %v3965_v23 = vor.u32 %v3963_v30, %v9254_v22  ;;  %v9296_v22 = vshll.u32 %v8423_v59, 16 }
 0x276   : > { %6646 = vmatmul.mubr.bf16.gmra.mrb[188].mxu0 %v3958_v46  ;;  %v3962_v46 = vor.u32 %v3960_v27, %v9255_v57 }
 0x277   : > { %v1900_v20 = vpop.f32.mrb[108].mxu1  ;;  %6649 = vmatprep.mubr.bf16.mxu0 %v3961_v34  ;;  %v3966_v34 = vrot.slane %v9253_v56, 1 }
 0x278   : > { %v8519_v48 = vadd.f32 %v8358_v3, %v1900_v20  ;;  %v1902_v35 = vpop.f32.mrb[109].mxu1  ;;  %v8532_v3 = vld [vmem:[#allocation2 + $0xa0] sm:$0xff]   ;;  %v3776_v20 = vsel %vm1190_vm0, %v3764_v49, %v3775_v13  ;;  %v3964_v49 = vsel %vm1409_vm3, %v3962_v46, %v3963_v30  ;;  %v9298_v30 = vshll.u32 %v8530_v50, 16 }
 0x279   : > { %v1903_v28 = vpop.f32.mrb[110].mxu1  ;;  %v8522_v32 = vpop.f32.mrb[84].mxu0  ;;  %v3967_v13 = vsel %vm1409_vm3, %v3965_v23, %v3966_v34  ;;  %v9257_v23 = vshrl.u32 %v8530_v50, 16 }
 0x27a   : > { %9294 = vst [vmem:[#allocation20_spill] sm:$0xff] %v8519_v48  ;;  %v1905_v18 = vpop.f32.mrb[111].mxu1  ;;  %v2997_v55 = vpop.f32.mrb[85].mxu0  ;;  %v9295_v28 = vshrl.u32 %v8423_v59, 16  ;;  %v3969_v46 = vrot.slane %v9298_v30, 1  ;;  %v9300_v30 = vshll.u32 %v8532_v3, 16 }
 0x27b   : > { %v8534_v35 = vpop.f32.mrb[86].mxu0  ;;  %v6944_v18 = vld [vmem:[%s9223_s5] ss:$8 sps:$4 sm:$0xff]   ;;  %v6946_v55 = vld [vmem:[%s9223_s5 + $0x4] ss:$8 sps:$4 sm:$0xff]  }
 0x27c   : > { %v8539_v11 = vrot.slane %v9295_v28, 7  ;;  %v3000_v27 = vpop.f32.mrb[87].mxu0  ;;  %4338 = vmatmul.mubr.bf16.gmra.mrb[216].mxu1 %v3776_v20  ;;  %5126 = vmatprep.subr.bf16.mxu0 %v6946_v55 }
 0x27d   : > { %4345 = vmatprep.mubr.bf16.mxu1 %v8423_v59  ;;  %5127 = vmatpush1.bf16.msra.mxu0 %v6944_v18  ;;  %v3968_v59 = vor.u32 %v3966_v34, %v9256_v6  ;;  %v8569_v18 = vld [vmem:[#allocation2 + $0xa8] sm:$0xff]   ;;  %v8578_v6 = vld [vmem:[#allocation2 + $0xb0] sm:$0xff]  }
 0x27e   : > { %6650 = vmatmul.mubr.bf16.gmra.mrb[192].mxu0 %v3964_v49  ;;  %v3783_v57 = vor.u32 %v9296_v22, %v8539_v11 }
 0x27f   : > { %v1908_v28 = vpop.f32.mrb[112].mxu1  ;;  %6653 = vmatprep.mubr.bf16.mxu0 %v3967_v13 }
 0x280   : > { %v8557_v27 = vadd.f32 %v8373_v19, %v1908_v28  ;;  %v1910_v56 = vpop.f32.mrb[113].mxu1  ;;  %v3971_v19 = vor.u32 %v3969_v46, %v9257_v23  ;;  %v3784_v28 = vsel %vm1190_vm0, %v3772_v8, %v3783_v57  ;;  %v6949_v8 = vld [vmem:[%s9223_s5 + $0x14] ss:$8 sps:$4 sm:$0xff]   ;;  %v3970_v57 = vsel %vm1409_vm3, %v3968_v59, %v3969_v46 }
 0x281   : > { %v1911_v55 = vpop.f32.mrb[114].mxu1  ;;  %v3003_v49 = vpop.f32.mrb[88].mxu0  ;;  %5128 = vmatprep.subr.bf16.mxu0 %v6949_v8  ;;  %v9261_v23 = vshrl.u32 %v8532_v3, 16  ;;  %v9260_v46 = vshrl.u32 %v8569_v18, 16 }
 0x282   : > { %9297 = vst [vmem:[#allocation21_spill] sm:$0xff] %v8557_v27  ;;  %v8565_v22 = vadd.f32 %v8380_v63, %v1911_v55  ;;  %v1913_v13 = vpop.f32.mrb[115].mxu1  ;;  %v3005_v20 = vpop.f32.mrb[89].mxu0  ;;  %v3972_v49 = vrot.slane %v9300_v30, 1  ;;  %v9301_v27 = vshrl.u32 %v8442_v62, 16  ;;  %v9302_v30 = vshll.u32 %v8442_v62, 16 }
 0x283   : > { %v8571_v56 = vpop.f32.mrb[90].mxu0  ;;  %v6947_v55 = vld [vmem:[%s9223_s5 + $0x10] ss:$8 sps:$4 sm:$0xff]   ;;  %v9258_v13 = vshll.u32 %v8578_v6, 16 }
 0x284   : > { %9299 = vst [vmem:[#allocation22_spill] sm:$0xff] %v8565_v22  ;;  %v3788_v34 = vrot.slane %v9301_v27, 7  ;;  %v3008_v63 = vpop.f32.mrb[91].mxu0  ;;  %4346 = vmatmul.mubr.bf16.gmra.mrb[220].mxu1 %v3784_v28  ;;  %v3973_v27 = vsel %vm1409_vm3, %v3971_v19, %v3972_v49  ;;  %5129 = vmatpush1.bf16.msra.mxu0 %v6947_v55  ;;  %v9303_v22 = vshll.u32 %v8569_v18, 16  ;;  %v3974_v19 = vor.u32 %v3972_v49, %v9261_v23 }
 0x285   : > { %4353 = vmatprep.mubr.bf16.mxu1 %v8442_v62 }
 0x286   : > { %6654 = vmatmul.mubr.bf16.gmra.mrb[196].mxu0 %v3970_v57  ;;  %v3791_v63 = vor.u32 %v9302_v30, %v3788_v34  ;;  %v3975_v48 = vrot.slane %v9303_v22, 1  ;;  %v9304_v30 = vshrl.u32 %v8448_v44, 16 }
 0x287   : > { %v1916_v28 = vpop.f32.mrb[116].mxu1  ;;  %6657 = vmatprep.mubr.bf16.mxu0 %v3973_v27 }
 0x288   : > { %v1918_v20 = vpop.f32.mrb[117].mxu1  ;;  %v3977_v55 = vor.u32 %v3975_v48, %v9260_v46  ;;  %v3792_v28 = vsel %vm1190_vm0, %v8539_v11, %v3791_v63  ;;  %v3796_v4 = vrot.slane %v9304_v30, 7  ;;  %v9259_v63 = vshrl.u32 %v8578_v6, 16  ;;  %v3578_v30 = vld [vmem:[#allocation2 + $0xd0] sm:$0xf] }
 0x289   : > { %v1919_v59 = vpop.f32.mrb[118].mxu1  ;;  %v8597_v57 = vpop.f32.mrb[92].mxu0  ;;  %v3978_v20 = vrot.slane %v9258_v13, 1 }
 0x28a   : > { %v8602_v8 = vadd.f32 %v8376_v40, %v1919_v59  ;;  %v1921_v62 = vpop.f32.mrb[119].mxu1  ;;  %v3013_v27 = vpop.f32.mrb[93].mxu0  ;;  %v3976_v40 = vsel %vm1409_vm3, %v3974_v19, %v3975_v48  ;;  %v9305_v59 = vshll.u32 %v7934_v24, 16 }
 0x28b   : > { %v3014_v22 = vpop.f32.mrb[94].mxu0  ;;  %v3979_v49 = vsel %vm1409_vm3, %v3977_v55, %v3978_v20  ;;  %v3980_v19 = vor.u32 %v3978_v20, %v9259_v63  ;;  %v6950_v55 = vld [vmem:[%s9223_s5 + $0x20] ss:$8 sps:$4 sm:$0xff]   ;;  %v9309_v63 = vshrl.u32 %v8470_v12, 16 }
 0x28c   : > { %v3016_v25 = vpop.f32.mrb[95].mxu0  ;;  %4354 = vmatmul.mubr.bf16.gmra.mrb[224].mxu1 %v3792_v28  ;;  %v3981_v62 = vrot.slane %v9305_v59, 1  ;;  %v9306_v22 = vshll.u32 %v8448_v44, 16 }
 0x28d   : > { %4361 = vmatprep.mubr.bf16.mxu1 %v8448_v44  ;;  %v6952_v44 = vld [vmem:[%s9223_s5 + $0x24] ss:$8 sps:$4 sm:$0xff]   ;;  %v3804_v46 = vrot.slane %v9309_v63, 7 }
 0x28e   : > { %6658 = vmatmul.mubr.bf16.gmra.mrb[200].mxu0 %v3976_v40  ;;  %v3799_v11 = vor.u32 %v9306_v22, %v3796_v4  ;;  %v8638_v22 = vcombine.low %v3578_v30, %v8309_v43  ;;  %5130 = vmatprep.subr.bf16.mxu0 %v6952_v44  ;;  %v9310_v43 = vshll.u32 %v8065_v2, 16  ;;  %v9312_v44 = vshrl.u32 %v8065_v2, 16 }
 0x28f   : > { %v1924_v27 = vpop.f32.mrb[120].mxu1  ;;  %6661 = vmatprep.mubr.bf16.mxu0 %v3979_v49  ;;  %5131 = vmatpush1.bf16.msra.mxu0 %v6950_v55 }
 0x290   : > { %v8621_v25 = vadd.f32 %v8393_v9, %v1924_v27  ;;  %v1926_v28 = vpop.f32.mrb[121].mxu1  ;;  %v9307_v9 = vshrl.u32 %v7934_v24, 16  ;;  %v3982_v24 = vsel %vm1409_vm3, %v3980_v19, %v3981_v62  ;;  %v3987_v30 = vrot.slane %v9310_v43, 1 }
 0x291   : > { %v1927_v13 = vpop.f32.mrb[122].mxu1  ;;  %v8623_v48 = vpop.f32.mrb[96].mxu0  ;;  %v3800_v28 = vsel %vm1190_vm0, %v3788_v34, %v3799_v11  ;;  %v9311_v11 = vshll.u32 %v8470_v12, 16  ;;  %v6032_v19 = vcombine.low %v8292_v53, %v8292_v53 }
 0x292   : > { %v1929_v40 = vpop.f32.mrb[123].mxu1  ;;  %v3021_v49 = vpop.f32.mrb[97].mxu0  ;;  %v3983_v59 = vor.u32 %v3981_v62, %v9307_v9  ;;  %v9308_v13 = vshll.u32 %v7937_v54, 16  ;;  %v3989_v62 = vor.u32 %v3987_v30, %v9312_v44 }
 0x293   : > { %v8640_v20 = vpop.f32.mrb[98].mxu0  ;;  %v3893_v49 = vshll.u32 %v8638_v22, 16  ;;  %v3807_v63 = vor.u32 %v9311_v11, %v3804_v46 }
 0x294   : > { %v3984_v27 = vrot.slane %v9308_v13, 1  ;;  %v3024_v23 = vpop.f32.mrb[99].mxu0  ;;  %4362 = vmatmul.mubr.bf16.gmra.mrb[228].mxu1 %v3800_v28  ;;  %v9313_v13 = vshrl.u32 %v7937_v54, 16 }
 0x295   : > { %4369 = vmatprep.mubr.bf16.mxu1 %v8470_v12  ;;  %v3808_v2 = vsel %vm1190_vm0, %v3796_v4, %v3807_v63  ;;  %v3890_v63 = vshrl.u32 %v8638_v22, 16 }
 0x296   : > { %6662 = vmatmul.mubr.bf16.gmra.mrb[204].mxu0 %v3982_v24  ;;  %v3985_v40 = vsel %vm1409_vm3, %v3983_v59, %v3984_v27  ;;  %v3986_v28 = vor.u32 %v3984_v27, %v9313_v13  ;;  %v6955_v27 = vld [vmem:[%s9223_s5 + $0x34] ss:$8 sps:$4 sm:$0xff]  }
 0x297   : > { %v1932_v34 = vpop.f32.mrb[124].mxu1  ;;  %6665 = vmatprep.mubr.bf16.mxu0 %v3985_v40  ;;  %5132 = vmatprep.subr.bf16.mxu0 %v6955_v27 }
 0x298   : > { %v8654_v23 = vadd.f32 %v8388_v37, %v1932_v34  ;;  %v1934_v55 = vpop.f32.mrb[125].mxu1  ;;  %v3990_v37 = vrot.slane %v3893_v49, 1  ;;  %v9314_v34 = vshrl.u32 %v8478_v39, 16  ;;  %v3988_v4 = vsel %vm1409_vm3, %v3986_v28, %v3987_v30 }
 0x299   : > { %v1935_v9 = vpop.f32.mrb[126].mxu1  ;;  %v3027_v59 = vpop.f32.mrb[100].mxu0  ;;  %v4019_v55 = vshll.u32 %v6032_v19, 16  ;;  %v6958_v19 = vld [vmem:[%s9223_s5 + $0x44] ss:$8 sps:$4 sm:$0xff]  }
 0x29a   : > { %v8663_v24 = vadd.f32 %v8398_v58, %v1935_v9  ;;  %v1937_v12 = vpop.f32.mrb[127].mxu1  ;;  %v3029_v40 = vpop.f32.mrb[101].mxu0  ;;  %v3812_v53 = vrot.slane %v9314_v34, 7  ;;  %v3991_v54 = vsel %vm1409_vm3, %v3989_v62, %v3990_v37  ;;  %v6953_v58 = vld [vmem:[%s9223_s5 + $0x30] ss:$8 sps:$4 sm:$0xff]   ;;  %v9315_v62 = vshll.u32 %v8478_v39, 16 }
 0x29b   : > { %v8667_v43 = vpop.f32.mrb[102].mxu0  ;;  %5133 = vmatpush1.bf16.msra.mxu0 %v6953_v58  ;;  %v6956_v59 = vld [vmem:[%s9223_s5 + $0x40] ss:$8 sps:$4 sm:$0xff]   ;;  %v3992_v12 = vor.u32 %v3990_v37, %v3890_v63  ;;  %v4021_v40 = vrot.slane %v4019_v55, 1  ;;  %v9316_v58 = vshrl.u32 %v8484_v17, 16 }
 0x29c   : > { %v3032_v11 = vpop.f32.mrb[103].mxu0  ;;  %4370 = vmatmul.mubr.bf16.gmra.mrb[232].mxu1 %v3808_v2  ;;  %v3815_v9 = vor.u32 %v9315_v62, %v3812_v53  ;;  %5134 = vmatprep.subr.bf16.mxu0 %v6958_v19 }
 0x29d   : > { %4377 = vmatprep.mubr.bf16.mxu1 %v8478_v39  ;;  %v3820_v27 = vrot.slane %v9316_v58, 7  ;;  %v4023_v37 = vsel %vm7823_vm5, %v3992_v12, %v4021_v40 }
 0x29e   : > { %6666 = vmatmul.mubr.bf16.gmra.mrb[208].mxu0 %v3988_v4 }
 0x29f   : > { %v1940_v44 = vpop.f32.mrb[128].mxu1  ;;  %6669 = vmatprep.mubr.bf16.mxu0 %v3991_v54  ;;  %v3816_v54 = vsel %vm1190_vm0, %v3804_v46, %v3815_v9  ;;  %5135 = vmatpush1.bf16.msra.mxu0 %v6956_v59 }
 0x2a0   : > { %v1942_v13 = vpop.f32.mrb[129].mxu1 }
 0x2a1   : > { %v1943_v30 = vpop.f32.mrb[130].mxu1  ;;  %v8690_v28 = vpop.f32.mrb[104].mxu0 }
 0x2a2   : > { %v8695_v39 = vadd.f32 %v8421_v36, %v1943_v30  ;;  %v1945_v2 = vpop.f32.mrb[131].mxu1  ;;  %v3037_v34 = vpop.f32.mrb[105].mxu0  ;;  %v9317_v36 = vshll.u32 %v8484_v17, 16 }
 0x2a3   : > { %v3038_v11 = vpop.f32.mrb[106].mxu0  ;;  %v6962_v34 = vld [vmem:[%s9223_s5 + $0x60] ss:$8 sps:$4 sm:$0xff]  }
 0x2a4   : > { %v3040_v4 = vpop.f32.mrb[107].mxu0  ;;  %4378 = vmatmul.mubr.bf16.gmra.mrb[236].mxu1 %v3816_v54  ;;  %v3823_v44 = vor.u32 %v9317_v36, %v3820_v27  ;;  %v6964_v11 = vld [vmem:[%s9223_s5 + $0x64] ss:$8 sps:$4 sm:$0xff]  }
 0x2a5   : > { %4385 = vmatprep.mubr.bf16.mxu1 %v8484_v17  ;;  %v6961_v17 = vld [vmem:[%s9223_s5 + $0x54] ss:$8 sps:$4 sm:$0xff]  }
 0x2a6   : > { %6670 = vmatmul.mubr.bf16.gmra.mrb[212].mxu0 %v4023_v37  ;;  %v3824_v12 = vsel %vm1190_vm0, %v3812_v53, %v3823_v44  ;;  %5136 = vmatprep.subr.bf16.mxu0 %v6961_v17  ;;  %v9319_v53 = vshll.u32 %v8507_v60, 16 }
 0x2a7   : > { %v1948_v55 = vpop.f32.mrb[132].mxu1  ;;  %5158 = vmatprep.mubr.bf16.mxu0 %v9276_v21  ;;  %5137 = vmatpush1.bf16.msra.mxu0 %v6959_v52 }
 0x2a8   : > { %v8707_v46 = vadd.f32 %v8412_v51, %v1948_v55  ;;  %v1950_v62 = vpop.f32.mrb[133].mxu1  ;;  %v9318_v51 = vshrl.u32 %v8507_v60, 16  ;;  %5138 = vmatprep.subr.bf16.mxu0 %v6964_v11 }
 0x2a9   : > { %v1951_v9 = vpop.f32.mrb[134].mxu1  ;;  %v8709_v59 = vpop.f32.mrb[108].mxu0 }
 0x2aa   : > { %v1953_v19 = vpop.f32.mrb[135].mxu1  ;;  %v3045_v13 = vpop.f32.mrb[109].mxu0  ;;  %v3828_v40 = vrot.slane %v9318_v51, 7 }
 0x2ab   : > { %v8717_v30 = vpop.f32.mrb[110].mxu0  ;;  %5139 = vmatpush1.bf16.msra.mxu0 %v6962_v34  ;;  %v6965_v19 = vld [vmem:[%s9223_s5 + $0x70] ss:$8 sps:$4 sm:$0xff]  }
 0x2ac   : > { %v3048_v2 = vpop.f32.mrb[111].mxu0  ;;  %4386 = vmatmul.mubr.bf16.gmra.mrb[240].mxu1 %v3824_v12  ;;  %v3831_v58 = vor.u32 %v9319_v53, %v3828_v40 }
 0x2ad   : > { %4393 = vmatprep.mubr.bf16.mxu1 %v8507_v60  ;;  %v6967_v60 = vld [vmem:[%s9223_s5 + $0x74] ss:$8 sps:$4 sm:$0xff]  }
 0x2ae   : > { %v3832_v17 = vsel %vm1190_vm0, %v3820_v27, %v3831_v58  ;;  %5140 = vmatprep.subr.bf16.mxu0 %v6967_v60 }
 0x2af   : > { %v6563_v54 = vpop.f32.mrb[136].mxu1  ;;  %5141 = vmatpush1.bf16.msra.mxu0 %v6965_v19 }
 0x2b0   : > { %v3196_v4 = vpop.f32.mrb[137].mxu1 }
 0x2b1   : > { %v3197_v37 = vadd.f32 %v3196_v4, %v8436_v5  ;;  %v3051_v55 = vpop.f32.mrb[112].mxu0  ;;  %v6564_v36 = vpop.f32.mrb[138].mxu1 }
 0x2b2   : > { %v3208_v44 = vadd.f32 %v6564_v36, %v8472_v47  ;;  %v3053_v62 = vpop.f32.mrb[113].mxu0  ;;  %v3199_v9 = vpop.f32.mrb[139].mxu1  ;;  %v9320_v47 = vshrl.u32 %v8530_v50, 16 }
 0x2b3   : > { %v8740_v13 = vadd.f32 %v3197_v37, %v8152_v33  ;;  %v3200_v5 = vadd.f32 %v3199_v9, %v8444_v45  ;;  %v8743_v52 = vpop.f32.mrb[114].mxu0  ;;  %v9321_v45 = vshll.u32 %v8530_v50, 16 }
 0x2b4   : > { %v3836_v12 = vrot.slane %v9320_v47, 7  ;;  %v8749_v51 = vadd.f32 %v3208_v44, %v8158_v42  ;;  %v3056_v2 = vpop.f32.mrb[115].mxu0  ;;  %4394 = vmatmul.mubr.bf16.gmra.mrb[244].mxu1 %v3832_v17 }
 0x2b5   : > { %v8752_v34 = vadd.f32 %v3200_v5, %v8164_v61  ;;  %4401 = vmatprep.mubr.bf16.mxu1 %v8530_v50  ;;  %v9324_v2 = vshrl.u32 %v8569_v18, 16 }
 0x2b6   : > { %v3839_v11 = vor.u32 %v9321_v45, %v3836_v12 }
 0x2b7   : > { %v6567_v33 = vpop.f32.mrb[140].mxu1 }
 0x2b8   : > { %v3221_v27 = vadd.f32 %v6567_v33, %v8522_v32  ;;  %v3212_v54 = vpop.f32.mrb[141].mxu1  ;;  %v3840_v44 = vsel %vm1190_vm0, %v3828_v40, %v3839_v11  ;;  %v9322_v32 = vshrl.u32 %v8532_v3, 16  ;;  %v3852_v33 = vrot.slane %v9324_v2, 7 }
 0x2b9   : > { %v3213_v53 = vadd.f32 %v3212_v54, %v8492_v7  ;;  %v8759_v42 = vpop.f32.mrb[116].mxu0  ;;  %v6568_v58 = vpop.f32.mrb[142].mxu1 }
 0x2ba   : > { %v8762_v4 = vadd.f32 %v3221_v27, %v8209_v0  ;;  %v3224_v61 = vadd.f32 %v6568_v58, %v8534_v35  ;;  %v3061_v37 = vpop.f32.mrb[117].mxu0  ;;  %v3215_v55 = vpop.f32.mrb[143].mxu1  ;;  %v3844_v62 = vrot.slane %v9322_v32, 7  ;;  %v9323_v35 = vshll.u32 %v8532_v3, 16 }
 0x2bb   : > { %v8766_v36 = vadd.f32 %v3213_v53, %v8204_v14  ;;  %v3062_v50 = vpop.f32.mrb[118].mxu0 }
 0x2bc   : > { %v8772_v7 = vadd.f32 %v3224_v61, %v8218_v41  ;;  %v3064_v9 = vpop.f32.mrb[119].mxu0  ;;  %4402 = vmatmul.mubr.bf16.gmra.mrb[248].mxu1 %v3840_v44  ;;  %v3847_v19 = vor.u32 %v9323_v35, %v3844_v62  ;;  %v9326_v44 = vshrl.u32 %v8578_v6, 16 }
 0x2bd   : > { %4409 = vmatprep.mubr.bf16.mxu1 %v8532_v3 }
 0x2be   : > { %v3848_v3 = vsel %vm1190_vm0, %v3836_v12, %v3847_v19  ;;  %v3860_v32 = vrot.slane %v9326_v44, 7  ;;  %v9327_v19 = vshll.u32 %v8578_v6, 16 }
 0x2bf   : > { %v6571_v0 = vpop.f32.mrb[144].mxu1 }
 0x2c0   : > { %v3237_v14 = vadd.f32 %v6571_v0, %v8597_v57  ;;  %v3228_v60 = vpop.f32.mrb[145].mxu1 }
 0x2c1   : > { %v8778_v5 = vpop.f32.mrb[120].mxu0  ;;  %v6572_v40 = vpop.f32.mrb[146].mxu1 }
 0x2c2   : > { %v8781_v17 = vadd.f32 %v3237_v14, %v8256_v26  ;;  %v3069_v47 = vpop.f32.mrb[121].mxu0  ;;  %v3231_v41 = vpop.f32.mrb[147].mxu1  ;;  %v9325_v26 = vshll.u32 %v8569_v18, 16  ;;  %v3863_v14 = vor.u32 %v9327_v19, %v3860_v32 }
 0x2c3   : > { %v3232_v45 = vadd.f32 %v3231_v41, %v8571_v56  ;;  %v8786_v11 = vpop.f32.mrb[122].mxu0 }
 0x2c4   : > { %v3072_v27 = vpop.f32.mrb[123].mxu0  ;;  %4410 = vmatmul.mubr.bf16.gmra.mrb[252].mxu1 %v3848_v3  ;;  %v3855_v54 = vor.u32 %v9325_v26, %v3852_v33  ;;  %v3864_v3 = vsel %vm1190_vm0, %v3852_v33, %v3863_v14 }
 0x2c5   : > { %v8790_v57 = vadd.f32 %v3232_v45, %v8244_v38  ;;  %4417 = vmatprep.mubr.bf16.mxu1 %v8569_v18 }
 0x2c6   : > { %v3856_v0 = vsel %vm1190_vm0, %v3844_v62, %v3855_v54 }
 0x2c7   : > { %v6575_v53 = vpop.f32.mrb[148].mxu1 }
 0x2c8   : > { %v3244_v58 = vpop.f32.mrb[149].mxu1 }
 0x2c9   : > { %v3245_v61 = vadd.f32 %v3244_v58, %v8623_v48  ;;  %v3075_v37 = vpop.f32.mrb[124].mxu0  ;;  %v6576_v56 = vpop.f32.mrb[150].mxu1  ;;  %v9328_v58 = vld [vmem:[#allocation12_spill] sm:$0xff] }
 0x2ca   : > { %v3256_v55 = vadd.f32 %v6576_v56, %v8667_v43  ;;  %v3077_v50 = vpop.f32.mrb[125].mxu0  ;;  %v3247_v12 = vpop.f32.mrb[151].mxu1 }
 0x2cb   : > { %v8800_v38 = vadd.f32 %v3245_v61, %v8267_v1  ;;  %v3248_v9 = vadd.f32 %v3247_v12, %v8640_v20  ;;  %v3078_v18 = vpop.f32.mrb[126].mxu0  ;;  %v9330_v12 = vld [vmem:[#allocation11_spill] sm:$0xff] }
 0x2cc   : > { %v8805_v35 = vadd.f32 %v3256_v55, %v8296_v29  ;;  %v3080_v48 = vpop.f32.mrb[127].mxu0  ;;  %4418 = vmatmul.mubr.bf16.gmra.mrb[0].mxu1 %v3856_v0 }
 0x2cd   : > { %v8808_v43 = vadd.f32 %v3248_v9, %v8275_v16  ;;  %4425 = vmatprep.mubr.bf16.mxu1 %v8578_v6 }
 0x2cf   : > { %v6579_v1 = vpop.f32.mrb[152].mxu1 }
 0x2d0   : > { %v3269_v60 = vadd.f32 %v6579_v1, %v8709_v59  ;;  %v3260_v20 = vpop.f32.mrb[153].mxu1 }
 0x2d1   : > { %v3261_v40 = vadd.f32 %v3260_v20, %v8690_v28  ;;  %v3083_v62 = vpop.f32.mrb[128].mxu0  ;;  %v6580_v47 = vpop.f32.mrb[154].mxu1  ;;  %v6971_v28 = vld [vmem:[#allocation2 + $0xb8] sm:$0xff]   ;;  %v9331_v20 = vld [vmem:[#allocation13_spill] sm:$0xff] }
 0x2d2   : > { %v8816_v29 = vadd.f32 %v3269_v60, %v8337_v15  ;;  %v3272_v41 = vadd.f32 %v6580_v47, %v8717_v30  ;;  %v3085_v16 = vpop.f32.mrb[129].mxu0  ;;  %v3263_v2 = vpop.f32.mrb[155].mxu1 }
 0x2d3   : > { %v8820_v45 = vadd.f32 %v3261_v40, %v8315_v10  ;;  %v3086_v6 = vpop.f32.mrb[130].mxu0 }
 0x2d4   : > { %v8824_v59 = vadd.f32 %v3272_v41, %v8344_v31  ;;  %v3088_v27 = vpop.f32.mrb[131].mxu0  ;;  %4426 = vmatmul.mubr.bf16.gmra.mrb[4].mxu1 %v3864_v3  ;;  %v9329_v31 = vld [vmem:[#allocation7_spill] sm:$0xff]  ;;  %v9333_v6 = vld [vmem:[#allocation8_spill] sm:$0xff]  ;;  %v9334_v3 = vld [vmem:[#allocation14_spill] sm:$0xff] }
 0x2d5   : > { %4433 = vmatprep.mubr.bf16.mxu1 %v6971_v28  ;;  %v3872_v55 = vsel %vm1190_vm0, %v3860_v32, %v9329_v31  ;;  %v9332_v41 = vld [vmem:[#allocation15_spill] sm:$0xff] }
 0x2d7   : > { %v6583_v26 = vpop.f32.mrb[156].mxu1 }
 0x2d8   : > { %v3285_v15 = vadd.f32 %v6583_v26, %v8759_v42  ;;  %v3276_v54 = vpop.f32.mrb[157].mxu1  ;;  %v6972_v42 = vld [vmem:[#allocation2 + $0xc0] sm:$0xff]  }
 0x2d9   : > { %v3091_v30 = vpop.f32.mrb[132].mxu0  ;;  %v6584_v53 = vpop.f32.mrb[158].mxu1 }
 0x2da   : > { %v8828_v61 = vadd.f32 %v3285_v15, %v9328_v58  ;;  %v3093_v10 = vpop.f32.mrb[133].mxu0  ;;  %v3279_v37 = vpop.f32.mrb[159].mxu1  ;;  %v3892_v15 = vrot.slane %v3890_v63, 7  ;;  %v9335_v58 = vld [vmem:[#allocation17_spill] sm:$0xff] }
 0x2db   : > { %v3280_v33 = vadd.f32 %v3279_v37, %v8743_v52  ;;  %v3094_v56 = vpop.f32.mrb[134].mxu0 }
 0x2dc   : > { %v3096_v50 = vpop.f32.mrb[135].mxu0  ;;  %4434 = vmatmul.mubr.bf16.gmra.mrb[8].mxu1 %v3872_v55  ;;  %v9336_v55 = vld [vmem:[#allocation16_spill] sm:$0xff]  ;;  %v3895_v63 = vor.u32 %v3893_v49, %v3892_v15  ;;  %v9341_v49 = vld [vmem:[#allocation19_spill] sm:$0xff] }
 0x2dd   : > { %v8834_v44 = vadd.f32 %v3280_v33, %v9330_v12  ;;  %4441 = vmatprep.mubr.bf16.mxu1 %v6972_v42  ;;  %v9337_v42 = vld [vmem:[#allocation18_spill] sm:$0xff] }
 0x2df   : > { %v6587_v9 = vpop.f32.mrb[160].mxu1 }
 0x2e0   : > { %v3292_v0 = vpop.f32.mrb[161].mxu1 }
 0x2e1   : > { %v3293_v48 = vadd.f32 %v3292_v0, %v8778_v5  ;;  %v3099_v19 = vpop.f32.mrb[136].mxu0  ;;  %v6588_v14 = vpop.f32.mrb[162].mxu1  ;;  %v6973_v5 = vld [vmem:[#allocation2 + $0xc8] sm:$0xff]   ;;  %v9338_v0 = vld [vmem:[#allocation10_spill] sm:$0xff] }
 0x2e2   : > { %v3304_v1 = vadd.f32 %v6588_v14, %v3078_v18  ;;  %v3101_v60 = vpop.f32.mrb[137].mxu0  ;;  %v3295_v52 = vpop.f32.mrb[163].mxu1 }
 0x2e3   : > { %v8838_v40 = vadd.f32 %v3293_v48, %v9331_v20  ;;  %v3296_v32 = vadd.f32 %v3295_v52, %v8786_v11  ;;  %v3102_v47 = vpop.f32.mrb[138].mxu0  ;;  %v9340_v52 = vld [vmem:[#allocation20_spill] sm:$0xff] }
 0x2e4   : > { %v8842_v16 = vadd.f32 %v3304_v1, %v9332_v41  ;;  %v3104_v2 = vpop.f32.mrb[139].mxu0  ;;  %4442 = vmatmul.mubr.bf16.gmra.mrb[12].mxu1 %v9333_v6  ;;  %v9339_v1 = vld [vmem:[#allocation9_spill] sm:$0xff] }
 0x2e5   : > { %v8846_v27 = vadd.f32 %v3296_v32, %v9334_v3  ;;  %4449 = vmatprep.mubr.bf16.mxu1 %v6973_v5  ;;  %v3896_v60 = vsel %vm1190_vm0, %v9339_v1, %v3895_v63 }
 0x2e7   : > { %v6591_v18 = vpop.f32.mrb[164].mxu1 }
 0x2e8   : > { %v3317_v28 = vadd.f32 %v6591_v18, %v3091_v30  ;;  %v3308_v26 = vpop.f32.mrb[165].mxu1 }
 0x2e9   : > { %v3309_v54 = vadd.f32 %v3308_v26, %v3083_v62  ;;  %v3107_v11 = vpop.f32.mrb[140].mxu0  ;;  %v6592_v53 = vpop.f32.mrb[166].mxu1 }
 0x2ea   : > { %v8851_v10 = vadd.f32 %v3317_v28, %v9335_v58  ;;  %v3320_v37 = vadd.f32 %v6592_v53, %v3094_v56  ;;  %v3109_v33 = vpop.f32.mrb[141].mxu0  ;;  %v3311_v31 = vpop.f32.mrb[167].mxu1  ;;  %v9342_v53 = vld [vmem:[#allocation21_spill] sm:$0xff] }
 0x2eb   : > { %v8854_v50 = vadd.f32 %v3309_v54, %v9336_v55  ;;  %v3110_v12 = vpop.f32.mrb[142].mxu0  ;;  %v9343_v55 = vld [vmem:[#allocation22_spill] sm:$0xff] }
 0x2ec   : > { %v8857_v9 = vadd.f32 %v3320_v37, %v9337_v42  ;;  %v3112_v30 = vpop.f32.mrb[143].mxu0  ;;  %4450 = vmatmul.mubr.bf16.gmra.mrb[16].mxu1 %v9338_v0 }
 0x2ed   : > { %4457 = vmatprep.mubr.bf16.mxu1 %v8638_v22 }
 0x2ef   : > { %v6595_v62 = vpop.f32.mrb[168].mxu1 }
 0x2f0   : > { %v3333_v48 = vadd.f32 %v6595_v62, %v3107_v11  ;;  %v3324_v56 = vpop.f32.mrb[169].mxu1 }
 0x2f1   : > { %v3115_v19 = vpop.f32.mrb[144].mxu0  ;;  %v6596_v14 = vpop.f32.mrb[170].mxu1 }
 0x2f2   : > { %v8866_v20 = vadd.f32 %v3333_v48, %v9340_v52  ;;  %v3117_v32 = vpop.f32.mrb[145].mxu0  ;;  %v3327_v41 = vpop.f32.mrb[171].mxu1 }
 0x2f3   : > { %v3328_v2 = vadd.f32 %v3327_v41, %v3102_v47  ;;  %v3118_v6 = vpop.f32.mrb[146].mxu0 }
 0x2f4   : > { %v3120_v3 = vpop.f32.mrb[147].mxu0  ;;  %4458 = vmatmul.mubr.bf16.gmra.mrb[20].mxu1 %v3896_v60 }
 0x2f5   : > { %v8869_v5 = vadd.f32 %v3328_v2, %v9341_v49 }
 0x2f7   : > { %v6599_v22 = vpop.f32.mrb[172].mxu1 }
 0x2f8   : > { %v3340_v18 = vpop.f32.mrb[173].mxu1 }
 0x2f9   : > { %v3341_v28 = vadd.f32 %v3340_v18, %v3115_v19  ;;  %v3123_v26 = vpop.f32.mrb[148].mxu0  ;;  %v6600_v15 = vpop.f32.mrb[174].mxu1 }
 0x2fa   : > { %v3125_v54 = vpop.f32.mrb[149].mxu0  ;;  %v3343_v11 = vpop.f32.mrb[175].mxu1 }
 0x2fb   : > { %v8872_v58 = vadd.f32 %v3341_v28, %v9342_v53  ;;  %v3344_v37 = vadd.f32 %v3343_v11, %v3118_v6  ;;  %v3126_v33 = vpop.f32.mrb[150].mxu0 }
 0x2fc   : > { %v3352_v31 = vadd.f32 %v6600_v15, %v3126_v33  ;;  %v3128_v47 = vpop.f32.mrb[151].mxu0 }
 0x2fd   : > { %v8875_v12 = vadd.f32 %v3344_v37, %v9343_v55 }
 0x2fe   : > { %v8878_v42 = vadd.f32 %v3352_v31, %v8602_v8 }
 0x2ff   : > { %v6603_v30 = vpop.f32.mrb[176].mxu1 }
 0x300   : > { %v3356_v0 = vpop.f32.mrb[177].mxu1 }
 0x301   : > { %v3131_v63 = vpop.f32.mrb[152].mxu0  ;;  %v6604_v62 = vpop.f32.mrb[178].mxu1 }
 0x302   : > { %v3357_v48 = vadd.f32 %v3356_v0, %v3131_v63  ;;  %v3133_v56 = vpop.f32.mrb[153].mxu0  ;;  %v3359_v19 = vpop.f32.mrb[179].mxu1 }
 0x303   : > { %v3134_v14 = vpop.f32.mrb[154].mxu0 }
 0x304   : > { %v8881_v1 = vadd.f32 %v3357_v48, %v8621_v25  ;;  %v3136_v60 = vpop.f32.mrb[155].mxu0 }
 0x307   : > { %v6607_v52 = vpop.f32.mrb[180].mxu1 }
 0x308   : > { %v3372_v32 = vpop.f32.mrb[181].mxu1 }
 0x309   : > { %v3139_v41 = vpop.f32.mrb[156].mxu0  ;;  %v6608_v2 = vpop.f32.mrb[182].mxu1 }
 0x30a   : > { %v3365_v6 = vadd.f32 %v6603_v30, %v3139_v41  ;;  %v3141_v3 = vpop.f32.mrb[157].mxu0  ;;  %v3375_v8 = vpop.f32.mrb[183].mxu1 }
 0x30b   : > { %v3142_v49 = vpop.f32.mrb[158].mxu0 }
 0x30c   : > { %v8884_v22 = vadd.f32 %v3365_v6, %v8654_v23  ;;  %v3368_v18 = vadd.f32 %v6604_v62, %v3142_v49  ;;  %v3144_v28 = vpop.f32.mrb[159].mxu0  ;;  %v8898_v49 = vld [vmem:[%s9222_s4] ss:$0 sm:$0xff] }
 0x30e   : > { %v8887_v26 = vadd.f32 %v3368_v18, %v8663_v24 }
 0x30f   : > { %v4275_v15 = vpop.f32.mrb[184].mxu1 }
 0x310   : > { %v4277_v25 = vpop.f32.mrb[185].mxu1 }
 0x311   : > { %v3147_v54 = vpop.f32.mrb[160].mxu0  ;;  %v4278_v11 = vpop.f32.mrb[186].mxu1 }
 0x312   : > { %v3149_v53 = vpop.f32.mrb[161].mxu0  ;;  %v4280_v37 = vpop.f32.mrb[187].mxu1 }
 0x313   : > { %v3150_v33 = vpop.f32.mrb[162].mxu0 }
 0x314   : > { %v3376_v31 = vadd.f32 %v3375_v8, %v3150_v33  ;;  %v3152_v47 = vpop.f32.mrb[163].mxu0 }
 0x316   : > { %v8890_v55 = vadd.f32 %v3376_v31, %v8695_v39 }
 0x317   : > { %v4283_v30 = vpop.f32.mrb[188].mxu1 }
 0x318   : > { %v4285_v23 = vpop.f32.mrb[189].mxu1 }
 0x319   : > { %v3155_v0 = vpop.f32.mrb[164].mxu0  ;;  %v4286_v63 = vpop.f32.mrb[190].mxu1 }
 0x31a   : > { %v3381_v62 = vadd.f32 %v6607_v52, %v3155_v0  ;;  %v3157_v48 = vpop.f32.mrb[165].mxu0  ;;  %v4288_v24 = vpop.f32.mrb[191].mxu1 }
 0x31b   : > { %v3158_v56 = vpop.f32.mrb[166].mxu0 }
 0x31c   : > { %v8893_v19 = vadd.f32 %v3381_v62, %v8707_v46  ;;  %v3160_v14 = vpop.f32.mrb[167].mxu0 }
 0x31f   : > { %v4291_v60 = vpop.f32.mrb[192].mxu1 }
 0x320   : > { %v4293_v32 = vpop.f32.mrb[193].mxu1 }
 0x321   : > { %v4294_v41 = vpop.f32.mrb[194].mxu1  ;;  %v6627_v2 = vpop.f32.mrb[168].mxu0 }
 0x322   : > { %v4296_v6 = vpop.f32.mrb[195].mxu1  ;;  %v4500_v3 = vpop.f32.mrb[169].mxu0 }
 0x323   : > { %v4501_v39 = vadd.f32 %v4500_v3, %v4275_v15  ;;  %v6628_v8 = vpop.f32.mrb[170].mxu0 }
 0x324   : > { %v4512_v52 = vadd.f32 %v6628_v8, %v4286_v63  ;;  %v4503_v18 = vpop.f32.mrb[171].mxu0 }
 0x325   : > { %v4739_v28 = vadd.f32 %v4501_v39, %v8740_v13  ;;  %v4504_v46 = vadd.f32 %v4503_v18, %v4278_v11 }
 0x326   : > { %v4742_v25 = vadd.f32 %v4512_v52, %v8749_v51 }
 0x327   : > { %v4874_v54 = vadd.f32 %v8898_v49, %v4739_v28  ;;  %v4740_v53 = vadd.f32 %v4504_v46, %v8752_v34  ;;  %v4299_v37 = vpop.f32.mrb[196].mxu1 }
 0x328   : > { %v4301_v33 = vpop.f32.mrb[197].mxu1  ;;  %v4876_v56 = vadd.f32 %v8898_v49, %v4742_v25 }
 0x329   : > { %v4875_v15 = vadd.f32 %v8898_v49, %v4740_v53  ;;  %v4302_v31 = vpop.f32.mrb[198].mxu1  ;;  %v6631_v47 = vpop.f32.mrb[172].mxu0  ;;  %v4906_v63 = vmax.f32 %v4874_v54, 0.0 }
 0x32a   : > { %v4525_v30 = vadd.f32 %v6631_v47, %v4299_v37  ;;  %v4304_v23 = vpop.f32.mrb[199].mxu1  ;;  %v4516_v0 = vpop.f32.mrb[173].mxu0 }
 0x32b   : > { %v4907_v62 = vmax.f32 %v4875_v15, 0.0  ;;  %v4517_v48 = vadd.f32 %v4516_v0, %v4291_v60  ;;  %v6632_v13 = vpop.f32.mrb[174].mxu0 }
 0x32c   : > { %v4745_v11 = vadd.f32 %v4525_v30, %v8762_v4  ;;  %v4528_v51 = vadd.f32 %v6632_v13, %v4302_v31  ;;  %v4519_v24 = vpop.f32.mrb[175].mxu0  ;;  %v4908_v4 = vmax.f32 %v4876_v56, 0.0 }
 0x32d   : > { %v4938_v34 = vpack.c.bf16 %v4907_v62, %v4906_v63  ;;  %v4743_v14 = vadd.f32 %v4517_v48, %v8766_v36 }
 0x32e   : > { %v4878_v32 = vadd.f32 %v8898_v49, %v4745_v11  ;;  %v4746_v41 = vadd.f32 %v4528_v51, %v8772_v7 }
 0x32f   : > { %v4877_v2 = vadd.f32 %v8898_v49, %v4743_v14  ;;  %v4307_v6 = vpop.f32.mrb[200].mxu1  ;;  %5159 = vmatmul.mubr.bf16.vlgmr.msra.gmra.mrb[216].mxu0 %v4938_v34 }
 0x330   : > { %v4879_v60 = vadd.f32 %v8898_v49, %v4746_v41  ;;  %v4309_v3 = vpop.f32.mrb[201].mxu1  ;;  %5168 = vmatprep.mubr.bf16.mxu0 %v9276_v21  ;;  %v4910_v18 = vmax.f32 %v4878_v32, 0.0 }
 0x331   : > { %v4909_v39 = vmax.f32 %v4877_v2, 0.0  ;;  %v4310_v8 = vpop.f32.mrb[202].mxu1  ;;  %v6635_v52 = vpop.f32.mrb[176].mxu0 }
 0x332   : > { %v4911_v28 = vmax.f32 %v4879_v60, 0.0  ;;  %v4312_v36 = vpop.f32.mrb[203].mxu1  ;;  %v4532_v46 = vpop.f32.mrb[177].mxu0 }
 0x333   : > { %v6636_v25 = vpop.f32.mrb[178].mxu0  ;;  %v4939_v54 = vpack.c.bf16 %v4909_v39, %v4908_v4 }
 0x334   : > { %v4535_v7 = vpop.f32.mrb[179].mxu0  ;;  %v4940_v53 = vpack.c.bf16 %v4911_v28, %v4910_v18 }
 0x335   : > { %v4536_v37 = vadd.f32 %v4535_v7, %v4310_v8 }
 0x337   : > { %v4748_v33 = vadd.f32 %v4536_v37, %v8790_v57  ;;  %v4315_v15 = vpop.f32.mrb[204].mxu1  ;;  %5169 = vmatmul.mubr.bf16.gmra.mrb[220].mxu0 %v4939_v54 }
 0x338   : > { %v4541_v31 = vadd.f32 %v6635_v52, %v4315_v15  ;;  %v4317_v47 = vpop.f32.mrb[205].mxu1  ;;  %5178 = vmatprep.mubr.bf16.mxu0 %v9276_v21 }
 0x339   : > { %v4318_v30 = vpop.f32.mrb[206].mxu1  ;;  %v6639_v23 = vpop.f32.mrb[180].mxu0  ;;  %v4880_v0 = vadd.f32 %v8898_v49, %v4748_v33 }
 0x33a   : > { %v4749_v63 = vadd.f32 %v4541_v31, %v8781_v17  ;;  %v4320_v62 = vpop.f32.mrb[207].mxu1  ;;  %v4548_v48 = vpop.f32.mrb[181].mxu0 }
 0x33b   : > { %v6640_v13 = vpop.f32.mrb[182].mxu0  ;;  %v4912_v24 = vmax.f32 %v4880_v0, 0.0 }
 0x33c   : > { %v4881_v11 = vadd.f32 %v8898_v49, %v4749_v63  ;;  %v4551_v51 = vpop.f32.mrb[183].mxu0 }
 0x33e   : > { %v4913_v57 = vmax.f32 %v4881_v11, 0.0 }
 0x33f   : > { %v4323_v56 = vpop.f32.mrb[208].mxu1  ;;  %5179 = vmatmul.mubr.bf16.gmra.mrb[224].mxu0 %v4940_v53 }
 0x340   : > { %v4549_v34 = vadd.f32 %v4548_v48, %v4323_v56  ;;  %v4325_v14 = vpop.f32.mrb[209].mxu1  ;;  %5188 = vmatprep.mubr.bf16.mxu0 %v9276_v21  ;;  %v4941_v32 = vpack.c.bf16 %v4913_v57, %v4912_v24 }
 0x341   : > { %v4326_v41 = vpop.f32.mrb[210].mxu1  ;;  %v6643_v2 = vpop.f32.mrb[184].mxu0 }
 0x342   : > { %v4751_v6 = vadd.f32 %v4549_v34, %v8800_v38  ;;  %v4552_v17 = vadd.f32 %v4551_v51, %v4326_v41  ;;  %v4328_v60 = vpop.f32.mrb[211].mxu1  ;;  %v4564_v3 = vpop.f32.mrb[185].mxu0 }
 0x343   : > { %v6644_v4 = vpop.f32.mrb[186].mxu0 }
 0x344   : > { %v4882_v39 = vadd.f32 %v8898_v49, %v4751_v6  ;;  %v4752_v8 = vadd.f32 %v4552_v17, %v8808_v43  ;;  %v4567_v52 = vpop.f32.mrb[187].mxu0 }
 0x346   : > { %v4883_v18 = vadd.f32 %v8898_v49, %v4752_v8  ;;  %v4914_v36 = vmax.f32 %v4882_v39, 0.0 }
 0x347   : > { %v4331_v28 = vpop.f32.mrb[212].mxu1  ;;  %5189 = vmatmul.mubr.bf16.gmra.mrb[228].mxu0 %v4941_v32 }
 0x348   : > { %v4915_v46 = vmax.f32 %v4883_v18, 0.0  ;;  %v4333_v25 = vpop.f32.mrb[213].mxu1  ;;  %5198 = vmatprep.mubr.bf16.mxu0 %v9276_v21 }
 0x349   : > { %v4334_v54 = vpop.f32.mrb[214].mxu1  ;;  %v6647_v38 = vpop.f32.mrb[188].mxu0 }
 0x34a   : > { %v4560_v7 = vadd.f32 %v6640_v13, %v4334_v54  ;;  %v4336_v53 = vpop.f32.mrb[215].mxu1  ;;  %v4580_v37 = vpop.f32.mrb[189].mxu0  ;;  %v4942_v33 = vpack.c.bf16 %v4915_v46, %v4914_v36 }
 0x34b   : > { %v6648_v15 = vpop.f32.mrb[190].mxu0 }
 0x34c   : > { %v4754_v31 = vadd.f32 %v4560_v7, %v8805_v35  ;;  %v4583_v43 = vpop.f32.mrb[191].mxu0 }
 0x34e   : > { %v4884_v62 = vadd.f32 %v8898_v49, %v4754_v31 }
 0x34f   : > { %v4339_v47 = vpop.f32.mrb[216].mxu1  ;;  %5199 = vmatmul.mubr.bf16.gmra.mrb[232].mxu0 %v4942_v33 }
 0x350   : > { %v4565_v30 = vadd.f32 %v4564_v3, %v4339_v47  ;;  %v4341_v23 = vpop.f32.mrb[217].mxu1  ;;  %5208 = vmatprep.mubr.bf16.mxu0 %v9276_v21  ;;  %v4916_v57 = vmax.f32 %v4884_v62, 0.0 }
 0x351   : > { %v4342_v0 = vpop.f32.mrb[218].mxu1  ;;  %v6651_v63 = vpop.f32.mrb[192].mxu0 }
 0x352   : > { %v4755_v48 = vadd.f32 %v4565_v30, %v8820_v45  ;;  %v4344_v13 = vpop.f32.mrb[219].mxu1  ;;  %v4596_v11 = vpop.f32.mrb[193].mxu0 }
 0x353   : > { %v8928_v51 = vpop.f32.mrb[194].mxu0 }
 0x354   : > { %v4885_v24 = vadd.f32 %v8898_v49, %v4755_v48  ;;  %v4599_v35 = vpop.f32.mrb[195].mxu0 }
 0x356   : > { %v4917_v56 = vmax.f32 %v4885_v24, 0.0 }
 0x357   : > { %v4347_v34 = vpop.f32.mrb[220].mxu1 }
 0x358   : > { %v4573_v14 = vadd.f32 %v6643_v2, %v4347_v34  ;;  %v4349_v32 = vpop.f32.mrb[221].mxu1  ;;  %v4943_v41 = vpack.c.bf16 %v4917_v56, %v4916_v57 }
 0x359   : > { %v4350_v6 = vpop.f32.mrb[222].mxu1  ;;  %v8931_v17 = vpop.f32.mrb[196].mxu0 }
 0x35a   : > { %v4757_v60 = vadd.f32 %v4573_v14, %v8816_v29  ;;  %v4576_v3 = vadd.f32 %v6644_v4, %v4350_v6  ;;  %v4352_v45 = vpop.f32.mrb[223].mxu1  ;;  %v8934_v39 = vpop.f32.mrb[197].mxu0  ;;  %5209 = vmatmul.mubr.bf16.gmra.mrb[236].mxu0 %v4943_v41 }
 0x35b   : > { %v8936_v8 = vpop.f32.mrb[198].mxu0  ;;  %5218 = vmatprep.mubr.bf16.mxu0 %v9276_v21 }
 0x35c   : > { %v4886_v52 = vadd.f32 %v8898_v49, %v4757_v60  ;;  %v4758_v2 = vadd.f32 %v4576_v3, %v8824_v59  ;;  %v4615_v18 = vpop.f32.mrb[199].mxu0 }
 0x35e   : > { %v4887_v28 = vadd.f32 %v8898_v49, %v4758_v2  ;;  %v4918_v46 = vmax.f32 %v4886_v52, 0.0 }
 0x35f   : > { %v4355_v36 = vpop.f32.mrb[224].mxu1 }
 0x360   : > { %v4919_v25 = vmax.f32 %v4887_v28, 0.0  ;;  %v4357_v29 = vpop.f32.mrb[225].mxu1 }
 0x361   : > { %v4358_v4 = vpop.f32.mrb[226].mxu1  ;;  %v8942_v54 = vpop.f32.mrb[200].mxu0 }
 0x362   : > { %v4584_v7 = vadd.f32 %v4583_v43, %v4358_v4  ;;  %v4360_v53 = vpop.f32.mrb[227].mxu1  ;;  %v4628_v37 = vpop.f32.mrb[201].mxu0  ;;  %v4944_v33 = vpack.c.bf16 %v4919_v25, %v4918_v46 }
 0x363   : > { %v6660_v15 = vpop.f32.mrb[202].mxu0 }
 0x364   : > { %v4760_v31 = vadd.f32 %v4584_v7, %v8834_v44  ;;  %v8945_v47 = vpop.f32.mrb[203].mxu0  ;;  %5219 = vmatmul.mubr.bf16.gmra.mrb[240].mxu0 %v4944_v33 }
 0x365   : > { %5228 = vmatprep.mubr.bf16.mxu0 %v9276_v21 }
 0x366   : > { %v4888_v62 = vadd.f32 %v8898_v49, %v4760_v31 }
 0x367   : > { %v4363_v59 = vpop.f32.mrb[228].mxu1 }
 0x368   : > { %v4589_v30 = vadd.f32 %v6647_v38, %v4363_v59  ;;  %v4365_v23 = vpop.f32.mrb[229].mxu1  ;;  %v4920_v56 = vmax.f32 %v4888_v62, 0.0 }
 0x369   : > { %v4366_v0 = vpop.f32.mrb[230].mxu1  ;;  %v6663_v63 = vpop.f32.mrb[204].mxu0 }
 0x36a   : > { %v4761_v43 = vadd.f32 %v4589_v30, %v8828_v61  ;;  %v4368_v48 = vpop.f32.mrb[231].mxu1  ;;  %v8950_v13 = vpop.f32.mrb[205].mxu0 }
 0x36b   : > { %v8952_v24 = vpop.f32.mrb[206].mxu0 }
 0x36c   : > { %v4889_v44 = vadd.f32 %v8898_v49, %v4761_v43  ;;  %v8955_v57 = vpop.f32.mrb[207].mxu0 }
 0x36e   : > { %v4921_v34 = vmax.f32 %v4889_v44, 0.0 }
 0x36f   : > { %v4371_v14 = vpop.f32.mrb[232].mxu1 }
 0x370   : > { %v4597_v38 = vadd.f32 %v4596_v11, %v4371_v14  ;;  %v4373_v32 = vpop.f32.mrb[233].mxu1  ;;  %v4945_v41 = vpack.c.bf16 %v4921_v34, %v4920_v56 }
 0x371   : > { %v4374_v6 = vpop.f32.mrb[234].mxu1  ;;  %v8957_v60 = vpop.f32.mrb[208].mxu0 }
 0x372   : > { %v4763_v61 = vadd.f32 %v4597_v38, %v8838_v40  ;;  %v4600_v3 = vadd.f32 %v4599_v35, %v4374_v6  ;;  %v4376_v45 = vpop.f32.mrb[235].mxu1  ;;  %v8960_v52 = vpop.f32.mrb[209].mxu0  ;;  %5229 = vmatmul.mubr.bf16.gmra.mrb[244].mxu0 %v4945_v41 }
 0x373   : > { %v8962_v2 = vpop.f32.mrb[210].mxu0  ;;  %5238 = vmatprep.mubr.bf16.mxu0 %v9276_v21 }
 0x374   : > { %v4890_v18 = vadd.f32 %v8898_v49, %v4763_v61  ;;  %v4764_v11 = vadd.f32 %v4600_v3, %v8846_v27  ;;  %v4663_v28 = vpop.f32.mrb[211].mxu0 }
 0x376   : > { %v4891_v36 = vadd.f32 %v8898_v49, %v4764_v11  ;;  %v4922_v25 = vmax.f32 %v4890_v18, 0.0 }
 0x377   : > { %v4379_v46 = vpop.f32.mrb[236].mxu1 }
 0x378   : > { %v4923_v29 = vmax.f32 %v4891_v36, 0.0  ;;  %v4381_v40 = vpop.f32.mrb[237].mxu1 }
 0x379   : > { %v4382_v35 = vpop.f32.mrb[238].mxu1  ;;  %v8968_v4 = vpop.f32.mrb[212].mxu0 }
 0x37a   : > { %v4608_v7 = vadd.f32 %v8928_v51, %v4382_v35  ;;  %v4384_v53 = vpop.f32.mrb[239].mxu1  ;;  %v4676_v37 = vpop.f32.mrb[213].mxu0  ;;  %v4946_v33 = vpack.c.bf16 %v4923_v29, %v4922_v25 }
 0x37b   : > { %v6672_v15 = vpop.f32.mrb[214].mxu0 }
 0x37c   : > { %v4766_v31 = vadd.f32 %v4608_v7, %v8842_v16  ;;  %v8972_v59 = vpop.f32.mrb[215].mxu0  ;;  %5239 = vmatmul.mubr.bf16.gmra.mrb[248].mxu0 %v4946_v33 }
 0x37d   : > { %5248 = vmatprep.mubr.bf16.mxu0 %v9276_v21 }
 0x37e   : > { %v4892_v63 = vadd.f32 %v8898_v49, %v4766_v31 }
 0x37f   : > { %v4387_v27 = vpop.f32.mrb[240].mxu1 }
 0x380   : > { %v4613_v30 = vadd.f32 %v8934_v39, %v4387_v27  ;;  %v4389_v23 = vpop.f32.mrb[241].mxu1  ;;  %v4924_v48 = vmax.f32 %v4892_v63, 0.0 }
 0x381   : > { %v4390_v0 = vpop.f32.mrb[242].mxu1 }
 0x382   : > { %v4767_v51 = vadd.f32 %v4613_v30, %v8854_v50  ;;  %v4392_v62 = vpop.f32.mrb[243].mxu1 }
 0x384   : > { %v4893_v43 = vadd.f32 %v8898_v49, %v4767_v51 }
 0x386   : > { %v4925_v44 = vmax.f32 %v4893_v43, 0.0 }
 0x387   : > { %v4395_v16 = vpop.f32.mrb[244].mxu1 }
 0x388   : > { %v4621_v56 = vadd.f32 %v8931_v17, %v4395_v16  ;;  %v4397_v34 = vpop.f32.mrb[245].mxu1  ;;  %v4947_v14 = vpack.c.bf16 %v4925_v44, %v4924_v48 }
 0x389   : > { %v4398_v38 = vpop.f32.mrb[246].mxu1 }
 0x38a   : > { %v4769_v32 = vadd.f32 %v4621_v56, %v8851_v10  ;;  %v4624_v39 = vadd.f32 %v8936_v8, %v4398_v38  ;;  %v4400_v41 = vpop.f32.mrb[247].mxu1  ;;  %5249 = vmatmul.mubr.bf16.gmra.mrb[252].mxu0 %v4947_v14 }
 0x38b   : > { %5258 = vmatprep.mubr.bf16.mxu0 %v9276_v21 }
 0x38c   : > { %v4894_v50 = vadd.f32 %v8898_v49, %v4769_v32  ;;  %v4770_v6 = vadd.f32 %v4624_v39, %v8857_v9 }
 0x38e   : > { %v4895_v61 = vadd.f32 %v8898_v49, %v4770_v6  ;;  %v4926_v45 = vmax.f32 %v4894_v50, 0.0 }
 0x38f   : > { %v4403_v3 = vpop.f32.mrb[248].mxu1 }
 0x390   : > { %v4927_v17 = vmax.f32 %v4895_v61, 0.0  ;;  %v4405_v18 = vpop.f32.mrb[249].mxu1 }
 0x391   : > { %v4406_v11 = vpop.f32.mrb[250].mxu1 }
 0x392   : > { %v4948_v28 = vpack.c.bf16 %v4927_v17, %v4926_v45  ;;  %v4632_v10 = vadd.f32 %v8945_v47, %v4406_v11  ;;  %v4408_v36 = vpop.f32.mrb[251].mxu1 }
 0x394   : > { %v4772_v8 = vadd.f32 %v4632_v10, %v8869_v5  ;;  %5259 = vmatmul.mubr.bf16.gmra.mrb[0].mxu0 %v4948_v28 }
 0x395   : > { %5268 = vmatprep.mubr.bf16.mxu0 %v9276_v21 }
 0x396   : > { %v4896_v40 = vadd.f32 %v8898_v49, %v4772_v8 }
 0x397   : > { %v4411_v46 = vpop.f32.mrb[252].mxu1 }
 0x398   : > { %v4637_v25 = vadd.f32 %v8942_v54, %v4411_v46  ;;  %v4413_v9 = vpop.f32.mrb[253].mxu1  ;;  %v4928_v37 = vmax.f32 %v4896_v40, 0.0 }
 0x399   : > { %v4414_v29 = vpop.f32.mrb[254].mxu1 }
 0x39a   : > { %v4773_v35 = vadd.f32 %v4637_v25, %v8866_v20  ;;  %v4416_v7 = vpop.f32.mrb[255].mxu1 }
 0x39c   : > { %v4897_v53 = vadd.f32 %v8898_v49, %v4773_v35 }
 0x39e   : > { %v4929_v47 = vmax.f32 %v4897_v53, 0.0 }
 0x39f   : > { %v4419_v33 = vpop.f32.mrb[0].mxu1 }
 0x3a0   : > { %v4949_v15 = vpack.c.bf16 %v4929_v47, %v4928_v37  ;;  %v4645_v5 = vadd.f32 %v8950_v13, %v4419_v33  ;;  %v4421_v31 = vpop.f32.mrb[1].mxu1 }
 0x3a1   : > { %v4422_v27 = vpop.f32.mrb[2].mxu1 }
 0x3a2   : > { %v4775_v30 = vadd.f32 %v4645_v5, %v8872_v58  ;;  %v4648_v54 = vadd.f32 %v8955_v57, %v4422_v27  ;;  %v4424_v23 = vpop.f32.mrb[3].mxu1  ;;  %5269 = vmatmul.mubr.bf16.gmra.mrb[4].mxu0 %v4949_v15 }
 0x3a3   : > { %5278 = vmatprep.mubr.bf16.mxu0 %v9276_v21 }
 0x3a4   : > { %v4898_v20 = vadd.f32 %v8898_v49, %v4775_v30  ;;  %v4776_v0 = vadd.f32 %v4648_v54, %v8875_v12 }
 0x3a6   : > { %v4899_v63 = vadd.f32 %v8898_v49, %v4776_v0  ;;  %v4930_v62 = vmax.f32 %v4898_v20, 0.0 }
 0x3a7   : > { %v4427_v51 = vpop.f32.mrb[4].mxu1 }
 0x3a8   : > { %v4931_v43 = vmax.f32 %v4899_v63, 0.0  ;;  %v4429_v13 = vpop.f32.mrb[5].mxu1  ;;  %v6975_v63 = vld [vmem:[%s7241_s30 + $0x8] sm:$0xff] }
 0x3a9   : > { %v4430_v48 = vpop.f32.mrb[6].mxu1  ;;  %v4972_v51 = vunpack.c.l.bf16 %v6975_v63  ;;  %v4973_v13 = vunpack.c.h.bf16 %v6975_v63 }
 0x3aa   : > { %v4950_v44 = vpack.c.bf16 %v4931_v43, %v4930_v62  ;;  %v4656_v58 = vadd.f32 %v8952_v24, %v4430_v48  ;;  %v4432_v16 = vpop.f32.mrb[7].mxu1 }
 0x3ac   : > { %v4778_v57 = vadd.f32 %v4656_v58, %v8878_v42  ;;  %5279 = vmatmul.mubr.bf16.gmra.mrb[8].mxu0 %v4950_v44 }
 0x3ad   : > { %5288 = vmatprep.mubr.bf16.mxu0 %v9276_v21 }
 0x3ae   : > { %v4900_v38 = vadd.f32 %v8898_v49, %v4778_v57 }
 0x3af   : > { %v4435_v56 = vpop.f32.mrb[8].mxu1 }
 0x3b0   : > { %v4661_v34 = vadd.f32 %v8960_v52, %v4435_v56  ;;  %v4437_v12 = vpop.f32.mrb[9].mxu1  ;;  %v4932_v50 = vmax.f32 %v4900_v38, 0.0 }
 0x3b1   : > { %v4438_v14 = vpop.f32.mrb[10].mxu1 }
 0x3b2   : > { %v4779_v32 = vadd.f32 %v4661_v34, %v8881_v1  ;;  %v4440_v39 = vpop.f32.mrb[11].mxu1 }
 0x3b4   : > { %v4901_v41 = vadd.f32 %v8898_v49, %v4779_v32  ;;  %v6976_v32 = vld [vmem:[%s7241_s30 + $0x10] sm:$0xff] }
 0x3b5   : > { %v4974_v39 = vunpack.c.l.bf16 %v6976_v32 }
 0x3b6   : > { %v4933_v24 = vmax.f32 %v4901_v41, 0.0 }
 0x3b7   : > { %v4443_v6 = vpop.f32.mrb[12].mxu1 }
 0x3b8   : > { %v4951_v61 = vpack.c.bf16 %v4933_v24, %v4932_v50  ;;  %v4669_v42 = vadd.f32 %v8957_v60, %v4443_v6  ;;  %v4445_v3 = vpop.f32.mrb[13].mxu1  ;;  %v4975_v6 = vunpack.c.h.bf16 %v6976_v32 }
 0x3b9   : > { %v4446_v45 = vpop.f32.mrb[14].mxu1  ;;  %v6977_v3 = vld [vmem:[%s7241_s30 + $0x18] sm:$0xff] }
 0x3ba   : > { %v4781_v17 = vadd.f32 %v4669_v42, %v8884_v22  ;;  %v4672_v52 = vadd.f32 %v8962_v2, %v4446_v45  ;;  %v4448_v18 = vpop.f32.mrb[15].mxu1  ;;  %5289 = vmatmul.mubr.bf16.gmra.mrb[12].mxu0 %v4951_v61  ;;  %v4976_v45 = vunpack.c.l.bf16 %v6977_v3 }
 0x3bb   : > { %5298 = vmatprep.mubr.bf16.mxu0 %v9276_v21 }
 0x3bc   : > { %v4902_v1 = vadd.f32 %v8898_v49, %v4781_v17  ;;  %v4782_v11 = vadd.f32 %v4672_v52, %v8887_v26 }
 0x3be   : > { %v4903_v28 = vadd.f32 %v8898_v49, %v4782_v11  ;;  %v4934_v36 = vmax.f32 %v4902_v1, 0.0  ;;  %v4977_v1 = vunpack.c.h.bf16 %v6977_v3 }
 0x3bf   : > { %v4451_v10 = vpop.f32.mrb[16].mxu1 }
 0x3c0   : > { %v4935_v8 = vmax.f32 %v4903_v28, 0.0  ;;  %v4453_v60 = vpop.f32.mrb[17].mxu1 }
 0x3c1   : > { %v4454_v46 = vpop.f32.mrb[18].mxu1 }
 0x3c2   : > { %v4952_v25 = vpack.c.bf16 %v4935_v8, %v4934_v36  ;;  %v4680_v22 = vadd.f32 %v8972_v59, %v4454_v46  ;;  %v4456_v9 = vpop.f32.mrb[19].mxu1 }
 0x3c4   : > { %v4784_v2 = vadd.f32 %v4680_v22, %v8890_v55  ;;  %5299 = vmatmul.mubr.bf16.gmra.mrb[16].mxu0 %v4952_v25 }
 0x3c5   : > { %5308 = vmatprep.mubr.bf16.mxu0 %v9276_v21  ;;  %v5036_v21 = vlaneseq }
 0x3c6   : > { %v4904_v7 = vadd.f32 %v8898_v49, %v4784_v2  ;;  %v6978_v2 = vld [vmem:[%s7241_s30 + $0x20] sm:$0xff] }
 0x3c7   : > { %v4459_v29 = vpop.f32.mrb[20].mxu1  ;;  %v5037_v15 = vshrl.u32 %v5036_v21, 7 }
 0x3c8   : > { %v4685_v40 = vadd.f32 %v8968_v4, %v4459_v29  ;;  %v4461_v26 = vpop.f32.mrb[21].mxu1  ;;  %v4936_v59 = vmax.f32 %v4904_v7, 0.0  ;;  %v5034_v4 = vld [vmem:[%s9224_s6] sm:$0x3]  ;;  %v4978_v29 = vunpack.c.l.bf16 %v6978_v2  ;;  %v4979_v7 = vunpack.c.h.bf16 %v6978_v2 }
 0x3c9   : > { %v4462_v35 = vpop.f32.mrb[22].mxu1  ;;  %v5038_v5 = vsub.s32 0, %v5037_v15  ;;  %v5042_v31 = vsub.s32 1, %v5037_v15 }
 0x3ca   : > { %v4785_v53 = vadd.f32 %v4685_v40, %v8893_v19  ;;  %v4464_v37 = vpop.f32.mrb[23].mxu1 }
 0x3cb   : > { %v9024_v27 = vrot.slane %v5034_v4, %v5038_v5  ;;  %v9026_v19 = vrot.slane %v5034_v4, %v5042_v31 }
 0x3cc   : > { %v4905_v47 = vadd.f32 %v8898_v49, %v4785_v53  ;;  %v6974_v49 = vld [vmem:[%s7241_s30] sm:$0xff] }
 0x3cd   : > { %v4970_v30 = vunpack.c.l.bf16 %v6974_v49  ;;  %v4971_v23 = vunpack.c.h.bf16 %v6974_v49 }
 0x3ce   : > { %v4937_v33 = vmax.f32 %v4905_v47, 0.0  ;;  %v6979_v47 = vld [vmem:[%s7241_s30 + $0x28] sm:$0xff] }
 0x3cf   : > { %v4981_v15 = vunpack.c.h.bf16 %v6979_v47 }
 0x3d0   : > { %v4953_v55 = vpack.c.bf16 %v4937_v33, %v4936_v59  ;;  %v4980_v59 = vunpack.c.l.bf16 %v6979_v47 }
 0x3d2   : > { %5309 = vmatmul.mubr.bf16.gmra.mrb[20].mxu0 %v4953_v55 }
 0x402   : > { %v5160_v54 = vpop.f32.mrb[216].mxu0 }
 0x403   : > { %v5161_v20 = vadd.f32 %v5160_v54, %v9024_v27  ;;  %v5162_v0 = vpop.f32.mrb[217].mxu0 }
 0x404   : > { %v5163_v62 = vadd.f32 %v5162_v0, %v9026_v19  ;;  %v5164_v43 = vpop.f32.mrb[218].mxu0 }
 0x405   : > { %v5319_v48 = vadd.f32 %v5161_v20, %v4970_v30  ;;  %v5165_v44 = vadd.f32 %v5164_v43, %v9024_v27  ;;  %v5166_v58 = vpop.f32.mrb[219].mxu0 }
 0x406   : > { %v5320_v16 = vadd.f32 %v5163_v62, %v4971_v23  ;;  %v5167_v57 = vadd.f32 %v5166_v58, %v9026_v19 }
 0x407   : > { %v5383_v56 = vmax.f32 %v5319_v48, 0.0  ;;  %v5321_v34 = vadd.f32 %v5165_v44, %v4972_v51  ;;  %v6980_v51 = vld [vmem:[%s7241_s30 + $0x30] sm:$0xff] }
 0x408   : > { %v5384_v12 = vmax.f32 %v5320_v16, 0.0  ;;  %v5322_v14 = vadd.f32 %v5167_v57, %v4973_v13  ;;  %v4982_v62 = vunpack.c.l.bf16 %v6980_v51  ;;  %v4983_v44 = vunpack.c.h.bf16 %v6980_v51  ;;  %v6981_v57 = vld [vmem:[%s7241_s30 + $0x38] sm:$0xff] }
 0x409   : > { %v5385_v38 = vmax.f32 %v5321_v34, 0.0 }
 0x40a   : > { %v6192_v41 = vpack.c.bf16 %v5384_v12, %v5383_v56  ;;  %v5386_v50 = vmax.f32 %v5322_v14, 0.0  ;;  %v5170_v24 = vpop.f32.mrb[220].mxu0  ;;  %v4984_v56 = vunpack.c.l.bf16 %v6981_v57 }
 0x40b   : > { %v5171_v61 = vadd.f32 %v5170_v24, %v9024_v27  ;;  %v5172_v42 = vpop.f32.mrb[221].mxu0 }
 0x40c   : > { %5639 = vst [vmem:[%s9040_s18] sm:$0xff] %v6192_v41  ;;  %v6193_v17 = vpack.c.bf16 %v5386_v50, %v5385_v38  ;;  %v5173_v52 = vadd.f32 %v5172_v42, %v9026_v19  ;;  %v5174_v18 = vpop.f32.mrb[222].mxu0  ;;  %v4985_v38 = vunpack.c.h.bf16 %v6981_v57 }
 0x40d   : > { %v5323_v11 = vadd.f32 %v5171_v61, %v4974_v39  ;;  %v5175_v28 = vadd.f32 %v5174_v18, %v9024_v27  ;;  %v5176_v10 = vpop.f32.mrb[223].mxu0 }
 0x40e   : > { %5640 = vst [vmem:[%s9040_s18 + $0x8] sm:$0xff] %v6193_v17  ;;  %v5324_v36 = vadd.f32 %v5173_v52, %v4975_v6  ;;  %v5177_v8 = vadd.f32 %v5176_v10, %v9026_v19  ;;  %v6982_v17 = vld [vmem:[%s7241_s30 + $0x40] sm:$0xff] }
 0x40f   : > { %v5387_v60 = vmax.f32 %v5323_v11, 0.0  ;;  %v5325_v46 = vadd.f32 %v5175_v28, %v4976_v45  ;;  %v4986_v52 = vunpack.c.l.bf16 %v6982_v17  ;;  %v4987_v28 = vunpack.c.h.bf16 %v6982_v17 }
 0x410   : > { %v5388_v25 = vmax.f32 %v5324_v36, 0.0  ;;  %v5326_v22 = vadd.f32 %v5177_v8, %v4977_v1  ;;  %v6983_v8 = vld [vmem:[%s7241_s30 + $0x48] sm:$0xff] }
 0x411   : > { %v5389_v9 = vmax.f32 %v5325_v46, 0.0 }
 0x412   : > { %v6194_v40 = vpack.c.bf16 %v5388_v25, %v5387_v60  ;;  %v5390_v26 = vmax.f32 %v5326_v22, 0.0  ;;  %v5180_v35 = vpop.f32.mrb[224].mxu0  ;;  %v4988_v60 = vunpack.c.l.bf16 %v6983_v8 }
 0x413   : > { %v5181_v53 = vadd.f32 %v5180_v35, %v9024_v27  ;;  %v5182_v37 = vpop.f32.mrb[225].mxu0 }
 0x414   : > { %5641 = vst [vmem:[%s9040_s18 + $0x10] sm:$0xff] %v6194_v40  ;;  %v6195_v33 = vpack.c.bf16 %v5390_v26, %v5389_v9  ;;  %v5183_v55 = vadd.f32 %v5182_v37, %v9026_v19  ;;  %v5184_v21 = vpop.f32.mrb[226].mxu0  ;;  %v4989_v9 = vunpack.c.h.bf16 %v6983_v8 }
 0x415   : > { %v5327_v5 = vadd.f32 %v5181_v53, %v4978_v29  ;;  %v5185_v4 = vadd.f32 %v5184_v21, %v9024_v27  ;;  %v5186_v31 = vpop.f32.mrb[227].mxu0 }
 0x416   : > { %5642 = vst [vmem:[%s9040_s18 + $0x18] sm:$0xff] %v6195_v33  ;;  %v5328_v49 = vadd.f32 %v5183_v55, %v4979_v7  ;;  %v5187_v30 = vadd.f32 %v5186_v31, %v9026_v19 }
 0x417   : > { %v5391_v54 = vmax.f32 %v5327_v5, 0.0  ;;  %v5329_v23 = vadd.f32 %v5185_v4, %v4980_v59 }
 0x418   : > { %v5392_v20 = vmax.f32 %v5328_v49, 0.0  ;;  %v5330_v0 = vadd.f32 %v5187_v30, %v4981_v15  ;;  %v6984_v15 = vld [vmem:[%s7241_s30 + $0x50] sm:$0xff] }
 0x419   : > { %v5393_v63 = vmax.f32 %v5329_v23, 0.0  ;;  %v4990_v5 = vunpack.c.l.bf16 %v6984_v15  ;;  %v4991_v31 = vunpack.c.h.bf16 %v6984_v15 }
 0x41a   : > { %v6196_v43 = vpack.c.bf16 %v5392_v20, %v5391_v54  ;;  %v5394_v13 = vmax.f32 %v5330_v0, 0.0  ;;  %v5190_v48 = vpop.f32.mrb[228].mxu0  ;;  %v6985_v54 = vld [vmem:[%s7241_s30 + $0x58] sm:$0xff] }
 0x41b   : > { %v5191_v58 = vadd.f32 %v5190_v48, %v9024_v27  ;;  %v5192_v16 = vpop.f32.mrb[229].mxu0  ;;  %v4992_v23 = vunpack.c.l.bf16 %v6985_v54 }
 0x41c   : > { %5643 = vst [vmem:[%s9040_s18 + $0x20] sm:$0xff] %v6196_v43  ;;  %v6197_v34 = vpack.c.bf16 %v5394_v13, %v5393_v63  ;;  %v5193_v12 = vadd.f32 %v5192_v16, %v9026_v19  ;;  %v5194_v14 = vpop.f32.mrb[230].mxu0  ;;  %v4993_v63 = vunpack.c.h.bf16 %v6985_v54 }
 0x41d   : > { %v5331_v32 = vadd.f32 %v5191_v58, %v4982_v62  ;;  %v5195_v39 = vadd.f32 %v5194_v14, %v9024_v27  ;;  %v5196_v41 = vpop.f32.mrb[231].mxu0  ;;  %v6986_v14 = vld [vmem:[%s7241_s30 + $0x60] sm:$0xff] }
 0x41e   : > { %5644 = vst [vmem:[%s9040_s18 + $0x28] sm:$0xff] %v6197_v34  ;;  %v5332_v50 = vadd.f32 %v5193_v12, %v4983_v44  ;;  %v5197_v24 = vadd.f32 %v5196_v41, %v9026_v19  ;;  %v4995_v41 = vunpack.c.h.bf16 %v6986_v14 }
 0x41f   : > { %v5395_v6 = vmax.f32 %v5331_v32, 0.0  ;;  %v5333_v61 = vadd.f32 %v5195_v39, %v4984_v56 }
 0x420   : > { %v5396_v42 = vmax.f32 %v5332_v50, 0.0  ;;  %v5334_v3 = vadd.f32 %v5197_v24, %v4985_v38  ;;  %v4994_v38 = vunpack.c.l.bf16 %v6986_v14 }
 0x421   : > { %v5397_v45 = vmax.f32 %v5333_v61, 0.0 }
 0x422   : > { %v6198_v18 = vpack.c.bf16 %v5396_v42, %v5395_v6  ;;  %v5398_v1 = vmax.f32 %v5334_v3, 0.0  ;;  %v5200_v11 = vpop.f32.mrb[232].mxu0  ;;  %v6987_v6 = vld [vmem:[%s7241_s30 + $0x68] sm:$0xff] }
 0x423   : > { %v5201_v10 = vadd.f32 %v5200_v11, %v9024_v27  ;;  %v5202_v36 = vpop.f32.mrb[233].mxu0  ;;  %v4996_v61 = vunpack.c.l.bf16 %v6987_v6 }
 0x424   : > { %5645 = vst [vmem:[%s9040_s18 + $0x30] sm:$0xff] %v6198_v18  ;;  %v6199_v46 = vpack.c.bf16 %v5398_v1, %v5397_v45  ;;  %v5203_v25 = vadd.f32 %v5202_v36, %v9026_v19  ;;  %v5204_v22 = vpop.f32.mrb[234].mxu0  ;;  %v4997_v45 = vunpack.c.h.bf16 %v6987_v6 }
 0x425   : > { %v5335_v2 = vadd.f32 %v5201_v10, %v4986_v52  ;;  %v5205_v29 = vadd.f32 %v5204_v22, %v9024_v27  ;;  %v5206_v40 = vpop.f32.mrb[235].mxu0 }
 0x426   : > { %5646 = vst [vmem:[%s9040_s18 + $0x38] sm:$0xff] %v6199_v46  ;;  %v5336_v26 = vadd.f32 %v5203_v25, %v4987_v28  ;;  %v5207_v35 = vadd.f32 %v5206_v40, %v9026_v19 }
 0x427   : > { %v5399_v7 = vmax.f32 %v5335_v2, 0.0  ;;  %v5337_v53 = vadd.f32 %v5205_v29, %v4988_v60 }
 0x428   : > { %v5400_v37 = vmax.f32 %v5336_v26, 0.0  ;;  %v5338_v47 = vadd.f32 %v5207_v35, %v4989_v9  ;;  %v6988_v9 = vld [vmem:[%s7241_s30 + $0x70] sm:$0xff] }
 0x429   : > { %v5401_v59 = vmax.f32 %v5337_v53, 0.0  ;;  %v4998_v2 = vunpack.c.l.bf16 %v6988_v9  ;;  %v4999_v40 = vunpack.c.h.bf16 %v6988_v9 }
 0x42a   : > { %v6200_v33 = vpack.c.bf16 %v5400_v37, %v5399_v7  ;;  %v5402_v55 = vmax.f32 %v5338_v47, 0.0  ;;  %v6989_v7 = vld [vmem:[%s7241_s30 + $0x78] sm:$0xff] }
 0x42b   : > { %v5000_v53 = vunpack.c.l.bf16 %v6989_v7 }
 0x42c   : > { %5647 = vst [vmem:[%s9040_s18 + $0x40] sm:$0xff] %v6200_v33  ;;  %v6201_v21 = vpack.c.bf16 %v5402_v55, %v5401_v59  ;;  %v5001_v59 = vunpack.c.h.bf16 %v6989_v7 }
 0x42d   : > { %v5210_v4 = vpop.f32.mrb[236].mxu0 }
 0x42e   : > { %5648 = vst [vmem:[%s9040_s18 + $0x48] sm:$0xff] %v6201_v21  ;;  %v5211_v49 = vadd.f32 %v5210_v4, %v9024_v27  ;;  %v5212_v30 = vpop.f32.mrb[237].mxu0 }
 0x42f   : > { %v5213_v20 = vadd.f32 %v5212_v30, %v9026_v19  ;;  %v5214_v0 = vpop.f32.mrb[238].mxu0 }
 0x430   : > { %v5339_v51 = vadd.f32 %v5211_v49, %v4990_v5  ;;  %v5215_v62 = vadd.f32 %v5214_v0, %v9024_v27  ;;  %v5216_v43 = vpop.f32.mrb[239].mxu0  ;;  %v6990_v0 = vld [vmem:[%s7241_s30 + $0x80] sm:$0xff] }
 0x431   : > { %v5340_v13 = vadd.f32 %v5213_v20, %v4991_v31  ;;  %v5217_v48 = vadd.f32 %v5216_v43, %v9026_v19  ;;  %v5003_v43 = vunpack.c.h.bf16 %v6990_v0 }
 0x432   : > { %v5403_v44 = vmax.f32 %v5339_v51, 0.0  ;;  %v5341_v58 = vadd.f32 %v5215_v62, %v4992_v23 }
 0x433   : > { %v5404_v16 = vmax.f32 %v5340_v13, 0.0  ;;  %v5342_v57 = vadd.f32 %v5217_v48, %v4993_v63  ;;  %v5002_v63 = vunpack.c.l.bf16 %v6990_v0 }
 0x434   : > { %v5405_v56 = vmax.f32 %v5341_v58, 0.0 }
 0x435   : > { %v6202_v34 = vpack.c.bf16 %v5404_v16, %v5403_v44  ;;  %v5406_v12 = vmax.f32 %v5342_v57, 0.0  ;;  %v6991_v44 = vld [vmem:[%s7241_s30 + $0x88] sm:$0xff] }
 0x436   : > { %v5004_v58 = vunpack.c.l.bf16 %v6991_v44 }
 0x437   : > { %5649 = vst [vmem:[%s9040_s18 + $0x50] sm:$0xff] %v6202_v34  ;;  %v6203_v32 = vpack.c.bf16 %v5406_v12, %v5405_v56  ;;  %v5220_v39 = vpop.f32.mrb[240].mxu0  ;;  %v5005_v56 = vunpack.c.h.bf16 %v6991_v44 }
 0x438   : > { %v5221_v50 = vadd.f32 %v5220_v39, %v9024_v27  ;;  %v5222_v24 = vpop.f32.mrb[241].mxu0 }
 0x439   : > { %5650 = vst [vmem:[%s9040_s18 + $0x58] sm:$0xff] %v6203_v32  ;;  %v5223_v42 = vadd.f32 %v5222_v24, %v9026_v19  ;;  %v5224_v3 = vpop.f32.mrb[242].mxu0 }
 0x43a   : > { %v5343_v17 = vadd.f32 %v5221_v50, %v4994_v38  ;;  %v5225_v52 = vadd.f32 %v5224_v3, %v9024_v27  ;;  %v5226_v18 = vpop.f32.mrb[243].mxu0 }
 0x43b   : > { %v5344_v1 = vadd.f32 %v5223_v42, %v4995_v41  ;;  %v5227_v11 = vadd.f32 %v5226_v18, %v9026_v19 }
 0x43c   : > { %v5407_v28 = vmax.f32 %v5343_v17, 0.0  ;;  %v5345_v10 = vadd.f32 %v5225_v52, %v4996_v61 }
 0x43d   : > { %v5408_v36 = vmax.f32 %v5344_v1, 0.0  ;;  %v5346_v8 = vadd.f32 %v5227_v11, %v4997_v45  ;;  %v6992_v45 = vld [vmem:[%s7241_s30 + $0x90] sm:$0xff] }
 0x43e   : > { %v5409_v60 = vmax.f32 %v5345_v10, 0.0  ;;  %v5006_v17 = vunpack.c.l.bf16 %v6992_v45  ;;  %v5007_v18 = vunpack.c.h.bf16 %v6992_v45 }
 0x43f   : > { %v6204_v46 = vpack.c.bf16 %v5408_v36, %v5407_v28  ;;  %v5410_v25 = vmax.f32 %v5346_v8, 0.0  ;;  %v6993_v28 = vld [vmem:[%s7241_s30 + $0x98] sm:$0xff] }
 0x440   : > { %v5008_v10 = vunpack.c.l.bf16 %v6993_v28 }
 0x441   : > { %5651 = vst [vmem:[%s9040_s18 + $0x60] sm:$0xff] %v6204_v46  ;;  %v6205_v22 = vpack.c.bf16 %v5410_v25, %v5409_v60  ;;  %v5009_v60 = vunpack.c.h.bf16 %v6993_v28 }
 0x443   : > { %5652 = vst [vmem:[%s9040_s18 + $0x68] sm:$0xff] %v6205_v22 }
 0x445   : > { %v5230_v29 = vpop.f32.mrb[244].mxu0 }
 0x446   : > { %v5231_v26 = vadd.f32 %v5230_v29, %v9024_v27  ;;  %v5232_v35 = vpop.f32.mrb[245].mxu0 }
 0x447   : > { %v5233_v37 = vadd.f32 %v5232_v35, %v9026_v19  ;;  %v5234_v47 = vpop.f32.mrb[246].mxu0 }
 0x448   : > { %v5347_v33 = vadd.f32 %v5231_v26, %v4998_v2  ;;  %v5235_v55 = vadd.f32 %v5234_v47, %v9024_v27  ;;  %v5236_v21 = vpop.f32.mrb[247].mxu0  ;;  %v6994_v47 = vld [vmem:[%s7241_s30 + $0xa0] sm:$0xff] }
 0x449   : > { %v5348_v15 = vadd.f32 %v5233_v37, %v4999_v40  ;;  %v5237_v5 = vadd.f32 %v5236_v21, %v9026_v19  ;;  %v5011_v21 = vunpack.c.h.bf16 %v6994_v47 }
 0x44a   : > { %v5411_v4 = vmax.f32 %v5347_v33, 0.0  ;;  %v5349_v31 = vadd.f32 %v5235_v55, %v5000_v53 }
 0x44b   : > { %v5412_v49 = vmax.f32 %v5348_v15, 0.0  ;;  %v5350_v30 = vadd.f32 %v5237_v5, %v5001_v59  ;;  %v5010_v59 = vunpack.c.l.bf16 %v6994_v47 }
 0x44c   : > { %v5413_v54 = vmax.f32 %v5349_v31, 0.0 }
 0x44d   : > { %v6206_v23 = vpack.c.bf16 %v5412_v49, %v5411_v4  ;;  %v5414_v20 = vmax.f32 %v5350_v30, 0.0  ;;  %v6995_v4 = vld [vmem:[%s7241_s30 + $0xa8] sm:$0xff] }
 0x44e   : > { %v5012_v31 = vunpack.c.l.bf16 %v6995_v4 }
 0x44f   : > { %5653 = vst [vmem:[%s9040_s18 + $0x70] sm:$0xff] %v6206_v23  ;;  %v6207_v51 = vpack.c.bf16 %v5414_v20, %v5413_v54  ;;  %v5240_v62 = vpop.f32.mrb[248].mxu0  ;;  %v5013_v54 = vunpack.c.h.bf16 %v6995_v4 }
 0x450   : > { %v5241_v13 = vadd.f32 %v5240_v62, %v9024_v27  ;;  %v5242_v48 = vpop.f32.mrb[249].mxu0 }
 0x451   : > { %5654 = vst [vmem:[%s9040_s18 + $0x78] sm:$0xff] %v6207_v51  ;;  %v5243_v16 = vadd.f32 %v5242_v48, %v9026_v19  ;;  %v5244_v57 = vpop.f32.mrb[250].mxu0 }
 0x452   : > { %v5351_v34 = vadd.f32 %v5241_v13, %v5002_v63  ;;  %v5245_v12 = vadd.f32 %v5244_v57, %v9024_v27  ;;  %v5246_v14 = vpop.f32.mrb[251].mxu0 }
 0x453   : > { %v5352_v38 = vadd.f32 %v5243_v16, %v5003_v43  ;;  %v5247_v32 = vadd.f32 %v5246_v14, %v9026_v19 }
 0x454   : > { %v5415_v39 = vmax.f32 %v5351_v34, 0.0  ;;  %v5353_v41 = vadd.f32 %v5245_v12, %v5004_v58 }
 0x455   : > { %v5416_v50 = vmax.f32 %v5352_v38, 0.0  ;;  %v5354_v24 = vadd.f32 %v5247_v32, %v5005_v56  ;;  %v6996_v56 = vld [vmem:[%s7241_s30 + $0xb0] sm:$0xff] }
 0x456   : > { %v5417_v6 = vmax.f32 %v5353_v41, 0.0  ;;  %v5014_v34 = vunpack.c.l.bf16 %v6996_v56  ;;  %v5015_v14 = vunpack.c.h.bf16 %v6996_v56 }
 0x457   : > { %v6208_v61 = vpack.c.bf16 %v5416_v50, %v5415_v39  ;;  %v5418_v42 = vmax.f32 %v5354_v24, 0.0  ;;  %v6997_v39 = vld [vmem:[%s7241_s30 + $0xb8] sm:$0xff] }
 0x458   : > { %v5016_v41 = vunpack.c.l.bf16 %v6997_v39 }
 0x459   : > { %5655 = vst [vmem:[%s9040_s18 + $0x80] sm:$0xff] %v6208_v61  ;;  %v6209_v3 = vpack.c.bf16 %v5418_v42, %v5417_v6  ;;  %v5017_v6 = vunpack.c.h.bf16 %v6997_v39 }
 0x45b   : > { %5656 = vst [vmem:[%s9040_s18 + $0x88] sm:$0xff] %v6209_v3 }
 0x45d   : > { %v5250_v52 = vpop.f32.mrb[252].mxu0 }
 0x45e   : > { %v5251_v1 = vadd.f32 %v5250_v52, %v9024_v27  ;;  %v5252_v11 = vpop.f32.mrb[253].mxu0 }
 0x45f   : > { %v5253_v36 = vadd.f32 %v5252_v11, %v9026_v19  ;;  %v5254_v8 = vpop.f32.mrb[254].mxu0 }
 0x460   : > { %v5355_v46 = vadd.f32 %v5251_v1, %v5006_v17  ;;  %v5255_v25 = vadd.f32 %v5254_v8, %v9024_v27  ;;  %v5256_v22 = vpop.f32.mrb[255].mxu0  ;;  %v6998_v8 = vld [vmem:[%s7241_s30 + $0xc0] sm:$0xff] }
 0x461   : > { %v5356_v9 = vadd.f32 %v5253_v36, %v5007_v18  ;;  %v5257_v2 = vadd.f32 %v5256_v22, %v9026_v19  ;;  %v5019_v22 = vunpack.c.h.bf16 %v6998_v8 }
 0x462   : > { %v5419_v29 = vmax.f32 %v5355_v46, 0.0  ;;  %v5357_v40 = vadd.f32 %v5255_v25, %v5008_v10 }
 0x463   : > { %v5420_v26 = vmax.f32 %v5356_v9, 0.0  ;;  %v5358_v35 = vadd.f32 %v5257_v2, %v5009_v60  ;;  %v5018_v60 = vunpack.c.l.bf16 %v6998_v8 }
 0x464   : > { %v5421_v7 = vmax.f32 %v5357_v40, 0.0 }
 0x465   : > { %v6210_v53 = vpack.c.bf16 %v5420_v26, %v5419_v29  ;;  %v5422_v37 = vmax.f32 %v5358_v35, 0.0  ;;  %v6999_v29 = vld [vmem:[%s7241_s30 + $0xc8] sm:$0xff] }
 0x466   : > { %v5020_v40 = vunpack.c.l.bf16 %v6999_v29 }
 0x467   : > { %5657 = vst [vmem:[%s9040_s18 + $0x90] sm:$0xff] %v6210_v53  ;;  %v6211_v33 = vpack.c.bf16 %v5422_v37, %v5421_v7  ;;  %v5260_v55 = vpop.f32.mrb[0].mxu0  ;;  %v5021_v7 = vunpack.c.h.bf16 %v6999_v29 }
 0x468   : > { %v5261_v15 = vadd.f32 %v5260_v55, %v9024_v27  ;;  %v5262_v5 = vpop.f32.mrb[1].mxu0 }
 0x469   : > { %5658 = vst [vmem:[%s9040_s18 + $0x98] sm:$0xff] %v6211_v33  ;;  %v5263_v49 = vadd.f32 %v5262_v5, %v9026_v19  ;;  %v5264_v30 = vpop.f32.mrb[2].mxu0 }
 0x46a   : > { %v5359_v23 = vadd.f32 %v5261_v15, %v5010_v59  ;;  %v5265_v20 = vadd.f32 %v5264_v30, %v9024_v27  ;;  %v5266_v0 = vpop.f32.mrb[3].mxu0 }
 0x46b   : > { %v5360_v63 = vadd.f32 %v5263_v49, %v5011_v21  ;;  %v5267_v51 = vadd.f32 %v5266_v0, %v9026_v19 }
 0x46c   : > { %v5423_v62 = vmax.f32 %v5359_v23, 0.0  ;;  %v5361_v43 = vadd.f32 %v5265_v20, %v5012_v31 }
 0x46d   : > { %v5424_v13 = vmax.f32 %v5360_v63, 0.0  ;;  %v5362_v48 = vadd.f32 %v5267_v51, %v5013_v54  ;;  %v7000_v54 = vld [vmem:[%s7241_s30 + $0xd0] sm:$0xff] }
 0x46e   : > { %v5425_v44 = vmax.f32 %v5361_v43, 0.0  ;;  %v5022_v23 = vunpack.c.l.bf16 %v7000_v54  ;;  %v5023_v0 = vunpack.c.h.bf16 %v7000_v54 }
 0x46f   : > { %v6212_v58 = vpack.c.bf16 %v5424_v13, %v5423_v62  ;;  %v5426_v16 = vmax.f32 %v5362_v48, 0.0  ;;  %v7001_v62 = vld [vmem:[%s7241_s30 + $0xd8] sm:$0xff] }
 0x470   : > { %v5024_v43 = vunpack.c.l.bf16 %v7001_v62 }
 0x471   : > { %5659 = vst [vmem:[%s9040_s18 + $0xa0] sm:$0xff] %v6212_v58  ;;  %v6213_v57 = vpack.c.bf16 %v5426_v16, %v5425_v44  ;;  %v5025_v44 = vunpack.c.h.bf16 %v7001_v62 }
 0x473   : > { %5660 = vst [vmem:[%s9040_s18 + $0xa8] sm:$0xff] %v6213_v57 }
 0x475   : > { %v5270_v12 = vpop.f32.mrb[4].mxu0 }
 0x476   : > { %v5271_v38 = vadd.f32 %v5270_v12, %v9024_v27  ;;  %v5272_v32 = vpop.f32.mrb[5].mxu0 }
 0x477   : > { %v5273_v50 = vadd.f32 %v5272_v32, %v9026_v19  ;;  %v5274_v24 = vpop.f32.mrb[6].mxu0 }
 0x478   : > { %v5363_v61 = vadd.f32 %v5271_v38, %v5014_v34  ;;  %v5275_v42 = vadd.f32 %v5274_v24, %v9024_v27  ;;  %v5276_v3 = vpop.f32.mrb[7].mxu0  ;;  %v7002_v24 = vld [vmem:[%s7241_s30 + $0xe0] sm:$0xff] }
 0x479   : > { %v5364_v45 = vadd.f32 %v5273_v50, %v5015_v14  ;;  %v5277_v17 = vadd.f32 %v5276_v3, %v9026_v19  ;;  %v5027_v3 = vunpack.c.h.bf16 %v7002_v24 }
 0x47a   : > { %v5427_v52 = vmax.f32 %v5363_v61, 0.0  ;;  %v5365_v18 = vadd.f32 %v5275_v42, %v5016_v41 }
 0x47b   : > { %v5428_v1 = vmax.f32 %v5364_v45, 0.0  ;;  %v5366_v11 = vadd.f32 %v5277_v17, %v5017_v6  ;;  %v5026_v6 = vunpack.c.l.bf16 %v7002_v24 }
 0x47c   : > { %v5429_v28 = vmax.f32 %v5365_v18, 0.0 }
 0x47d   : > { %v6214_v10 = vpack.c.bf16 %v5428_v1, %v5427_v52  ;;  %v5430_v36 = vmax.f32 %v5366_v11, 0.0  ;;  %v7003_v52 = vld [vmem:[%s7241_s30 + $0xe8] sm:$0xff] }
 0x47e   : > { %v5028_v18 = vunpack.c.l.bf16 %v7003_v52 }
 0x47f   : > { %5661 = vst [vmem:[%s9040_s18 + $0xb0] sm:$0xff] %v6214_v10  ;;  %v6215_v46 = vpack.c.bf16 %v5430_v36, %v5429_v28  ;;  %v5280_v25 = vpop.f32.mrb[8].mxu0  ;;  %v5029_v28 = vunpack.c.h.bf16 %v7003_v52 }
 0x480   : > { %v5281_v9 = vadd.f32 %v5280_v25, %v9024_v27  ;;  %v5282_v2 = vpop.f32.mrb[9].mxu0 }
 0x481   : > { %5662 = vst [vmem:[%s9040_s18 + $0xb8] sm:$0xff] %v6215_v46  ;;  %v5283_v26 = vadd.f32 %v5282_v2, %v9026_v19  ;;  %v5284_v35 = vpop.f32.mrb[10].mxu0 }
 0x482   : > { %v5367_v53 = vadd.f32 %v5281_v9, %v5018_v60  ;;  %v5285_v37 = vadd.f32 %v5284_v35, %v9024_v27  ;;  %v5286_v47 = vpop.f32.mrb[11].mxu0 }
 0x483   : > { %v5368_v59 = vadd.f32 %v5283_v26, %v5019_v22  ;;  %v5287_v33 = vadd.f32 %v5286_v47, %v9026_v19 }
 0x484   : > { %v5431_v55 = vmax.f32 %v5367_v53, 0.0  ;;  %v5369_v21 = vadd.f32 %v5285_v37, %v5020_v40 }
 0x485   : > { %v5432_v15 = vmax.f32 %v5368_v59, 0.0  ;;  %v5370_v5 = vadd.f32 %v5287_v33, %v5021_v7  ;;  %v7004_v7 = vld [vmem:[%s7241_s30 + $0xf0] sm:$0xff] }
 0x486   : > { %v5433_v4 = vmax.f32 %v5369_v21, 0.0  ;;  %v5030_v53 = vunpack.c.l.bf16 %v7004_v7  ;;  %v5031_v47 = vunpack.c.h.bf16 %v7004_v7 }
 0x487   : > { %v6216_v31 = vpack.c.bf16 %v5432_v15, %v5431_v55  ;;  %v5434_v49 = vmax.f32 %v5370_v5, 0.0  ;;  %v7005_v55 = vld [vmem:[%s7241_s30 + $0xf8] sm:$0xff]  ;;  %s6224_s30 = sshll.u32 %s7076_s27, 12  ;;  %s7006_s27 = scalar_lea.vmem %s9166_s19, 4096 }
 0x488   : > { %v5032_v21 = vunpack.c.l.bf16 %v7005_v55  ;;  %s9164_s22 = scalar_lea.hbm %s9225_s7, %s6224_s30  ;;  %p7007_p12 = scmp.ne.s32.totalorder %s9166_s19, %s7006_s27 }
 0x489   : > { %5663 = vst [vmem:[%s9040_s18 + $0xc0] sm:$0xff] %v6216_v31  ;;  %v6217_v30 = vpack.c.bf16 %v5434_v49, %v5433_v4  ;;  %v5033_v4 = vunpack.c.h.bf16 %v7005_v55  ;;  %p7014_p2 = scmp.lt.s32.totalorder %s7012_s8, %s7006_s27 }
 0x48a   : > { %p7008_p13 = pnand %p7007_p12, %p7170_p4 }
 0x48b   : > { %5664 = vst [vmem:[%s9040_s18 + $0xc8] sm:$0xff] %v6217_v30  ;;  %p7015_p3 = por %p7014_p2, %p7013_p1 }
 0x48c   : > { %p7009_p0 = pneg %p7008_p13 }
 0x48d   : > { %v5290_v20 = vpop.f32.mrb[12].mxu0 }
 0x48e   : > { %v5291_v63 = vadd.f32 %v5290_v20, %v9024_v27  ;;  %v5292_v51 = vpop.f32.mrb[13].mxu0  ;;  %p7016_p5 = pnand %p7015_p3, %p7009_p0 }
 0x48f   : > { %v5293_v13 = vadd.f32 %v5292_v51, %v9026_v19  ;;  %v5294_v48 = vpop.f32.mrb[14].mxu0 }
 0x490   : > { %v5371_v58 = vadd.f32 %v5291_v63, %v5022_v23  ;;  %v5295_v16 = vadd.f32 %v5294_v48, %v9024_v27  ;;  %v5296_v57 = vpop.f32.mrb[15].mxu0 }
 0x491   : > { %v5372_v56 = vadd.f32 %v5293_v13, %v5023_v0  ;;  %v5297_v34 = vadd.f32 %v5296_v57, %v9026_v19 }
 0x492   : > { %v5435_v12 = vmax.f32 %v5371_v58, 0.0  ;;  %v5373_v14 = vadd.f32 %v5295_v16, %v5024_v43 }
 0x493   : > { %v5436_v38 = vmax.f32 %v5372_v56, 0.0  ;;  %v5374_v32 = vadd.f32 %v5297_v34, %v5025_v44 }
 0x494   : > { %v5437_v39 = vmax.f32 %v5373_v14, 0.0 }
 0x495   : > { %v6218_v41 = vpack.c.bf16 %v5436_v38, %v5435_v12  ;;  %v5438_v50 = vmax.f32 %v5374_v32, 0.0 }
 0x497   : > { %5665 = vst [vmem:[%s9040_s18 + $0xd0] sm:$0xff] %v6218_v41  ;;  %v6219_v61 = vpack.c.bf16 %v5438_v50, %v5437_v39  ;;  %v5300_v42 = vpop.f32.mrb[16].mxu0 }
 0x498   : > { %v5301_v45 = vadd.f32 %v5300_v42, %v9024_v27  ;;  %v5302_v17 = vpop.f32.mrb[17].mxu0 }
 0x499   : > { %5666 = vst [vmem:[%s9040_s18 + $0xd8] sm:$0xff] %v6219_v61  ;;  %v5303_v1 = vadd.f32 %v5302_v17, %v9026_v19  ;;  %v5304_v11 = vpop.f32.mrb[18].mxu0 }
 0x49a   : > { %v5375_v10 = vadd.f32 %v5301_v45, %v5026_v6  ;;  %v5305_v36 = vadd.f32 %v5304_v11, %v9024_v27  ;;  %v5306_v8 = vpop.f32.mrb[19].mxu0 }
 0x49b   : > { %v5376_v60 = vadd.f32 %v5303_v1, %v5027_v3  ;;  %v5307_v46 = vadd.f32 %v5306_v8, %v9026_v19 }
 0x49c   : > { %v5439_v25 = vmax.f32 %v5375_v10, 0.0  ;;  %v5377_v22 = vadd.f32 %v5305_v36, %v5028_v18 }
 0x49d   : > { %v5440_v9 = vmax.f32 %v5376_v60, 0.0  ;;  %v5378_v2 = vadd.f32 %v5307_v46, %v5029_v28 }
 0x49e   : > { %v5441_v29 = vmax.f32 %v5377_v22, 0.0 }
 0x49f   : > { %v6220_v40 = vpack.c.bf16 %v5440_v9, %v5439_v25  ;;  %v5442_v26 = vmax.f32 %v5378_v2, 0.0 }
 0x4a1   : > { %5667 = vst [vmem:[%s9040_s18 + $0xe0] sm:$0xff] %v6220_v40  ;;  %v6221_v35 = vpack.c.bf16 %v5442_v26, %v5441_v29 }
 0x4a3   : > { %5668 = vst [vmem:[%s9040_s18 + $0xe8] sm:$0xff] %v6221_v35 }
 0x4a5   : > { %v5310_v37 = vpop.f32.mrb[20].mxu0 }
 0x4a6   : > { %v5311_v59 = vadd.f32 %v5310_v37, %v9024_v27  ;;  %v5312_v33 = vpop.f32.mrb[21].mxu0 }
 0x4a7   : > { %v5313_v15 = vadd.f32 %v5312_v33, %v9026_v19  ;;  %v5314_v5 = vpop.f32.mrb[22].mxu0 }
 0x4a8   : > { %v5379_v31 = vadd.f32 %v5311_v59, %v5030_v53  ;;  %v5315_v49 = vadd.f32 %v5314_v5, %v9024_v27  ;;  %v5316_v30 = vpop.f32.mrb[23].mxu0 }
 0x4a9   : > { %v5380_v54 = vadd.f32 %v5313_v15, %v5031_v47  ;;  %v5317_v23 = vadd.f32 %v5316_v30, %v9026_v19 }
 0x4aa   : > { %v5443_v20 = vmax.f32 %v5379_v31, 0.0  ;;  %v5381_v0 = vadd.f32 %v5315_v49, %v5032_v21 }
 0x4ab   : > { %v5444_v63 = vmax.f32 %v5380_v54, 0.0  ;;  %v5382_v51 = vadd.f32 %v5317_v23, %v5033_v4 }
 0x4ac   : > { %v5445_v62 = vmax.f32 %v5381_v0, 0.0 }
 0x4ad   : > { %v6222_v43 = vpack.c.bf16 %v5444_v63, %v5443_v20  ;;  %v5446_v13 = vmax.f32 %v5382_v51, 0.0 }
 0x4af   : > { %5669 = vst [vmem:[%s9040_s18 + $0xf0] sm:$0xff] %v6222_v43  ;;  %v6223_v27 = vpack.c.bf16 %v5446_v13, %v5445_v62 }
 0x4b1   : > { %5670 = vst [vmem:[%s9040_s18 + $0xf8] sm:$0xff] %v6223_v27 }
 0x4b2   : > { %7019 = shalt.err (!%p7016_p5)
}
 0x4b3   : > { %s7020_s15 = scalar_lea.hbm %s9164_s22, 4096  ;;  %s7024_s18 = scalar_lea.hbm %s9225_s7, 8192 }
 0x4b4   : > { %p7021_p6 = scmp.ne.s32.totalorder %s9164_s22, %s7020_s15  ;;  %p7025_p10 = scmp.lt.u32.totalorder %s9164_s22, %s9225_s7 }
 0x4b5   : > { %p7026_p11 = scmp.lt.u32.totalorder %s7024_s18, %s7020_s15  ;;  %p7028_p13 = scmp.lt.u32.totalorder %s7020_s15, %s9164_s22 }
 0x4b6   : > { %p7022_p7 = pnand %p7021_p6, %p7170_p4 }
 0x4b7   : > { %p7027_p12 = por %p7026_p11, %p7025_p10 }
 0x4b8   : > { %p7023_p9 = pneg %p7022_p7 }
 0x4b9   : > { %p7029_p0 = por %p7028_p13, %p7027_p12 }
 0x4bb   : > { %p7030_p1 = pnand %p7029_p0, %p7023_p9 }
 0x4bd   : > { %7033 = shalt.err (!%p7030_p1)
}
 0x4be   : > { %s7088_s21 = smov 128   ;;  %s7089_s27 = smov 8  }
 0x4bf   : > { %6689 = dma.vmem_to_hbm [thread:$0]  (%p7170_p4), %s9166_s19, 4096, %s9164_s22, %s9172_s23, %s7088_s21, %s7088_s21, %s7089_s27  }
 0x4c0 PF: > { %p6695_p2 = scmp.ge.s32.totalorder %s7084_s29, 2  ;;  %s5703_s10 = sand.u32 1, %s7064_s24  }
 0x4c1   : > { %s5704_s12 = scalar_lea.sflag [#allocation5], %s5703_s10 }
 0x4c2   : > { %p6692_p3 = pnand %p6695_p2, %p7177_p8 }
 0x4c4   : > { %7059 = dma.done.wait (!%p6692_p3), %s5704_s12, 4096  }
 0x4c5   : > { %7061 = vsyncadd (!%p6692_p3), %s5704_s12, 4294963200  ;;  %s20_s29 = sadd.s32 1, %s7084_s29   ;;  %s9344_s24 = smov %s7068_s25 }
 0x4c6   : > { %p17_p5 = scmp.ge.s32.totalorder %s20_s29, 4   ;;  %s9345_s25 = smov %s7072_s26 }
 0x4c7   : > { %s9346_s26 = smov %s7183_s14  ;;  %s9347_s27 = smov %s7080_s28 }
 0x4c8   : > { %s9348_s28 = smov %s9350_s9  ;;  %19 = sbr.rel (!%p17_p5) target bundleno = 4 (0x4), region = 88 }
 0x4cf   :  { %5709 = vsyncpa [#allocation5], 1 }
 0x4d0   :  { %5711 = vsyncpa [#allocation5 + $0x1], 1 }

</bundles_post_ra>
